<compile_context>
chip_gen: v7x
topology: tpu7x:2x2x1
jax: 0.10.0
libtpu: 0.0.40
codegen_flags: <defaults>
</compile_context>

<pallas_src>
import jax
import jax.numpy as jnp
import numpy as np
from jax.experimental import pallas as pl
from jax.experimental.pallas import tpu as pltpu

EPS = 1e-5
_NEG_BIG = -1e30  # stand-in for -inf in the in-kernel max-pool (avoids inf*0)


# ------------------------------ Pallas kernel --------------------------------

def _inception_kernel(x_ref, stt_ref, mask_ref,
                      w1_ref, b1_ref,
                      w2a_ref, b2a_ref, w2b_ref, b2b_ref,
                      w3a_ref, b3a_ref, w3b_ref, b3b_ref, w3c_ref, b3c_ref,
                      w4_ref, b4_ref,
                      o_ref):
    """Whole InceptionV4-block forward for one image, entirely in VMEM.

    Activations are (C, HW): channels in sublanes, flattened space in lanes.
    stt_ref[t] is the precomputed (HW, HW) shift matrix for tap t such that
    (a @ stt_ref[t])[c, m] = a[c, m + dy*W + dx] for in-image taps, 0 otherwise.
    mask_ref[t, m] = 1.0 where tap t is inside the image at position m.
    """
    x = x_ref[...]          # (Cin, HW)
    mask = mask_ref[...]    # (9, HW)

    def shifted(a, t):
        if t == 4:          # center tap == identity
            return a
        return jnp.dot(a, stt_ref[t], preferred_element_type=jnp.float32)

    def relu(v):
        return jnp.maximum(v, 0.0)

    def conv1x1(a, w_ref, b_ref):
        # ConvTranspose2d(k=1,s=1) with BN scale folded into w, bias added here.
        return jnp.dot(w_ref[...], a, preferred_element_type=jnp.float32) + b_ref[...]

    def conv3x3(a, w_ref, b_ref):
        # ConvTranspose2d(k=3,s=1,p=1): 9 accumulating MXU matmuls on shifted views.
        acc = jnp.dot(w_ref[4], a, preferred_element_type=jnp.float32)   # center tap
        for t in range(9):
            if t == 4:
                continue
            acc = acc + jnp.dot(w_ref[t], shifted(a, t),
                                preferred_element_type=jnp.float32)
        return acc + b_ref[...]

    # branch1: 1x1 -> BN -> ReLU
    br1 = relu(conv1x1(x, w1_ref, b1_ref))

    # branch2: 1x1 -> BN -> ReLU -> 3x3 -> BN -> ReLU
    a2 = relu(conv1x1(x, w2a_ref, b2a_ref))
    br2 = relu(conv3x3(a2, w2b_ref, b2b_ref))

    # branch3: 1x1 -> BN -> ReLU -> 3x3 -> BN -> ReLU -> 3x3 -> BN -> ReLU
    a3 = relu(conv1x1(x, w3a_ref, b3a_ref))
    a3 = relu(conv3x3(a3, w3b_ref, b3b_ref))
    br3 = relu(conv3x3(a3, w3c_ref, b3c_ref))

    # branch4: MaxPool2d(3, stride=1, pad=1) -> 1x1 -> BN -> ReLU
    pooled = x                                   # center tap is always valid
    for t in range(9):
        if t == 4:
            continue
        valid = mask[t:t + 1, :] >= 0.5          # (1, HW), broadcasts over channels
        cand = jnp.where(valid, shifted(x, t), _NEG_BIG)
        pooled = jnp.maximum(pooled, cand)
    br4 = relu(conv1x1(pooled, w4_ref, b4_ref))

    # channel concat [br1, br2, br3, br4]: four full-lane-width sublane slices of the
    # single (out_feat, HW) output tile (out_feat = 8 = one full sublane tile).
    c4 = br1.shape[0]
    o_ref[0 * c4:1 * c4, :] = br1
    o_ref[1 * c4:2 * c4, :] = br2
    o_ref[2 * c4:3 * c4, :] = br3
    o_ref[3 * c4:4 * c4, :] = br4


# --------------------- wrapper: BN folding + pallas_call ----------------------

def _bn_fold(bn):
    gamma, beta, mean, var = bn
    scale = gamma / jnp.sqrt(var + EPS)
    return scale, beta - mean * scale


def _fold_convT1x1(conv, bn):
    w, b = conv                                   # w: (Cin, Cout, 1, 1), ConvTranspose layout
    scale, bn_bias = _bn_fold(bn)
    wt = (w[:, :, 0, 0] * scale[None, :]).T       # (Cout, Cin)
    bias = (b * scale + bn_bias).reshape(-1, 1)   # (Cout, 1)
    return wt.astype(jnp.float32), bias.astype(jnp.float32)


def _fold_convT3x3(conv, bn):
    w, b = conv                                   # w: (Cin, Cout, 3, 3), ConvTranspose layout
    scale, bn_bias = _bn_fold(bn)
    # tap t=(dy+1)*3+(dx+1) multiplies x[i+dy, j+dx]; ConvTranspose uses W[:, :, 1-dy, 1-dx]
    taps = [(w[:, :, 1 - dy, 1 - dx] * scale[None, :]).T      # (Cout, Cin) per tap
            for dy in (-1, 0, 1) for dx in (-1, 0, 1)]
    return (jnp.stack(taps, axis=0).astype(jnp.float32),      # (9, Cout, Cin)
            (b * scale + bn_bias).reshape(-1, 1).astype(jnp.float32))


def _shift_mats_and_masks(h, w):
    """Precompute per-tap shift matrices (HW,HW) and validity masks (9,HW) in numpy."""
    hw = h * w
    i = np.arange(hw) // w
    j = np.arange(hw) % w
    mats = np.zeros((9, hw, hw), np.float32)
    masks = np.zeros((9, hw), np.float32)
    t = 0
    for dy in (-1, 0, 1):
        for dx in (-1, 0, 1):
            valid = (i + dy >= 0) & (i + dy < h) & (j + dx >= 0) & (j + dx < w)
            masks[t] = valid.astype(np.float32)
            src = (i + dy) * w + (j + dx)
            m_idx = np.arange(hw)[valid]
            mats[t, src[valid], m_idx] = 1.0      # (a @ mats[t])[:, m] = a[:, m + dy*w + dx]
            t += 1
    return jnp.asarray(mats), jnp.asarray(masks)


@jax.jit
def inception_forward(x_nchw, params):
    B, Cin, H, W = x_nchw.shape
    HW = H * W
    c4 = params["b1_conv"][0].shape[1]
    out_feat = 4 * c4

    # NCHW -> (B, Cin, HW): pure reshape, no transpose (lane-dense layout is native).
    x2 = x_nchw.reshape(B, Cin, HW).astype(jnp.float32)
    stt, mask = _shift_mats_and_masks(H, W)

    w1, b1 = _fold_convT1x1(params["b1_conv"], params["b1_bn"])
    w2a, b2a = _fold_convT1x1(params["b2_conv1"], params["b2_bn1"])
    w2b, b2b = _fold_convT3x3(params["b2_conv2"], params["b2_bn2"])
    w3a, b3a = _fold_convT1x1(params["b3_conv1"], params["b3_bn1"])
    w3b, b3b = _fold_convT3x3(params["b3_conv2"], params["b3_bn2"])
    w3c, b3c = _fold_convT3x3(params["b3_conv3"], params["b3_bn3"])
    w4, b4 = _fold_convT1x1(params["b4_conv"], params["b4_bn"])

    def rep2(shape):
        return pl.BlockSpec(shape, lambda b: (0, 0))

    def rep3(shape):
        return pl.BlockSpec(shape, lambda b: (0, 0, 0))

    out3 = pl.pallas_call(
        _inception_kernel,
        out_shape=jax.ShapeDtypeStruct((B, out_feat, HW), jnp.float32),
        grid=(B,),
        in_specs=[
            pl.BlockSpec((None, Cin, HW), lambda b: (b, 0, 0)),     # x (one image / step)
            rep3((9, HW, HW)),                                      # shift matrices
            rep2((9, HW)),                                          # tap validity mask
            rep2((c4, Cin)), rep2((c4, 1)),                         # branch1 1x1
            rep2((c4, Cin)), rep2((c4, 1)),                         # branch2 1x1
            rep3((9, c4, c4)), rep2((c4, 1)),                       # branch2 3x3
            rep2((c4, Cin)), rep2((c4, 1)),                         # branch3 1x1
            rep3((9, c4, c4)), rep2((c4, 1)),                       # branch3 3x3 (a)
            rep3((9, c4, c4)), rep2((c4, 1)),                       # branch3 3x3 (b)
            rep2((c4, Cin)), rep2((c4, 1)),                         # branch4 1x1
        ],
        out_specs=pl.BlockSpec((None, out_feat, HW), lambda b: (b, 0, 0)),
        compiler_params=pltpu.CompilerParams(
            dimension_semantics=("parallel",)),   # B=2 parallel steps -> both TCs on v7x
    )(x2, stt, mask,
      w1, b1, w2a, b2a, w2b, b2b, w3a, b3a, w3b, b3b, w3c, b3c, w4, b4)

    return out3.reshape(B, out_feat, H, W)        # already NCHW -- no transpose needed


# ------------------------------ parameters ------------------------------------

def init_inception_params(key, in_feat, out_feat):
    c4 = out_feat // 4
    keys = iter(jax.random.split(key, 48))

    def convT(cin, cout, k):
        w = 0.3 * jax.random.normal(next(keys), (cin, cout, k, k), jnp.float32)
        b = 0.1 * jax.random.normal(next(keys), (cout,), jnp.float32)
        return (w, b)

    def bn(c):  # inference-mode BN params/buffers (nontrivial, deterministic)
        gamma = 1.0 + 0.1 * jax.random.normal(next(keys), (c,), jnp.float32)
        beta = 0.1 * jax.random.normal(next(keys), (c,), jnp.float32)
        mean = 0.1 * jax.random.normal(next(keys), (c,), jnp.float32)
        var = 1.0 + 0.1 * jax.random.uniform(next(keys), (c,), jnp.float32)
        return (gamma, beta, mean, var)

    return {
        "b1_conv": convT(in_feat, c4, 1), "b1_bn": bn(c4),
        "b2_conv1": convT(in_feat, c4, 1), "b2_bn1": bn(c4),
        "b2_conv2": convT(c4, c4, 3), "b2_bn2": bn(c4),
        "b3_conv1": convT(in_feat, c4, 1), "b3_bn1": bn(c4),
        "b3_conv2": convT(c4, c4, 3), "b3_bn2": bn(c4),
        "b3_conv3": convT(c4, c4, 3), "b3_bn3": bn(c4),
        "b4_conv": convT(in_feat, c4, 1), "b4_bn": bn(c4),
    }


# --------------------- pure-JAX reference (for validation) --------------------

def inception_reference(x, params):
    relu = jax.nn.relu

    def bn(y, p):
        g, be, m, v = p
        return ((y - m[None, :, None, None]) / jnp.sqrt(v[None, :, None, None] + EPS)
                * g[None, :, None, None] + be[None, :, None, None])

    def convT(y, conv, k, pad):
        # ConvTranspose2d(k, stride=1, padding=pad) == Conv2d(flipped W^T, padding=k-1-pad)
        w, b = conv
        wc = jnp.transpose(jnp.flip(w, axis=(2, 3)), (1, 0, 2, 3))
        p = k - 1 - pad
        out = jax.lax.conv_general_dilated(
            y, wc, (1, 1), [(p, p), (p, p)],
            dimension_numbers=("NCHW", "OIHW", "NCHW"))
        return out + b[None, :, None, None]

    br1 = relu(bn(convT(x, params["b1_conv"], 1, 0), params["b1_bn"]))

    t = relu(bn(convT(x, params["b2_conv1"], 1, 0), params["b2_bn1"]))
    br2 = relu(bn(convT(t, params["b2_conv2"], 3, 1), params["b2_bn2"]))

    t = relu(bn(convT(x, params["b3_conv1"], 1, 0), params["b3_bn1"]))
    t = relu(bn(convT(t, params["b3_conv2"], 3, 1), params["b3_bn2"]))
    br3 = relu(bn(convT(t, params["b3_conv3"], 3, 1), params["b3_bn3"]))

    pooled = jax.lax.reduce_window(x, -jnp.inf, jax.lax.max,
                                   (1, 1, 3, 3), (1, 1, 1, 1),
                                   [(0, 0), (0, 0), (1, 1), (1, 1)])
    br4 = relu(bn(convT(pooled, params["b4_conv"], 1, 0), params["b4_bn"]))

    return jnp.concatenate([br1, br2, br3, br4], axis=1)


# ------------------------------------ main -------------------------------------

if __name__ == "__main__":
    key = jax.random.PRNGKey(0)
    k_x, k_p = jax.random.split(key)

    # InceptionV4(in_feat=4, out_feat=8, normalize=True, last=False)
    in_feat, out_feat = 4, 8
    x = jax.random.normal(k_x, (2, in_feat, 16, 16), jnp.float32)   # NCHW like PyTorch
    params = init_inception_params(k_p, in_feat, out_feat)

    out = jax.block_until_ready(inception_forward(x, params))
    assert out.shape == (2, out_feat, 16, 16)

    ref = jax.block_until_ready(inception_reference(x, params))
    np.testing.assert_allclose(np.asarray(out), np.asarray(ref), rtol=2e-3, atol=2e-3)

    print("KERNEL_OK")
</pallas_src>

<mosaic_0001>
module attributes {stable_mosaic.version = 11 : i64} {
  func.func @_inception_kernel(%arg0: i32, %arg1: memref<1x4x256xf32, #tpu.memory_space<vmem>>, %arg2: memref<9x256x256xf32, #tpu.memory_space<vmem>>, %arg3: memref<9x256xf32, #tpu.memory_space<vmem>>, %arg4: memref<2x4xf32, #tpu.memory_space<vmem>>, %arg5: memref<2x1xf32, #tpu.memory_space<vmem>>, %arg6: memref<2x4xf32, #tpu.memory_space<vmem>>, %arg7: memref<2x1xf32, #tpu.memory_space<vmem>>, %arg8: memref<9x2x2xf32, #tpu.memory_space<vmem>>, %arg9: memref<2x1xf32, #tpu.memory_space<vmem>>, %arg10: memref<2x4xf32, #tpu.memory_space<vmem>>, %arg11: memref<2x1xf32, #tpu.memory_space<vmem>>, %arg12: memref<9x2x2xf32, #tpu.memory_space<vmem>>, %arg13: memref<2x1xf32, #tpu.memory_space<vmem>>, %arg14: memref<9x2x2xf32, #tpu.memory_space<vmem>>, %arg15: memref<2x1xf32, #tpu.memory_space<vmem>>, %arg16: memref<2x4xf32, #tpu.memory_space<vmem>>, %arg17: memref<2x1xf32, #tpu.memory_space<vmem>>, %arg18: memref<1x8x256xf32, #tpu.memory_space<vmem>>) attributes {dimension_semantics = [#tpu.dimension_semantics<parallel>], iteration_bounds = array<i64: 2>, scalar_prefetch = 0 : i64, scratch_operands = 0 : i64, tpu.core_type = #tpu.core_type<tc>, window_params = [{transform_indices = @transform_0, window_bounds = array<i64: 1, 4, 256>}, {pipeline_mode = #tpu.pipeline_mode<synchronous>, transform_indices = @transform_1, window_bounds = array<i64: 9, 256, 256>}, {pipeline_mode = #tpu.pipeline_mode<synchronous>, transform_indices = @transform_2, window_bounds = array<i64: 9, 256>}, {pipeline_mode = #tpu.pipeline_mode<synchronous>, transform_indices = @transform_3, window_bounds = array<i64: 2, 4>}, {pipeline_mode = #tpu.pipeline_mode<synchronous>, transform_indices = @transform_4, window_bounds = array<i64: 2, 1>}, {pipeline_mode = #tpu.pipeline_mode<synchronous>, transform_indices = @transform_5, window_bounds = array<i64: 2, 4>}, {pipeline_mode = #tpu.pipeline_mode<synchronous>, transform_indices = @transform_6, window_bounds = array<i64: 2, 1>}, {pipeline_mode = #tpu.pipeline_mode<synchronous>, transform_indices = @transform_7, window_bounds = array<i64: 9, 2, 2>}, {pipeline_mode = #tpu.pipeline_mode<synchronous>, transform_indices = @transform_8, window_bounds = array<i64: 2, 1>}, {pipeline_mode = #tpu.pipeline_mode<synchronous>, transform_indices = @transform_9, window_bounds = array<i64: 2, 4>}, {pipeline_mode = #tpu.pipeline_mode<synchronous>, transform_indices = @transform_10, window_bounds = array<i64: 2, 1>}, {pipeline_mode = #tpu.pipeline_mode<synchronous>, transform_indices = @transform_11, window_bounds = array<i64: 9, 2, 2>}, {pipeline_mode = #tpu.pipeline_mode<synchronous>, transform_indices = @transform_12, window_bounds = array<i64: 2, 1>}, {pipeline_mode = #tpu.pipeline_mode<synchronous>, transform_indices = @transform_13, window_bounds = array<i64: 9, 2, 2>}, {pipeline_mode = #tpu.pipeline_mode<synchronous>, transform_indices = @transform_14, window_bounds = array<i64: 2, 1>}, {pipeline_mode = #tpu.pipeline_mode<synchronous>, transform_indices = @transform_15, window_bounds = array<i64: 2, 4>}, {pipeline_mode = #tpu.pipeline_mode<synchronous>, transform_indices = @transform_16, window_bounds = array<i64: 2, 1>}, {transform_indices = @transform_17, window_bounds = array<i64: 1, 8, 256>}]} {
    %c0 = arith.constant 0 : index
    %c0_0 = arith.constant 0 : index
    %c0_1 = arith.constant 0 : index
    %0 = vector.load %arg1[%c0, %c0_0, %c0_1] : memref<1x4x256xf32, #tpu.memory_space<vmem>>, vector<1x4x256xf32>
    %1 = vector.shape_cast %0 : vector<1x4x256xf32> to vector<4x256xf32>
    %c0_2 = arith.constant 0 : index
    %c0_3 = arith.constant 0 : index
    %2 = vector.load %arg3[%c0_2, %c0_3] : memref<9x256xf32, #tpu.memory_space<vmem>>, vector<9x256xf32>
    %c0_4 = arith.constant 0 : index
    %c0_5 = arith.constant 0 : index
    %3 = vector.load %arg4[%c0_4, %c0_5] : memref<2x4xf32, #tpu.memory_space<vmem>>, vector<2x4xf32>
    %cst = arith.constant dense<0.000000e+00> : vector<2x256xf32>
    %4 = tpu.matmul %3, %1, %cst {dimension_numbers = #tpu.dot_dimension_numbers<[1], [0], [0], [1], [0, 0, 1, 1], [], []>} : vector<2x4xf32>, vector<4x256xf32>, vector<2x256xf32> -> vector<2x256xf32>
    %c0_6 = arith.constant 0 : index
    %c0_7 = arith.constant 0 : index
    %5 = vector.load %arg5[%c0_6, %c0_7] : memref<2x1xf32, #tpu.memory_space<vmem>>, vector<2x1xf32>
    %6 = vector.broadcast %5 : vector<2x1xf32> to vector<2x256xf32>
    %7 = arith.addf %4, %6 : vector<2x256xf32>
    %cst_8 = arith.constant 0.000000e+00 : f32
    %8 = vector.broadcast %cst_8 : f32 to vector<2x256xf32>
    %9 = arith.maximumf %7, %8 : vector<2x256xf32>
    %c0_9 = arith.constant 0 : index
    %c0_10 = arith.constant 0 : index
    %10 = vector.load %arg6[%c0_9, %c0_10] : memref<2x4xf32, #tpu.memory_space<vmem>>, vector<2x4xf32>
    %cst_11 = arith.constant dense<0.000000e+00> : vector<2x256xf32>
    %11 = tpu.matmul %10, %1, %cst_11 {dimension_numbers = #tpu.dot_dimension_numbers<[1], [0], [0], [1], [0, 0, 1, 1], [], []>} : vector<2x4xf32>, vector<4x256xf32>, vector<2x256xf32> -> vector<2x256xf32>
    %c0_12 = arith.constant 0 : index
    %c0_13 = arith.constant 0 : index
    %12 = vector.load %arg7[%c0_12, %c0_13] : memref<2x1xf32, #tpu.memory_space<vmem>>, vector<2x1xf32>
    %13 = vector.broadcast %12 : vector<2x1xf32> to vector<2x256xf32>
    %14 = arith.addf %11, %13 : vector<2x256xf32>
    %cst_14 = arith.constant 0.000000e+00 : f32
    %15 = vector.broadcast %cst_14 : f32 to vector<2x256xf32>
    %16 = arith.maximumf %14, %15 : vector<2x256xf32>
    %c4 = arith.constant 4 : index
    %c0_15 = arith.constant 0 : index
    %c0_16 = arith.constant 0 : index
    %17 = vector.load %arg8[%c4, %c0_15, %c0_16] : memref<9x2x2xf32, #tpu.memory_space<vmem>>, vector<1x2x2xf32>
    %18 = vector.shape_cast %17 : vector<1x2x2xf32> to vector<2x2xf32>
    %cst_17 = arith.constant dense<0.000000e+00> : vector<2x256xf32>
    %19 = tpu.matmul %18, %16, %cst_17 {dimension_numbers = #tpu.dot_dimension_numbers<[1], [0], [0], [1], [0, 0, 1, 1], [], []>} : vector<2x2xf32>, vector<2x256xf32>, vector<2x256xf32> -> vector<2x256xf32>
    %c0_18 = arith.constant 0 : index
    %c0_19 = arith.constant 0 : index
    %c0_20 = arith.constant 0 : index
    %20 = vector.load %arg8[%c0_18, %c0_19, %c0_20] : memref<9x2x2xf32, #tpu.memory_space<vmem>>, vector<1x2x2xf32>
    %21 = vector.shape_cast %20 : vector<1x2x2xf32> to vector<2x2xf32>
    %c0_21 = arith.constant 0 : index
    %c0_22 = arith.constant 0 : index
    %c0_23 = arith.constant 0 : index
    %22 = vector.load %arg2[%c0_21, %c0_22, %c0_23] : memref<9x256x256xf32, #tpu.memory_space<vmem>>, vector<1x256x256xf32>
    %23 = vector.shape_cast %22 : vector<1x256x256xf32> to vector<256x256xf32>
    %cst_24 = arith.constant dense<0.000000e+00> : vector<2x256xf32>
    %24 = tpu.matmul %16, %23, %cst_24 {dimension_numbers = #tpu.dot_dimension_numbers<[1], [0], [0], [1], [0, 0, 1, 1], [], []>} : vector<2x256xf32>, vector<256x256xf32>, vector<2x256xf32> -> vector<2x256xf32>
    %cst_25 = arith.constant dense<0.000000e+00> : vector<2x256xf32>
    %25 = tpu.matmul %21, %24, %cst_25 {dimension_numbers = #tpu.dot_dimension_numbers<[1], [0], [0], [1], [0, 0, 1, 1], [], []>} : vector<2x2xf32>, vector<2x256xf32>, vector<2x256xf32> -> vector<2x256xf32>
    %26 = arith.addf %19, %25 : vector<2x256xf32>
    %c1 = arith.constant 1 : index
    %c0_26 = arith.constant 0 : index
    %c0_27 = arith.constant 0 : index
    %27 = vector.load %arg8[%c1, %c0_26, %c0_27] : memref<9x2x2xf32, #tpu.memory_space<vmem>>, vector<1x2x2xf32>
    %28 = vector.shape_cast %27 : vector<1x2x2xf32> to vector<2x2xf32>
    %c1_28 = arith.constant 1 : index
    %c0_29 = arith.constant 0 : index
    %c0_30 = arith.constant 0 : index
    %29 = vector.load %arg2[%c1_28, %c0_29, %c0_30] : memref<9x256x256xf32, #tpu.memory_space<vmem>>, vector<1x256x256xf32>
    %30 = vector.shape_cast %29 : vector<1x256x256xf32> to vector<256x256xf32>
    %cst_31 = arith.constant dense<0.000000e+00> : vector<2x256xf32>
    %31 = tpu.matmul %16, %30, %cst_31 {dimension_numbers = #tpu.dot_dimension_numbers<[1], [0], [0], [1], [0, 0, 1, 1], [], []>} : vector<2x256xf32>, vector<256x256xf32>, vector<2x256xf32> -> vector<2x256xf32>
    %cst_32 = arith.constant dense<0.000000e+00> : vector<2x256xf32>
    %32 = tpu.matmul %28, %31, %cst_32 {dimension_numbers = #tpu.dot_dimension_numbers<[1], [0], [0], [1], [0, 0, 1, 1], [], []>} : vector<2x2xf32>, vector<2x256xf32>, vector<2x256xf32> -> vector<2x256xf32>
    %33 = arith.addf %26, %32 : vector<2x256xf32>
    %c2 = arith.constant 2 : index
    %c0_33 = arith.constant 0 : index
    %c0_34 = arith.constant 0 : index
    %34 = vector.load %arg8[%c2, %c0_33, %c0_34] : memref<9x2x2xf32, #tpu.memory_space<vmem>>, vector<1x2x2xf32>
    %35 = vector.shape_cast %34 : vector<1x2x2xf32> to vector<2x2xf32>
    %c2_35 = arith.constant 2 : index
    %c0_36 = arith.constant 0 : index
    %c0_37 = arith.constant 0 : index
    %36 = vector.load %arg2[%c2_35, %c0_36, %c0_37] : memref<9x256x256xf32, #tpu.memory_space<vmem>>, vector<1x256x256xf32>
    %37 = vector.shape_cast %36 : vector<1x256x256xf32> to vector<256x256xf32>
    %cst_38 = arith.constant dense<0.000000e+00> : vector<2x256xf32>
    %38 = tpu.matmul %16, %37, %cst_38 {dimension_numbers = #tpu.dot_dimension_numbers<[1], [0], [0], [1], [0, 0, 1, 1], [], []>} : vector<2x256xf32>, vector<256x256xf32>, vector<2x256xf32> -> vector<2x256xf32>
    %cst_39 = arith.constant dense<0.000000e+00> : vector<2x256xf32>
    %39 = tpu.matmul %35, %38, %cst_39 {dimension_numbers = #tpu.dot_dimension_numbers<[1], [0], [0], [1], [0, 0, 1, 1], [], []>} : vector<2x2xf32>, vector<2x256xf32>, vector<2x256xf32> -> vector<2x256xf32>
    %40 = arith.addf %33, %39 : vector<2x256xf32>
    %c3 = arith.constant 3 : index
    %c0_40 = arith.constant 0 : index
    %c0_41 = arith.constant 0 : index
    %41 = vector.load %arg8[%c3, %c0_40, %c0_41] : memref<9x2x2xf32, #tpu.memory_space<vmem>>, vector<1x2x2xf32>
    %42 = vector.shape_cast %41 : vector<1x2x2xf32> to vector<2x2xf32>
    %c3_42 = arith.constant 3 : index
    %c0_43 = arith.constant 0 : index
    %c0_44 = arith.constant 0 : index
    %43 = vector.load %arg2[%c3_42, %c0_43, %c0_44] : memref<9x256x256xf32, #tpu.memory_space<vmem>>, vector<1x256x256xf32>
    %44 = vector.shape_cast %43 : vector<1x256x256xf32> to vector<256x256xf32>
    %cst_45 = arith.constant dense<0.000000e+00> : vector<2x256xf32>
    %45 = tpu.matmul %16, %44, %cst_45 {dimension_numbers = #tpu.dot_dimension_numbers<[1], [0], [0], [1], [0, 0, 1, 1], [], []>} : vector<2x256xf32>, vector<256x256xf32>, vector<2x256xf32> -> vector<2x256xf32>
    %cst_46 = arith.constant dense<0.000000e+00> : vector<2x256xf32>
    %46 = tpu.matmul %42, %45, %cst_46 {dimension_numbers = #tpu.dot_dimension_numbers<[1], [0], [0], [1], [0, 0, 1, 1], [], []>} : vector<2x2xf32>, vector<2x256xf32>, vector<2x256xf32> -> vector<2x256xf32>
    %47 = arith.addf %40, %46 : vector<2x256xf32>
    %c5 = arith.constant 5 : index
    %c0_47 = arith.constant 0 : index
    %c0_48 = arith.constant 0 : index
    %48 = vector.load %arg8[%c5, %c0_47, %c0_48] : memref<9x2x2xf32, #tpu.memory_space<vmem>>, vector<1x2x2xf32>
    %49 = vector.shape_cast %48 : vector<1x2x2xf32> to vector<2x2xf32>
    %c5_49 = arith.constant 5 : index
    %c0_50 = arith.constant 0 : index
    %c0_51 = arith.constant 0 : index
    %50 = vector.load %arg2[%c5_49, %c0_50, %c0_51] : memref<9x256x256xf32, #tpu.memory_space<vmem>>, vector<1x256x256xf32>
    %51 = vector.shape_cast %50 : vector<1x256x256xf32> to vector<256x256xf32>
    %cst_52 = arith.constant dense<0.000000e+00> : vector<2x256xf32>
    %52 = tpu.matmul %16, %51, %cst_52 {dimension_numbers = #tpu.dot_dimension_numbers<[1], [0], [0], [1], [0, 0, 1, 1], [], []>} : vector<2x256xf32>, vector<256x256xf32>, vector<2x256xf32> -> vector<2x256xf32>
    %cst_53 = arith.constant dense<0.000000e+00> : vector<2x256xf32>
    %53 = tpu.matmul %49, %52, %cst_53 {dimension_numbers = #tpu.dot_dimension_numbers<[1], [0], [0], [1], [0, 0, 1, 1], [], []>} : vector<2x2xf32>, vector<2x256xf32>, vector<2x256xf32> -> vector<2x256xf32>
    %54 = arith.addf %47, %53 : vector<2x256xf32>
    %c6 = arith.constant 6 : index
    %c0_54 = arith.constant 0 : index
    %c0_55 = arith.constant 0 : index
    %55 = vector.load %arg8[%c6, %c0_54, %c0_55] : memref<9x2x2xf32, #tpu.memory_space<vmem>>, vector<1x2x2xf32>
    %56 = vector.shape_cast %55 : vector<1x2x2xf32> to vector<2x2xf32>
    %c6_56 = arith.constant 6 : index
    %c0_57 = arith.constant 0 : index
    %c0_58 = arith.constant 0 : index
    %57 = vector.load %arg2[%c6_56, %c0_57, %c0_58] : memref<9x256x256xf32, #tpu.memory_space<vmem>>, vector<1x256x256xf32>
    %58 = vector.shape_cast %57 : vector<1x256x256xf32> to vector<256x256xf32>
    %cst_59 = arith.constant dense<0.000000e+00> : vector<2x256xf32>
    %59 = tpu.matmul %16, %58, %cst_59 {dimension_numbers = #tpu.dot_dimension_numbers<[1], [0], [0], [1], [0, 0, 1, 1], [], []>} : vector<2x256xf32>, vector<256x256xf32>, vector<2x256xf32> -> vector<2x256xf32>
    %cst_60 = arith.constant dense<0.000000e+00> : vector<2x256xf32>
    %60 = tpu.matmul %56, %59, %cst_60 {dimension_numbers = #tpu.dot_dimension_numbers<[1], [0], [0], [1], [0, 0, 1, 1], [], []>} : vector<2x2xf32>, vector<2x256xf32>, vector<2x256xf32> -> vector<2x256xf32>
    %61 = arith.addf %54, %60 : vector<2x256xf32>
    %c7 = arith.constant 7 : index
    %c0_61 = arith.constant 0 : index
    %c0_62 = arith.constant 0 : index
    %62 = vector.load %arg8[%c7, %c0_61, %c0_62] : memref<9x2x2xf32, #tpu.memory_space<vmem>>, vector<1x2x2xf32>
    %63 = vector.shape_cast %62 : vector<1x2x2xf32> to vector<2x2xf32>
    %c7_63 = arith.constant 7 : index
    %c0_64 = arith.constant 0 : index
    %c0_65 = arith.constant 0 : index
    %64 = vector.load %arg2[%c7_63, %c0_64, %c0_65] : memref<9x256x256xf32, #tpu.memory_space<vmem>>, vector<1x256x256xf32>
    %65 = vector.shape_cast %64 : vector<1x256x256xf32> to vector<256x256xf32>
    %cst_66 = arith.constant dense<0.000000e+00> : vector<2x256xf32>
    %66 = tpu.matmul %16, %65, %cst_66 {dimension_numbers = #tpu.dot_dimension_numbers<[1], [0], [0], [1], [0, 0, 1, 1], [], []>} : vector<2x256xf32>, vector<256x256xf32>, vector<2x256xf32> -> vector<2x256xf32>
    %cst_67 = arith.constant dense<0.000000e+00> : vector<2x256xf32>
    %67 = tpu.matmul %63, %66, %cst_67 {dimension_numbers = #tpu.dot_dimension_numbers<[1], [0], [0], [1], [0, 0, 1, 1], [], []>} : vector<2x2xf32>, vector<2x256xf32>, vector<2x256xf32> -> vector<2x256xf32>
    %68 = arith.addf %61, %67 : vector<2x256xf32>
    %c8 = arith.constant 8 : index
    %c0_68 = arith.constant 0 : index
    %c0_69 = arith.constant 0 : index
    %69 = vector.load %arg8[%c8, %c0_68, %c0_69] : memref<9x2x2xf32, #tpu.memory_space<vmem>>, vector<1x2x2xf32>
    %70 = vector.shape_cast %69 : vector<1x2x2xf32> to vector<2x2xf32>
    %c8_70 = arith.constant 8 : index
    %c0_71 = arith.constant 0 : index
    %c0_72 = arith.constant 0 : index
    %71 = vector.load %arg2[%c8_70, %c0_71, %c0_72] : memref<9x256x256xf32, #tpu.memory_space<vmem>>, vector<1x256x256xf32>
    %72 = vector.shape_cast %71 : vector<1x256x256xf32> to vector<256x256xf32>
    %cst_73 = arith.constant dense<0.000000e+00> : vector<2x256xf32>
    %73 = tpu.matmul %16, %72, %cst_73 {dimension_numbers = #tpu.dot_dimension_numbers<[1], [0], [0], [1], [0, 0, 1, 1], [], []>} : vector<2x256xf32>, vector<256x256xf32>, vector<2x256xf32> -> vector<2x256xf32>
    %cst_74 = arith.constant dense<0.000000e+00> : vector<2x256xf32>
    %74 = tpu.matmul %70, %73, %cst_74 {dimension_numbers = #tpu.dot_dimension_numbers<[1], [0], [0], [1], [0, 0, 1, 1], [], []>} : vector<2x2xf32>, vector<2x256xf32>, vector<2x256xf32> -> vector<2x256xf32>
    %75 = arith.addf %68, %74 : vector<2x256xf32>
    %c0_75 = arith.constant 0 : index
    %c0_76 = arith.constant 0 : index
    %76 = vector.load %arg9[%c0_75, %c0_76] : memref<2x1xf32, #tpu.memory_space<vmem>>, vector<2x1xf32>
    %77 = vector.broadcast %76 : vector<2x1xf32> to vector<2x256xf32>
    %78 = arith.addf %75, %77 : vector<2x256xf32>
    %cst_77 = arith.constant 0.000000e+00 : f32
    %79 = vector.broadcast %cst_77 : f32 to vector<2x256xf32>
    %80 = arith.maximumf %78, %79 : vector<2x256xf32>
    %c0_78 = arith.constant 0 : index
    %c0_79 = arith.constant 0 : index
    %81 = vector.load %arg10[%c0_78, %c0_79] : memref<2x4xf32, #tpu.memory_space<vmem>>, vector<2x4xf32>
    %cst_80 = arith.constant dense<0.000000e+00> : vector<2x256xf32>
    %82 = tpu.matmul %81, %1, %cst_80 {dimension_numbers = #tpu.dot_dimension_numbers<[1], [0], [0], [1], [0, 0, 1, 1], [], []>} : vector<2x4xf32>, vector<4x256xf32>, vector<2x256xf32> -> vector<2x256xf32>
    %c0_81 = arith.constant 0 : index
    %c0_82 = arith.constant 0 : index
    %83 = vector.load %arg11[%c0_81, %c0_82] : memref<2x1xf32, #tpu.memory_space<vmem>>, vector<2x1xf32>
    %84 = vector.broadcast %83 : vector<2x1xf32> to vector<2x256xf32>
    %85 = arith.addf %82, %84 : vector<2x256xf32>
    %cst_83 = arith.constant 0.000000e+00 : f32
    %86 = vector.broadcast %cst_83 : f32 to vector<2x256xf32>
    %87 = arith.maximumf %85, %86 : vector<2x256xf32>
    %c4_84 = arith.constant 4 : index
    %c0_85 = arith.constant 0 : index
    %c0_86 = arith.constant 0 : index
    %88 = vector.load %arg12[%c4_84, %c0_85, %c0_86] : memref<9x2x2xf32, #tpu.memory_space<vmem>>, vector<1x2x2xf32>
    %89 = vector.shape_cast %88 : vector<1x2x2xf32> to vector<2x2xf32>
    %cst_87 = arith.constant dense<0.000000e+00> : vector<2x256xf32>
    %90 = tpu.matmul %89, %87, %cst_87 {dimension_numbers = #tpu.dot_dimension_numbers<[1], [0], [0], [1], [0, 0, 1, 1], [], []>} : vector<2x2xf32>, vector<2x256xf32>, vector<2x256xf32> -> vector<2x256xf32>
    %c0_88 = arith.constant 0 : index
    %c0_89 = arith.constant 0 : index
    %c0_90 = arith.constant 0 : index
    %91 = vector.load %arg12[%c0_88, %c0_89, %c0_90] : memref<9x2x2xf32, #tpu.memory_space<vmem>>, vector<1x2x2xf32>
    %92 = vector.shape_cast %91 : vector<1x2x2xf32> to vector<2x2xf32>
    %c0_91 = arith.constant 0 : index
    %c0_92 = arith.constant 0 : index
    %c0_93 = arith.constant 0 : index
    %93 = vector.load %arg2[%c0_91, %c0_92, %c0_93] : memref<9x256x256xf32, #tpu.memory_space<vmem>>, vector<1x256x256xf32>
    %94 = vector.shape_cast %93 : vector<1x256x256xf32> to vector<256x256xf32>
    %cst_94 = arith.constant dense<0.000000e+00> : vector<2x256xf32>
    %95 = tpu.matmul %87, %94, %cst_94 {dimension_numbers = #tpu.dot_dimension_numbers<[1], [0], [0], [1], [0, 0, 1, 1], [], []>} : vector<2x256xf32>, vector<256x256xf32>, vector<2x256xf32> -> vector<2x256xf32>
    %cst_95 = arith.constant dense<0.000000e+00> : vector<2x256xf32>
    %96 = tpu.matmul %92, %95, %cst_95 {dimension_numbers = #tpu.dot_dimension_numbers<[1], [0], [0], [1], [0, 0, 1, 1], [], []>} : vector<2x2xf32>, vector<2x256xf32>, vector<2x256xf32> -> vector<2x256xf32>
    %97 = arith.addf %90, %96 : vector<2x256xf32>
    %c1_96 = arith.constant 1 : index
    %c0_97 = arith.constant 0 : index
    %c0_98 = arith.constant 0 : index
    %98 = vector.load %arg12[%c1_96, %c0_97, %c0_98] : memref<9x2x2xf32, #tpu.memory_space<vmem>>, vector<1x2x2xf32>
    %99 = vector.shape_cast %98 : vector<1x2x2xf32> to vector<2x2xf32>
    %c1_99 = arith.constant 1 : index
    %c0_100 = arith.constant 0 : index
    %c0_101 = arith.constant 0 : index
    %100 = vector.load %arg2[%c1_99, %c0_100, %c0_101] : memref<9x256x256xf32, #tpu.memory_space<vmem>>, vector<1x256x256xf32>
    %101 = vector.shape_cast %100 : vector<1x256x256xf32> to vector<256x256xf32>
    %cst_102 = arith.constant dense<0.000000e+00> : vector<2x256xf32>
    %102 = tpu.matmul %87, %101, %cst_102 {dimension_numbers = #tpu.dot_dimension_numbers<[1], [0], [0], [1], [0, 0, 1, 1], [], []>} : vector<2x256xf32>, vector<256x256xf32>, vector<2x256xf32> -> vector<2x256xf32>
    %cst_103 = arith.constant dense<0.000000e+00> : vector<2x256xf32>
    %103 = tpu.matmul %99, %102, %cst_103 {dimension_numbers = #tpu.dot_dimension_numbers<[1], [0], [0], [1], [0, 0, 1, 1], [], []>} : vector<2x2xf32>, vector<2x256xf32>, vector<2x256xf32> -> vector<2x256xf32>
    %104 = arith.addf %97, %103 : vector<2x256xf32>
    %c2_104 = arith.constant 2 : index
    %c0_105 = arith.constant 0 : index
    %c0_106 = arith.constant 0 : index
    %105 = vector.load %arg12[%c2_104, %c0_105, %c0_106] : memref<9x2x2xf32, #tpu.memory_space<vmem>>, vector<1x2x2xf32>
    %106 = vector.shape_cast %105 : vector<1x2x2xf32> to vector<2x2xf32>
    %c2_107 = arith.constant 2 : index
    %c0_108 = arith.constant 0 : index
    %c0_109 = arith.constant 0 : index
    %107 = vector.load %arg2[%c2_107, %c0_108, %c0_109] : memref<9x256x256xf32, #tpu.memory_space<vmem>>, vector<1x256x256xf32>
    %108 = vector.shape_cast %107 : vector<1x256x256xf32> to vector<256x256xf32>
    %cst_110 = arith.constant dense<0.000000e+00> : vector<2x256xf32>
    %109 = tpu.matmul %87, %108, %cst_110 {dimension_numbers = #tpu.dot_dimension_numbers<[1], [0], [0], [1], [0, 0, 1, 1], [], []>} : vector<2x256xf32>, vector<256x256xf32>, vector<2x256xf32> -> vector<2x256xf32>
    %cst_111 = arith.constant dense<0.000000e+00> : vector<2x256xf32>
    %110 = tpu.matmul %106, %109, %cst_111 {dimension_numbers = #tpu.dot_dimension_numbers<[1], [0], [0], [1], [0, 0, 1, 1], [], []>} : vector<2x2xf32>, vector<2x256xf32>, vector<2x256xf32> -> vector<2x256xf32>
    %111 = arith.addf %104, %110 : vector<2x256xf32>
    %c3_112 = arith.constant 3 : index
    %c0_113 = arith.constant 0 : index
    %c0_114 = arith.constant 0 : index
    %112 = vector.load %arg12[%c3_112, %c0_113, %c0_114] : memref<9x2x2xf32, #tpu.memory_space<vmem>>, vector<1x2x2xf32>
    %113 = vector.shape_cast %112 : vector<1x2x2xf32> to vector<2x2xf32>
    %c3_115 = arith.constant 3 : index
    %c0_116 = arith.constant 0 : index
    %c0_117 = arith.constant 0 : index
    %114 = vector.load %arg2[%c3_115, %c0_116, %c0_117] : memref<9x256x256xf32, #tpu.memory_space<vmem>>, vector<1x256x256xf32>
    %115 = vector.shape_cast %114 : vector<1x256x256xf32> to vector<256x256xf32>
    %cst_118 = arith.constant dense<0.000000e+00> : vector<2x256xf32>
    %116 = tpu.matmul %87, %115, %cst_118 {dimension_numbers = #tpu.dot_dimension_numbers<[1], [0], [0], [1], [0, 0, 1, 1], [], []>} : vector<2x256xf32>, vector<256x256xf32>, vector<2x256xf32> -> vector<2x256xf32>
    %cst_119 = arith.constant dense<0.000000e+00> : vector<2x256xf32>
    %117 = tpu.matmul %113, %116, %cst_119 {dimension_numbers = #tpu.dot_dimension_numbers<[1], [0], [0], [1], [0, 0, 1, 1], [], []>} : vector<2x2xf32>, vector<2x256xf32>, vector<2x256xf32> -> vector<2x256xf32>
    %118 = arith.addf %111, %117 : vector<2x256xf32>
    %c5_120 = arith.constant 5 : index
    %c0_121 = arith.constant 0 : index
    %c0_122 = arith.constant 0 : index
    %119 = vector.load %arg12[%c5_120, %c0_121, %c0_122] : memref<9x2x2xf32, #tpu.memory_space<vmem>>, vector<1x2x2xf32>
    %120 = vector.shape_cast %119 : vector<1x2x2xf32> to vector<2x2xf32>
    %c5_123 = arith.constant 5 : index
    %c0_124 = arith.constant 0 : index
    %c0_125 = arith.constant 0 : index
    %121 = vector.load %arg2[%c5_123, %c0_124, %c0_125] : memref<9x256x256xf32, #tpu.memory_space<vmem>>, vector<1x256x256xf32>
    %122 = vector.shape_cast %121 : vector<1x256x256xf32> to vector<256x256xf32>
    %cst_126 = arith.constant dense<0.000000e+00> : vector<2x256xf32>
    %123 = tpu.matmul %87, %122, %cst_126 {dimension_numbers = #tpu.dot_dimension_numbers<[1], [0], [0], [1], [0, 0, 1, 1], [], []>} : vector<2x256xf32>, vector<256x256xf32>, vector<2x256xf32> -> vector<2x256xf32>
    %cst_127 = arith.constant dense<0.000000e+00> : vector<2x256xf32>
    %124 = tpu.matmul %120, %123, %cst_127 {dimension_numbers = #tpu.dot_dimension_numbers<[1], [0], [0], [1], [0, 0, 1, 1], [], []>} : vector<2x2xf32>, vector<2x256xf32>, vector<2x256xf32> -> vector<2x256xf32>
    %125 = arith.addf %118, %124 : vector<2x256xf32>
    %c6_128 = arith.constant 6 : index
    %c0_129 = arith.constant 0 : index
    %c0_130 = arith.constant 0 : index
    %126 = vector.load %arg12[%c6_128, %c0_129, %c0_130] : memref<9x2x2xf32, #tpu.memory_space<vmem>>, vector<1x2x2xf32>
    %127 = vector.shape_cast %126 : vector<1x2x2xf32> to vector<2x2xf32>
    %c6_131 = arith.constant 6 : index
    %c0_132 = arith.constant 0 : index
    %c0_133 = arith.constant 0 : index
    %128 = vector.load %arg2[%c6_131, %c0_132, %c0_133] : memref<9x256x256xf32, #tpu.memory_space<vmem>>, vector<1x256x256xf32>
    %129 = vector.shape_cast %128 : vector<1x256x256xf32> to vector<256x256xf32>
    %cst_134 = arith.constant dense<0.000000e+00> : vector<2x256xf32>
    %130 = tpu.matmul %87, %129, %cst_134 {dimension_numbers = #tpu.dot_dimension_numbers<[1], [0], [0], [1], [0, 0, 1, 1], [], []>} : vector<2x256xf32>, vector<256x256xf32>, vector<2x256xf32> -> vector<2x256xf32>
    %cst_135 = arith.constant dense<0.000000e+00> : vector<2x256xf32>
    %131 = tpu.matmul %127, %130, %cst_135 {dimension_numbers = #tpu.dot_dimension_numbers<[1], [0], [0], [1], [0, 0, 1, 1], [], []>} : vector<2x2xf32>, vector<2x256xf32>, vector<2x256xf32> -> vector<2x256xf32>
    %132 = arith.addf %125, %131 : vector<2x256xf32>
    %c7_136 = arith.constant 7 : index
    %c0_137 = arith.constant 0 : index
    %c0_138 = arith.constant 0 : index
    %133 = vector.load %arg12[%c7_136, %c0_137, %c0_138] : memref<9x2x2xf32, #tpu.memory_space<vmem>>, vector<1x2x2xf32>
    %134 = vector.shape_cast %133 : vector<1x2x2xf32> to vector<2x2xf32>
    %c7_139 = arith.constant 7 : index
    %c0_140 = arith.constant 0 : index
    %c0_141 = arith.constant 0 : index
    %135 = vector.load %arg2[%c7_139, %c0_140, %c0_141] : memref<9x256x256xf32, #tpu.memory_space<vmem>>, vector<1x256x256xf32>
    %136 = vector.shape_cast %135 : vector<1x256x256xf32> to vector<256x256xf32>
    %cst_142 = arith.constant dense<0.000000e+00> : vector<2x256xf32>
    %137 = tpu.matmul %87, %136, %cst_142 {dimension_numbers = #tpu.dot_dimension_numbers<[1], [0], [0], [1], [0, 0, 1, 1], [], []>} : vector<2x256xf32>, vector<256x256xf32>, vector<2x256xf32> -> vector<2x256xf32>
    %cst_143 = arith.constant dense<0.000000e+00> : vector<2x256xf32>
    %138 = tpu.matmul %134, %137, %cst_143 {dimension_numbers = #tpu.dot_dimension_numbers<[1], [0], [0], [1], [0, 0, 1, 1], [], []>} : vector<2x2xf32>, vector<2x256xf32>, vector<2x256xf32> -> vector<2x256xf32>
    %139 = arith.addf %132, %138 : vector<2x256xf32>
    %c8_144 = arith.constant 8 : index
    %c0_145 = arith.constant 0 : index
    %c0_146 = arith.constant 0 : index
    %140 = vector.load %arg12[%c8_144, %c0_145, %c0_146] : memref<9x2x2xf32, #tpu.memory_space<vmem>>, vector<1x2x2xf32>
    %141 = vector.shape_cast %140 : vector<1x2x2xf32> to vector<2x2xf32>
    %c8_147 = arith.constant 8 : index
    %c0_148 = arith.constant 0 : index
    %c0_149 = arith.constant 0 : index
    %142 = vector.load %arg2[%c8_147, %c0_148, %c0_149] : memref<9x256x256xf32, #tpu.memory_space<vmem>>, vector<1x256x256xf32>
    %143 = vector.shape_cast %142 : vector<1x256x256xf32> to vector<256x256xf32>
    %cst_150 = arith.constant dense<0.000000e+00> : vector<2x256xf32>
    %144 = tpu.matmul %87, %143, %cst_150 {dimension_numbers = #tpu.dot_dimension_numbers<[1], [0], [0], [1], [0, 0, 1, 1], [], []>} : vector<2x256xf32>, vector<256x256xf32>, vector<2x256xf32> -> vector<2x256xf32>
    %cst_151 = arith.constant dense<0.000000e+00> : vector<2x256xf32>
    %145 = tpu.matmul %141, %144, %cst_151 {dimension_numbers = #tpu.dot_dimension_numbers<[1], [0], [0], [1], [0, 0, 1, 1], [], []>} : vector<2x2xf32>, vector<2x256xf32>, vector<2x256xf32> -> vector<2x256xf32>
    %146 = arith.addf %139, %145 : vector<2x256xf32>
    %c0_152 = arith.constant 0 : index
    %c0_153 = arith.constant 0 : index
    %147 = vector.load %arg13[%c0_152, %c0_153] : memref<2x1xf32, #tpu.memory_space<vmem>>, vector<2x1xf32>
    %148 = vector.broadcast %147 : vector<2x1xf32> to vector<2x256xf32>
    %149 = arith.addf %146, %148 : vector<2x256xf32>
    %cst_154 = arith.constant 0.000000e+00 : f32
    %150 = vector.broadcast %cst_154 : f32 to vector<2x256xf32>
    %151 = arith.maximumf %149, %150 : vector<2x256xf32>
    %c4_155 = arith.constant 4 : index
    %c0_156 = arith.constant 0 : index
    %c0_157 = arith.constant 0 : index
    %152 = vector.load %arg14[%c4_155, %c0_156, %c0_157] : memref<9x2x2xf32, #tpu.memory_space<vmem>>, vector<1x2x2xf32>
    %153 = vector.shape_cast %152 : vector<1x2x2xf32> to vector<2x2xf32>
    %cst_158 = arith.constant dense<0.000000e+00> : vector<2x256xf32>
    %154 = tpu.matmul %153, %151, %cst_158 {dimension_numbers = #tpu.dot_dimension_numbers<[1], [0], [0], [1], [0, 0, 1, 1], [], []>} : vector<2x2xf32>, vector<2x256xf32>, vector<2x256xf32> -> vector<2x256xf32>
    %c0_159 = arith.constant 0 : index
    %c0_160 = arith.constant 0 : index
    %c0_161 = arith.constant 0 : index
    %155 = vector.load %arg14[%c0_159, %c0_160, %c0_161] : memref<9x2x2xf32, #tpu.memory_space<vmem>>, vector<1x2x2xf32>
    %156 = vector.shape_cast %155 : vector<1x2x2xf32> to vector<2x2xf32>
    %c0_162 = arith.constant 0 : index
    %c0_163 = arith.constant 0 : index
    %c0_164 = arith.constant 0 : index
    %157 = vector.load %arg2[%c0_162, %c0_163, %c0_164] : memref<9x256x256xf32, #tpu.memory_space<vmem>>, vector<1x256x256xf32>
    %158 = vector.shape_cast %157 : vector<1x256x256xf32> to vector<256x256xf32>
    %cst_165 = arith.constant dense<0.000000e+00> : vector<2x256xf32>
    %159 = tpu.matmul %151, %158, %cst_165 {dimension_numbers = #tpu.dot_dimension_numbers<[1], [0], [0], [1], [0, 0, 1, 1], [], []>} : vector<2x256xf32>, vector<256x256xf32>, vector<2x256xf32> -> vector<2x256xf32>
    %cst_166 = arith.constant dense<0.000000e+00> : vector<2x256xf32>
    %160 = tpu.matmul %156, %159, %cst_166 {dimension_numbers = #tpu.dot_dimension_numbers<[1], [0], [0], [1], [0, 0, 1, 1], [], []>} : vector<2x2xf32>, vector<2x256xf32>, vector<2x256xf32> -> vector<2x256xf32>
    %161 = arith.addf %154, %160 : vector<2x256xf32>
    %c1_167 = arith.constant 1 : index
    %c0_168 = arith.constant 0 : index
    %c0_169 = arith.constant 0 : index
    %162 = vector.load %arg14[%c1_167, %c0_168, %c0_169] : memref<9x2x2xf32, #tpu.memory_space<vmem>>, vector<1x2x2xf32>
    %163 = vector.shape_cast %162 : vector<1x2x2xf32> to vector<2x2xf32>
    %c1_170 = arith.constant 1 : index
    %c0_171 = arith.constant 0 : index
    %c0_172 = arith.constant 0 : index
    %164 = vector.load %arg2[%c1_170, %c0_171, %c0_172] : memref<9x256x256xf32, #tpu.memory_space<vmem>>, vector<1x256x256xf32>
    %165 = vector.shape_cast %164 : vector<1x256x256xf32> to vector<256x256xf32>
    %cst_173 = arith.constant dense<0.000000e+00> : vector<2x256xf32>
    %166 = tpu.matmul %151, %165, %cst_173 {dimension_numbers = #tpu.dot_dimension_numbers<[1], [0], [0], [1], [0, 0, 1, 1], [], []>} : vector<2x256xf32>, vector<256x256xf32>, vector<2x256xf32> -> vector<2x256xf32>
    %cst_174 = arith.constant dense<0.000000e+00> : vector<2x256xf32>
    %167 = tpu.matmul %163, %166, %cst_174 {dimension_numbers = #tpu.dot_dimension_numbers<[1], [0], [0], [1], [0, 0, 1, 1], [], []>} : vector<2x2xf32>, vector<2x256xf32>, vector<2x256xf32> -> vector<2x256xf32>
    %168 = arith.addf %161, %167 : vector<2x256xf32>
    %c2_175 = arith.constant 2 : index
    %c0_176 = arith.constant 0 : index
    %c0_177 = arith.constant 0 : index
    %169 = vector.load %arg14[%c2_175, %c0_176, %c0_177] : memref<9x2x2xf32, #tpu.memory_space<vmem>>, vector<1x2x2xf32>
    %170 = vector.shape_cast %169 : vector<1x2x2xf32> to vector<2x2xf32>
    %c2_178 = arith.constant 2 : index
    %c0_179 = arith.constant 0 : index
    %c0_180 = arith.constant 0 : index
    %171 = vector.load %arg2[%c2_178, %c0_179, %c0_180] : memref<9x256x256xf32, #tpu.memory_space<vmem>>, vector<1x256x256xf32>
    %172 = vector.shape_cast %171 : vector<1x256x256xf32> to vector<256x256xf32>
    %cst_181 = arith.constant dense<0.000000e+00> : vector<2x256xf32>
    %173 = tpu.matmul %151, %172, %cst_181 {dimension_numbers = #tpu.dot_dimension_numbers<[1], [0], [0], [1], [0, 0, 1, 1], [], []>} : vector<2x256xf32>, vector<256x256xf32>, vector<2x256xf32> -> vector<2x256xf32>
    %cst_182 = arith.constant dense<0.000000e+00> : vector<2x256xf32>
    %174 = tpu.matmul %170, %173, %cst_182 {dimension_numbers = #tpu.dot_dimension_numbers<[1], [0], [0], [1], [0, 0, 1, 1], [], []>} : vector<2x2xf32>, vector<2x256xf32>, vector<2x256xf32> -> vector<2x256xf32>
    %175 = arith.addf %168, %174 : vector<2x256xf32>
    %c3_183 = arith.constant 3 : index
    %c0_184 = arith.constant 0 : index
    %c0_185 = arith.constant 0 : index
    %176 = vector.load %arg14[%c3_183, %c0_184, %c0_185] : memref<9x2x2xf32, #tpu.memory_space<vmem>>, vector<1x2x2xf32>
    %177 = vector.shape_cast %176 : vector<1x2x2xf32> to vector<2x2xf32>
    %c3_186 = arith.constant 3 : index
    %c0_187 = arith.constant 0 : index
    %c0_188 = arith.constant 0 : index
    %178 = vector.load %arg2[%c3_186, %c0_187, %c0_188] : memref<9x256x256xf32, #tpu.memory_space<vmem>>, vector<1x256x256xf32>
    %179 = vector.shape_cast %178 : vector<1x256x256xf32> to vector<256x256xf32>
    %cst_189 = arith.constant dense<0.000000e+00> : vector<2x256xf32>
    %180 = tpu.matmul %151, %179, %cst_189 {dimension_numbers = #tpu.dot_dimension_numbers<[1], [0], [0], [1], [0, 0, 1, 1], [], []>} : vector<2x256xf32>, vector<256x256xf32>, vector<2x256xf32> -> vector<2x256xf32>
    %cst_190 = arith.constant dense<0.000000e+00> : vector<2x256xf32>
    %181 = tpu.matmul %177, %180, %cst_190 {dimension_numbers = #tpu.dot_dimension_numbers<[1], [0], [0], [1], [0, 0, 1, 1], [], []>} : vector<2x2xf32>, vector<2x256xf32>, vector<2x256xf32> -> vector<2x256xf32>
    %182 = arith.addf %175, %181 : vector<2x256xf32>
    %c5_191 = arith.constant 5 : index
    %c0_192 = arith.constant 0 : index
    %c0_193 = arith.constant 0 : index
    %183 = vector.load %arg14[%c5_191, %c0_192, %c0_193] : memref<9x2x2xf32, #tpu.memory_space<vmem>>, vector<1x2x2xf32>
    %184 = vector.shape_cast %183 : vector<1x2x2xf32> to vector<2x2xf32>
    %c5_194 = arith.constant 5 : index
    %c0_195 = arith.constant 0 : index
    %c0_196 = arith.constant 0 : index
    %185 = vector.load %arg2[%c5_194, %c0_195, %c0_196] : memref<9x256x256xf32, #tpu.memory_space<vmem>>, vector<1x256x256xf32>
    %186 = vector.shape_cast %185 : vector<1x256x256xf32> to vector<256x256xf32>
    %cst_197 = arith.constant dense<0.000000e+00> : vector<2x256xf32>
    %187 = tpu.matmul %151, %186, %cst_197 {dimension_numbers = #tpu.dot_dimension_numbers<[1], [0], [0], [1], [0, 0, 1, 1], [], []>} : vector<2x256xf32>, vector<256x256xf32>, vector<2x256xf32> -> vector<2x256xf32>
    %cst_198 = arith.constant dense<0.000000e+00> : vector<2x256xf32>
    %188 = tpu.matmul %184, %187, %cst_198 {dimension_numbers = #tpu.dot_dimension_numbers<[1], [0], [0], [1], [0, 0, 1, 1], [], []>} : vector<2x2xf32>, vector<2x256xf32>, vector<2x256xf32> -> vector<2x256xf32>
    %189 = arith.addf %182, %188 : vector<2x256xf32>
    %c6_199 = arith.constant 6 : index
    %c0_200 = arith.constant 0 : index
    %c0_201 = arith.constant 0 : index
    %190 = vector.load %arg14[%c6_199, %c0_200, %c0_201] : memref<9x2x2xf32, #tpu.memory_space<vmem>>, vector<1x2x2xf32>
    %191 = vector.shape_cast %190 : vector<1x2x2xf32> to vector<2x2xf32>
    %c6_202 = arith.constant 6 : index
    %c0_203 = arith.constant 0 : index
    %c0_204 = arith.constant 0 : index
    %192 = vector.load %arg2[%c6_202, %c0_203, %c0_204] : memref<9x256x256xf32, #tpu.memory_space<vmem>>, vector<1x256x256xf32>
    %193 = vector.shape_cast %192 : vector<1x256x256xf32> to vector<256x256xf32>
    %cst_205 = arith.constant dense<0.000000e+00> : vector<2x256xf32>
    %194 = tpu.matmul %151, %193, %cst_205 {dimension_numbers = #tpu.dot_dimension_numbers<[1], [0], [0], [1], [0, 0, 1, 1], [], []>} : vector<2x256xf32>, vector<256x256xf32>, vector<2x256xf32> -> vector<2x256xf32>
    %cst_206 = arith.constant dense<0.000000e+00> : vector<2x256xf32>
    %195 = tpu.matmul %191, %194, %cst_206 {dimension_numbers = #tpu.dot_dimension_numbers<[1], [0], [0], [1], [0, 0, 1, 1], [], []>} : vector<2x2xf32>, vector<2x256xf32>, vector<2x256xf32> -> vector<2x256xf32>
    %196 = arith.addf %189, %195 : vector<2x256xf32>
    %c7_207 = arith.constant 7 : index
    %c0_208 = arith.constant 0 : index
    %c0_209 = arith.constant 0 : index
    %197 = vector.load %arg14[%c7_207, %c0_208, %c0_209] : memref<9x2x2xf32, #tpu.memory_space<vmem>>, vector<1x2x2xf32>
    %198 = vector.shape_cast %197 : vector<1x2x2xf32> to vector<2x2xf32>
    %c7_210 = arith.constant 7 : index
    %c0_211 = arith.constant 0 : index
    %c0_212 = arith.constant 0 : index
    %199 = vector.load %arg2[%c7_210, %c0_211, %c0_212] : memref<9x256x256xf32, #tpu.memory_space<vmem>>, vector<1x256x256xf32>
    %200 = vector.shape_cast %199 : vector<1x256x256xf32> to vector<256x256xf32>
    %cst_213 = arith.constant dense<0.000000e+00> : vector<2x256xf32>
    %201 = tpu.matmul %151, %200, %cst_213 {dimension_numbers = #tpu.dot_dimension_numbers<[1], [0], [0], [1], [0, 0, 1, 1], [], []>} : vector<2x256xf32>, vector<256x256xf32>, vector<2x256xf32> -> vector<2x256xf32>
    %cst_214 = arith.constant dense<0.000000e+00> : vector<2x256xf32>
    %202 = tpu.matmul %198, %201, %cst_214 {dimension_numbers = #tpu.dot_dimension_numbers<[1], [0], [0], [1], [0, 0, 1, 1], [], []>} : vector<2x2xf32>, vector<2x256xf32>, vector<2x256xf32> -> vector<2x256xf32>
    %203 = arith.addf %196, %202 : vector<2x256xf32>
    %c8_215 = arith.constant 8 : index
    %c0_216 = arith.constant 0 : index
    %c0_217 = arith.constant 0 : index
    %204 = vector.load %arg14[%c8_215, %c0_216, %c0_217] : memref<9x2x2xf32, #tpu.memory_space<vmem>>, vector<1x2x2xf32>
    %205 = vector.shape_cast %204 : vector<1x2x2xf32> to vector<2x2xf32>
    %c8_218 = arith.constant 8 : index
    %c0_219 = arith.constant 0 : index
    %c0_220 = arith.constant 0 : index
    %206 = vector.load %arg2[%c8_218, %c0_219, %c0_220] : memref<9x256x256xf32, #tpu.memory_space<vmem>>, vector<1x256x256xf32>
    %207 = vector.shape_cast %206 : vector<1x256x256xf32> to vector<256x256xf32>
    %cst_221 = arith.constant dense<0.000000e+00> : vector<2x256xf32>
    %208 = tpu.matmul %151, %207, %cst_221 {dimension_numbers = #tpu.dot_dimension_numbers<[1], [0], [0], [1], [0, 0, 1, 1], [], []>} : vector<2x256xf32>, vector<256x256xf32>, vector<2x256xf32> -> vector<2x256xf32>
    %cst_222 = arith.constant dense<0.000000e+00> : vector<2x256xf32>
    %209 = tpu.matmul %205, %208, %cst_222 {dimension_numbers = #tpu.dot_dimension_numbers<[1], [0], [0], [1], [0, 0, 1, 1], [], []>} : vector<2x2xf32>, vector<2x256xf32>, vector<2x256xf32> -> vector<2x256xf32>
    %210 = arith.addf %203, %209 : vector<2x256xf32>
    %c0_223 = arith.constant 0 : index
    %c0_224 = arith.constant 0 : index
    %211 = vector.load %arg15[%c0_223, %c0_224] : memref<2x1xf32, #tpu.memory_space<vmem>>, vector<2x1xf32>
    %212 = vector.broadcast %211 : vector<2x1xf32> to vector<2x256xf32>
    %213 = arith.addf %210, %212 : vector<2x256xf32>
    %cst_225 = arith.constant 0.000000e+00 : f32
    %214 = vector.broadcast %cst_225 : f32 to vector<2x256xf32>
    %215 = arith.maximumf %213, %214 : vector<2x256xf32>
    %216 = vector.extract_strided_slice %2 {offsets = [0, 0], sizes = [1, 256], strides = [1, 1]} : vector<9x256xf32> to vector<1x256xf32>
    %cst_226 = arith.constant 5.000000e-01 : f32
    %217 = vector.broadcast %cst_226 : f32 to vector<1x256xf32>
    %218 = arith.cmpf oge, %216, %217 : vector<1x256xf32>
    %c0_227 = arith.constant 0 : index
    %c0_228 = arith.constant 0 : index
    %c0_229 = arith.constant 0 : index
    %219 = vector.load %arg2[%c0_227, %c0_228, %c0_229] : memref<9x256x256xf32, #tpu.memory_space<vmem>>, vector<1x256x256xf32>
    %220 = vector.shape_cast %219 : vector<1x256x256xf32> to vector<256x256xf32>
    %cst_230 = arith.constant dense<0.000000e+00> : vector<4x256xf32>
    %221 = tpu.matmul %1, %220, %cst_230 {dimension_numbers = #tpu.dot_dimension_numbers<[1], [0], [0], [1], [0, 0, 1, 1], [], []>} : vector<4x256xf32>, vector<256x256xf32>, vector<4x256xf32> -> vector<4x256xf32>
    %cst_231 = arith.constant -1.000000e+30 : f32
    %222 = vector.shape_cast %218 : vector<1x256xi1> to vector<1x256xi1>
    %223 = vector.broadcast %222 : vector<1x256xi1> to vector<4x256xi1>
    %224 = vector.broadcast %cst_231 : f32 to vector<4x256xf32>
    %225 = arith.select %223, %221, %224 : vector<4x256xi1>, vector<4x256xf32>
    %226 = arith.maximumf %1, %225 : vector<4x256xf32>
    %227 = vector.extract_strided_slice %2 {offsets = [1, 0], sizes = [1, 256], strides = [1, 1]} : vector<9x256xf32> to vector<1x256xf32>
    %cst_232 = arith.constant 5.000000e-01 : f32
    %228 = vector.broadcast %cst_232 : f32 to vector<1x256xf32>
    %229 = arith.cmpf oge, %227, %228 : vector<1x256xf32>
    %c1_233 = arith.constant 1 : index
    %c0_234 = arith.constant 0 : index
    %c0_235 = arith.constant 0 : index
    %230 = vector.load %arg2[%c1_233, %c0_234, %c0_235] : memref<9x256x256xf32, #tpu.memory_space<vmem>>, vector<1x256x256xf32>
    %231 = vector.shape_cast %230 : vector<1x256x256xf32> to vector<256x256xf32>
    %cst_236 = arith.constant dense<0.000000e+00> : vector<4x256xf32>
    %232 = tpu.matmul %1, %231, %cst_236 {dimension_numbers = #tpu.dot_dimension_numbers<[1], [0], [0], [1], [0, 0, 1, 1], [], []>} : vector<4x256xf32>, vector<256x256xf32>, vector<4x256xf32> -> vector<4x256xf32>
    %cst_237 = arith.constant -1.000000e+30 : f32
    %233 = vector.shape_cast %229 : vector<1x256xi1> to vector<1x256xi1>
    %234 = vector.broadcast %233 : vector<1x256xi1> to vector<4x256xi1>
    %235 = vector.broadcast %cst_237 : f32 to vector<4x256xf32>
    %236 = arith.select %234, %232, %235 : vector<4x256xi1>, vector<4x256xf32>
    %237 = arith.maximumf %226, %236 : vector<4x256xf32>
    %238 = vector.extract_strided_slice %2 {offsets = [2, 0], sizes = [1, 256], strides = [1, 1]} : vector<9x256xf32> to vector<1x256xf32>
    %cst_238 = arith.constant 5.000000e-01 : f32
    %239 = vector.broadcast %cst_238 : f32 to vector<1x256xf32>
    %240 = arith.cmpf oge, %238, %239 : vector<1x256xf32>
    %c2_239 = arith.constant 2 : index
    %c0_240 = arith.constant 0 : index
    %c0_241 = arith.constant 0 : index
    %241 = vector.load %arg2[%c2_239, %c0_240, %c0_241] : memref<9x256x256xf32, #tpu.memory_space<vmem>>, vector<1x256x256xf32>
    %242 = vector.shape_cast %241 : vector<1x256x256xf32> to vector<256x256xf32>
    %cst_242 = arith.constant dense<0.000000e+00> : vector<4x256xf32>
    %243 = tpu.matmul %1, %242, %cst_242 {dimension_numbers = #tpu.dot_dimension_numbers<[1], [0], [0], [1], [0, 0, 1, 1], [], []>} : vector<4x256xf32>, vector<256x256xf32>, vector<4x256xf32> -> vector<4x256xf32>
    %cst_243 = arith.constant -1.000000e+30 : f32
    %244 = vector.shape_cast %240 : vector<1x256xi1> to vector<1x256xi1>
    %245 = vector.broadcast %244 : vector<1x256xi1> to vector<4x256xi1>
    %246 = vector.broadcast %cst_243 : f32 to vector<4x256xf32>
    %247 = arith.select %245, %243, %246 : vector<4x256xi1>, vector<4x256xf32>
    %248 = arith.maximumf %237, %247 : vector<4x256xf32>
    %249 = vector.extract_strided_slice %2 {offsets = [3, 0], sizes = [1, 256], strides = [1, 1]} : vector<9x256xf32> to vector<1x256xf32>
    %cst_244 = arith.constant 5.000000e-01 : f32
    %250 = vector.broadcast %cst_244 : f32 to vector<1x256xf32>
    %251 = arith.cmpf oge, %249, %250 : vector<1x256xf32>
    %c3_245 = arith.constant 3 : index
    %c0_246 = arith.constant 0 : index
    %c0_247 = arith.constant 0 : index
    %252 = vector.load %arg2[%c3_245, %c0_246, %c0_247] : memref<9x256x256xf32, #tpu.memory_space<vmem>>, vector<1x256x256xf32>
    %253 = vector.shape_cast %252 : vector<1x256x256xf32> to vector<256x256xf32>
    %cst_248 = arith.constant dense<0.000000e+00> : vector<4x256xf32>
    %254 = tpu.matmul %1, %253, %cst_248 {dimension_numbers = #tpu.dot_dimension_numbers<[1], [0], [0], [1], [0, 0, 1, 1], [], []>} : vector<4x256xf32>, vector<256x256xf32>, vector<4x256xf32> -> vector<4x256xf32>
    %cst_249 = arith.constant -1.000000e+30 : f32
    %255 = vector.shape_cast %251 : vector<1x256xi1> to vector<1x256xi1>
    %256 = vector.broadcast %255 : vector<1x256xi1> to vector<4x256xi1>
    %257 = vector.broadcast %cst_249 : f32 to vector<4x256xf32>
    %258 = arith.select %256, %254, %257 : vector<4x256xi1>, vector<4x256xf32>
    %259 = arith.maximumf %248, %258 : vector<4x256xf32>
    %260 = vector.extract_strided_slice %2 {offsets = [5, 0], sizes = [1, 256], strides = [1, 1]} : vector<9x256xf32> to vector<1x256xf32>
    %cst_250 = arith.constant 5.000000e-01 : f32
    %261 = vector.broadcast %cst_250 : f32 to vector<1x256xf32>
    %262 = arith.cmpf oge, %260, %261 : vector<1x256xf32>
    %c5_251 = arith.constant 5 : index
    %c0_252 = arith.constant 0 : index
    %c0_253 = arith.constant 0 : index
    %263 = vector.load %arg2[%c5_251, %c0_252, %c0_253] : memref<9x256x256xf32, #tpu.memory_space<vmem>>, vector<1x256x256xf32>
    %264 = vector.shape_cast %263 : vector<1x256x256xf32> to vector<256x256xf32>
    %cst_254 = arith.constant dense<0.000000e+00> : vector<4x256xf32>
    %265 = tpu.matmul %1, %264, %cst_254 {dimension_numbers = #tpu.dot_dimension_numbers<[1], [0], [0], [1], [0, 0, 1, 1], [], []>} : vector<4x256xf32>, vector<256x256xf32>, vector<4x256xf32> -> vector<4x256xf32>
    %cst_255 = arith.constant -1.000000e+30 : f32
    %266 = vector.shape_cast %262 : vector<1x256xi1> to vector<1x256xi1>
    %267 = vector.broadcast %266 : vector<1x256xi1> to vector<4x256xi1>
    %268 = vector.broadcast %cst_255 : f32 to vector<4x256xf32>
    %269 = arith.select %267, %265, %268 : vector<4x256xi1>, vector<4x256xf32>
    %270 = arith.maximumf %259, %269 : vector<4x256xf32>
    %271 = vector.extract_strided_slice %2 {offsets = [6, 0], sizes = [1, 256], strides = [1, 1]} : vector<9x256xf32> to vector<1x256xf32>
    %cst_256 = arith.constant 5.000000e-01 : f32
    %272 = vector.broadcast %cst_256 : f32 to vector<1x256xf32>
    %273 = arith.cmpf oge, %271, %272 : vector<1x256xf32>
    %c6_257 = arith.constant 6 : index
    %c0_258 = arith.constant 0 : index
    %c0_259 = arith.constant 0 : index
    %274 = vector.load %arg2[%c6_257, %c0_258, %c0_259] : memref<9x256x256xf32, #tpu.memory_space<vmem>>, vector<1x256x256xf32>
    %275 = vector.shape_cast %274 : vector<1x256x256xf32> to vector<256x256xf32>
    %cst_260 = arith.constant dense<0.000000e+00> : vector<4x256xf32>
    %276 = tpu.matmul %1, %275, %cst_260 {dimension_numbers = #tpu.dot_dimension_numbers<[1], [0], [0], [1], [0, 0, 1, 1], [], []>} : vector<4x256xf32>, vector<256x256xf32>, vector<4x256xf32> -> vector<4x256xf32>
    %cst_261 = arith.constant -1.000000e+30 : f32
    %277 = vector.shape_cast %273 : vector<1x256xi1> to vector<1x256xi1>
    %278 = vector.broadcast %277 : vector<1x256xi1> to vector<4x256xi1>
    %279 = vector.broadcast %cst_261 : f32 to vector<4x256xf32>
    %280 = arith.select %278, %276, %279 : vector<4x256xi1>, vector<4x256xf32>
    %281 = arith.maximumf %270, %280 : vector<4x256xf32>
    %282 = vector.extract_strided_slice %2 {offsets = [7, 0], sizes = [1, 256], strides = [1, 1]} : vector<9x256xf32> to vector<1x256xf32>
    %cst_262 = arith.constant 5.000000e-01 : f32
    %283 = vector.broadcast %cst_262 : f32 to vector<1x256xf32>
    %284 = arith.cmpf oge, %282, %283 : vector<1x256xf32>
    %c7_263 = arith.constant 7 : index
    %c0_264 = arith.constant 0 : index
    %c0_265 = arith.constant 0 : index
    %285 = vector.load %arg2[%c7_263, %c0_264, %c0_265] : memref<9x256x256xf32, #tpu.memory_space<vmem>>, vector<1x256x256xf32>
    %286 = vector.shape_cast %285 : vector<1x256x256xf32> to vector<256x256xf32>
    %cst_266 = arith.constant dense<0.000000e+00> : vector<4x256xf32>
    %287 = tpu.matmul %1, %286, %cst_266 {dimension_numbers = #tpu.dot_dimension_numbers<[1], [0], [0], [1], [0, 0, 1, 1], [], []>} : vector<4x256xf32>, vector<256x256xf32>, vector<4x256xf32> -> vector<4x256xf32>
    %cst_267 = arith.constant -1.000000e+30 : f32
    %288 = vector.shape_cast %284 : vector<1x256xi1> to vector<1x256xi1>
    %289 = vector.broadcast %288 : vector<1x256xi1> to vector<4x256xi1>
    %290 = vector.broadcast %cst_267 : f32 to vector<4x256xf32>
    %291 = arith.select %289, %287, %290 : vector<4x256xi1>, vector<4x256xf32>
    %292 = arith.maximumf %281, %291 : vector<4x256xf32>
    %293 = vector.extract_strided_slice %2 {offsets = [8, 0], sizes = [1, 256], strides = [1, 1]} : vector<9x256xf32> to vector<1x256xf32>
    %cst_268 = arith.constant 5.000000e-01 : f32
    %294 = vector.broadcast %cst_268 : f32 to vector<1x256xf32>
    %295 = arith.cmpf oge, %293, %294 : vector<1x256xf32>
    %c8_269 = arith.constant 8 : index
    %c0_270 = arith.constant 0 : index
    %c0_271 = arith.constant 0 : index
    %296 = vector.load %arg2[%c8_269, %c0_270, %c0_271] : memref<9x256x256xf32, #tpu.memory_space<vmem>>, vector<1x256x256xf32>
    %297 = vector.shape_cast %296 : vector<1x256x256xf32> to vector<256x256xf32>
    %cst_272 = arith.constant dense<0.000000e+00> : vector<4x256xf32>
    %298 = tpu.matmul %1, %297, %cst_272 {dimension_numbers = #tpu.dot_dimension_numbers<[1], [0], [0], [1], [0, 0, 1, 1], [], []>} : vector<4x256xf32>, vector<256x256xf32>, vector<4x256xf32> -> vector<4x256xf32>
    %cst_273 = arith.constant -1.000000e+30 : f32
    %299 = vector.shape_cast %295 : vector<1x256xi1> to vector<1x256xi1>
    %300 = vector.broadcast %299 : vector<1x256xi1> to vector<4x256xi1>
    %301 = vector.broadcast %cst_273 : f32 to vector<4x256xf32>
    %302 = arith.select %300, %298, %301 : vector<4x256xi1>, vector<4x256xf32>
    %303 = arith.maximumf %292, %302 : vector<4x256xf32>
    %c0_274 = arith.constant 0 : index
    %c0_275 = arith.constant 0 : index
    %304 = vector.load %arg16[%c0_274, %c0_275] : memref<2x4xf32, #tpu.memory_space<vmem>>, vector<2x4xf32>
    %cst_276 = arith.constant dense<0.000000e+00> : vector<2x256xf32>
    %305 = tpu.matmul %304, %303, %cst_276 {dimension_numbers = #tpu.dot_dimension_numbers<[1], [0], [0], [1], [0, 0, 1, 1], [], []>} : vector<2x4xf32>, vector<4x256xf32>, vector<2x256xf32> -> vector<2x256xf32>
    %c0_277 = arith.constant 0 : index
    %c0_278 = arith.constant 0 : index
    %306 = vector.load %arg17[%c0_277, %c0_278] : memref<2x1xf32, #tpu.memory_space<vmem>>, vector<2x1xf32>
    %307 = vector.broadcast %306 : vector<2x1xf32> to vector<2x256xf32>
    %308 = arith.addf %305, %307 : vector<2x256xf32>
    %cst_279 = arith.constant 0.000000e+00 : f32
    %309 = vector.broadcast %cst_279 : f32 to vector<2x256xf32>
    %310 = arith.maximumf %308, %309 : vector<2x256xf32>
    %c0_280 = arith.constant 0 : index
    %c0_281 = arith.constant 0 : index
    %c0_282 = arith.constant 0 : index
    %311 = vector.load %arg18[%c0_280, %c0_281, %c0_282] : memref<1x8x256xf32, #tpu.memory_space<vmem>>, vector<1x2x256xf32>
    %312 = vector.shape_cast %311 : vector<1x2x256xf32> to vector<2x256xf32>
    %313 = vector.shape_cast %9 : vector<2x256xf32> to vector<1x2x256xf32>
    tpu.vector_store %arg18[%c0_280, %c0_281, %c0_282], %313 {strides = array<i32>} : memref<1x8x256xf32, #tpu.memory_space<vmem>>, vector<1x2x256xf32>,
    %c0_283 = arith.constant 0 : index
    %c2_284 = arith.constant 2 : index
    %c0_285 = arith.constant 0 : index
    %314 = vector.load %arg18[%c0_283, %c2_284, %c0_285] : memref<1x8x256xf32, #tpu.memory_space<vmem>>, vector<1x2x256xf32>
    %315 = vector.shape_cast %314 : vector<1x2x256xf32> to vector<2x256xf32>
    %316 = vector.shape_cast %80 : vector<2x256xf32> to vector<1x2x256xf32>
    tpu.vector_store %arg18[%c0_283, %c2_284, %c0_285], %316 {strides = array<i32>} : memref<1x8x256xf32, #tpu.memory_space<vmem>>, vector<1x2x256xf32>,
    %c0_286 = arith.constant 0 : index
    %c4_287 = arith.constant 4 : index
    %c0_288 = arith.constant 0 : index
    %317 = vector.load %arg18[%c0_286, %c4_287, %c0_288] : memref<1x8x256xf32, #tpu.memory_space<vmem>>, vector<1x2x256xf32>
    %318 = vector.shape_cast %317 : vector<1x2x256xf32> to vector<2x256xf32>
    %319 = vector.shape_cast %215 : vector<2x256xf32> to vector<1x2x256xf32>
    tpu.vector_store %arg18[%c0_286, %c4_287, %c0_288], %319 {strides = array<i32>} : memref<1x8x256xf32, #tpu.memory_space<vmem>>, vector<1x2x256xf32>,
    %c0_289 = arith.constant 0 : index
    %c6_290 = arith.constant 6 : index
    %c0_291 = arith.constant 0 : index
    %320 = vector.load %arg18[%c0_289, %c6_290, %c0_291] : memref<1x8x256xf32, #tpu.memory_space<vmem>>, vector<1x2x256xf32>
    %321 = vector.shape_cast %320 : vector<1x2x256xf32> to vector<2x256xf32>
    %322 = vector.shape_cast %310 : vector<2x256xf32> to vector<1x2x256xf32>
    tpu.vector_store %arg18[%c0_289, %c6_290, %c0_291], %322 {strides = array<i32>} : memref<1x8x256xf32, #tpu.memory_space<vmem>>, vector<1x2x256xf32>,
    return
  }
  func.func @transform_0(%arg0: i32) -> (i32, i32, i32) {
    %c0_i32 = arith.constant 0 : i32
    %c0_i32_0 = arith.constant 0 : i32
    %c0_i32_1 = arith.constant 0 : i32
    return %arg0, %c0_i32, %c0_i32_0 : i32, i32, i32
  }
  func.func @transform_1(%arg0: i32) -> (i32, i32, i32) {
    %c0_i32 = arith.constant 0 : i32
    %c0_i32_0 = arith.constant 0 : i32
    %c0_i32_1 = arith.constant 0 : i32
    %c0_i32_2 = arith.constant 0 : i32
    return %c0_i32, %c0_i32_0, %c0_i32_1 : i32, i32, i32
  }
  func.func @transform_2(%arg0: i32) -> (i32, i32) {
    %c0_i32 = arith.constant 0 : i32
    %c0_i32_0 = arith.constant 0 : i32
    %c0_i32_1 = arith.constant 0 : i32
    return %c0_i32, %c0_i32_0 : i32, i32
  }
  func.func @transform_3(%arg0: i32) -> (i32, i32) {
    %c0_i32 = arith.constant 0 : i32
    %c0_i32_0 = arith.constant 0 : i32
    %c0_i32_1 = arith.constant 0 : i32
    return %c0_i32, %c0_i32_0 : i32, i32
  }
  func.func @transform_4(%arg0: i32) -> (i32, i32) {
    %c0_i32 = arith.constant 0 : i32
    %c0_i32_0 = arith.constant 0 : i32
    %c0_i32_1 = arith.constant 0 : i32
    return %c0_i32, %c0_i32_0 : i32, i32
  }
  func.func @transform_5(%arg0: i32) -> (i32, i32) {
    %c0_i32 = arith.constant 0 : i32
    %c0_i32_0 = arith.constant 0 : i32
    %c0_i32_1 = arith.constant 0 : i32
    return %c0_i32, %c0_i32_0 : i32, i32
  }
  func.func @transform_6(%arg0: i32) -> (i32, i32) {
    %c0_i32 = arith.constant 0 : i32
    %c0_i32_0 = arith.constant 0 : i32
    %c0_i32_1 = arith.constant 0 : i32
    return %c0_i32, %c0_i32_0 : i32, i32
  }
  func.func @transform_7(%arg0: i32) -> (i32, i32, i32) {
    %c0_i32 = arith.constant 0 : i32
    %c0_i32_0 = arith.constant 0 : i32
    %c0_i32_1 = arith.constant 0 : i32
    %c0_i32_2 = arith.constant 0 : i32
    return %c0_i32, %c0_i32_0, %c0_i32_1 : i32, i32, i32
  }
  func.func @transform_8(%arg0: i32) -> (i32, i32) {
    %c0_i32 = arith.constant 0 : i32
    %c0_i32_0 = arith.constant 0 : i32
    %c0_i32_1 = arith.constant 0 : i32
    return %c0_i32, %c0_i32_0 : i32, i32
  }
  func.func @transform_9(%arg0: i32) -> (i32, i32) {
    %c0_i32 = arith.constant 0 : i32
    %c0_i32_0 = arith.constant 0 : i32
    %c0_i32_1 = arith.constant 0 : i32
    return %c0_i32, %c0_i32_0 : i32, i32
  }
  func.func @transform_10(%arg0: i32) -> (i32, i32) {
    %c0_i32 = arith.constant 0 : i32
    %c0_i32_0 = arith.constant 0 : i32
    %c0_i32_1 = arith.constant 0 : i32
    return %c0_i32, %c0_i32_0 : i32, i32
  }
  func.func @transform_11(%arg0: i32) -> (i32, i32, i32) {
    %c0_i32 = arith.constant 0 : i32
    %c0_i32_0 = arith.constant 0 : i32
    %c0_i32_1 = arith.constant 0 : i32
    %c0_i32_2 = arith.constant 0 : i32
    return %c0_i32, %c0_i32_0, %c0_i32_1 : i32, i32, i32
  }
  func.func @transform_12(%arg0: i32) -> (i32, i32) {
    %c0_i32 = arith.constant 0 : i32
    %c0_i32_0 = arith.constant 0 : i32
    %c0_i32_1 = arith.constant 0 : i32
    return %c0_i32, %c0_i32_0 : i32, i32
  }
  func.func @transform_13(%arg0: i32) -> (i32, i32, i32) {
    %c0_i32 = arith.constant 0 : i32
    %c0_i32_0 = arith.constant 0 : i32
    %c0_i32_1 = arith.constant 0 : i32
    %c0_i32_2 = arith.constant 0 : i32
    return %c0_i32, %c0_i32_0, %c0_i32_1 : i32, i32, i32
  }
  func.func @transform_14(%arg0: i32) -> (i32, i32) {
    %c0_i32 = arith.constant 0 : i32
    %c0_i32_0 = arith.constant 0 : i32
    %c0_i32_1 = arith.constant 0 : i32
    return %c0_i32, %c0_i32_0 : i32, i32
  }
  func.func @transform_15(%arg0: i32) -> (i32, i32) {
    %c0_i32 = arith.constant 0 : i32
    %c0_i32_0 = arith.constant 0 : i32
    %c0_i32_1 = arith.constant 0 : i32
    return %c0_i32, %c0_i32_0 : i32, i32
  }
  func.func @transform_16(%arg0: i32) -> (i32, i32) {
    %c0_i32 = arith.constant 0 : i32
    %c0_i32_0 = arith.constant 0 : i32
    %c0_i32_1 = arith.constant 0 : i32
    return %c0_i32, %c0_i32_0 : i32, i32
  }
  func.func @transform_17(%arg0: i32) -> (i32, i32, i32) {
    %c0_i32 = arith.constant 0 : i32
    %c0_i32_0 = arith.constant 0 : i32
    %c0_i32_1 = arith.constant 0 : i32
    return %arg0, %c0_i32, %c0_i32_0 : i32, i32, i32
  }
}

</mosaic_0001>

<bundles_post_ra>
// kernel: inception_forward.1
= control target key start
LH: loop header
LB: loop body
LE: loop exit
PB: predicated region body
PF: predicated region fallthrough
CT: control target
= control target key end

     0   :  { %s10807_s0 = inlined_call_operand.vmem [shape: f32[2,4,256], index: 0, kind: input, shape index: {}]   ;;  %s10808_s1 = inlined_call_operand.hbm [shape: f32[9,256,256], index: 1, kind: input, shape index: {}]   ;;  %s10809_s2 = inlined_call_operand.hbm [shape: f32[9,256], index: 2, kind: input, shape index: {}]   ;;  %s10810_s3 = inlined_call_operand.vmem [shape: f32[2,4], index: 3, kind: input, shape index: {}]   ;;  %s10811_s4 = inlined_call_operand.vmem [shape: f32[2,1], index: 4, kind: input, shape index: {}]   ;;  %s10812_s5 = inlined_call_operand.vmem [shape: f32[2,4], index: 5, kind: input, shape index: {}]   ;;  %s10813_s6 = inlined_call_operand.vmem [shape: f32[2,1], index: 6, kind: input, shape index: {}]   ;;  %s10814_s7 = inlined_call_operand.vmem [shape: f32[9,2,2], index: 7, kind: input, shape index: {}]   ;;  %s10815_s8 = inlined_call_operand.vmem [shape: f32[2,1], index: 8, kind: input, shape index: {}]   ;;  %s10816_s9 = inlined_call_operand.vmem [shape: f32[2,4], index: 9, kind: input, shape index: {}]   ;;  %s10817_s10 = inlined_call_operand.vmem [shape: f32[2,1], index: 10, kind: input, shape index: {}]   ;;  %s10818_s11 = inlined_call_operand.vmem [shape: f32[9,2,2], index: 11, kind: input, shape index: {}]   ;;  %s10819_s12 = inlined_call_operand.vmem [shape: f32[2,1], index: 12, kind: input, shape index: {}]   ;;  %s10820_s13 = inlined_call_operand.vmem [shape: f32[9,2,2], index: 13, kind: input, shape index: {}]   ;;  %s10821_s14 = inlined_call_operand.vmem [shape: f32[2,1], index: 14, kind: input, shape index: {}]   ;;  %s10822_s15 = inlined_call_operand.vmem [shape: f32[2,4], index: 15, kind: input, shape index: {}]   ;;  %s10823_s16 = inlined_call_operand.vmem [shape: f32[2,1], index: 16, kind: input, shape index: {}]   ;;  %s10824_s17 = inlined_call_operand.vmem [shape: f32[2,8,256], index: 17, kind: output, shape index: {}]  }
   0x1   :  { %11340 = sst [smem:[#allocation256_spill]] %s10807_s0 }
   0x2   :  { %11341 = sst [smem:[#allocation257_spill]] %s10808_s1 }
   0x3   :  { %11342 = sst [smem:[#allocation258_spill]] %s10820_s13 }
   0x4   :  { %11343 = sst [smem:[#allocation259_spill]] %s10822_s15 }
   0x5   :  { %22 = vsyncpa [#allocation3], 0 }
   0x6   :  { %23 = vsyncpa [#allocation5], 0  ;;  %s8690_s24 = smov 0  }
   0x7 LB: > { %11344 = sst [smem:[#allocation8_spill]] %s8592_s24  ;;  %s8696_s25 = sadd.s32 4294967295, %s8592_s24   ;;  %s8592_s24 = sphi %s8690_s24, %s29_s24  }
   0x8   : > { %p6256_p0 = scmp.ge.s32.totalorder %s8592_s24, 1  ;;  %p422_p1 = scmp.lt.s32.totalorder %s8592_s24, 3 }
   0x9   : > { %s8594_s26 = smov [#allocation2]   ;;  %p10826_p3 = scmp.eq.s32.totalorder %s8696_s25, 0 }
   0xa   : > { %s434_s27 = sshll.u32 %s8594_s26, 4  ;;  %p8700_p2 = pnand %p6256_p0, %p422_p1  ;;  %s435_s27 = int_to_ptr.vmem [resolvable:$true] %s434_s27 }
   0xb   : > { %s8595_s29 = smov [#allocation4]   ;;  %s11347_s1 = sld [smem:[#allocation257_spill]] }
   0xc   : > { %s11345_s28 = scalar_select %p8700_p2, 1, 0 }
   0xd   : > { %p8492_p4 = pneg %p8700_p2  ;;  %s447_s0 = sshll.u32 %s8595_s29, 4  ;;  %s8713_s0 = int_to_ptr.vmem [resolvable:$true] %s447_s0 }
   0xf   : > { %p8709_p5 = pnand %p10826_p3, %p8492_p4 }
  0x11   : > { %s8522_s20 = scalar_lea.hbm %s11347_s1, 73728  ;;  %p8524_p7 = pneg %p8709_p5 }
  0x12   : > { %p8523_p6 = scmp.ne.s32.totalorder %s11347_s1, %s8522_s20  ;;  %p8529_p10 = scmp.lt.u32.totalorder %s8522_s20, %s11347_s1 }
  0x14   : > { %p8525_p8 = pnand %p8524_p7, %p8523_p6 }
  0x16   : > { %p8526_p9 = pneg %p8525_p8 }
  0x18   : > { %p8531_p11 = pnand %p8529_p10, %p8526_p9 }
  0x1a   : > { %8534 = shalt.err (!%p8531_p11)
}
  0x1b   : > { %s8535_s29 = scalar_lea.vmem %s435_s27, 73728  ;;  %p8543_p1 = scmp.lt.s32.totalorder %s435_s27, %s435_s27 }
  0x1c   : > { %p8536_p12 = scmp.ne.s32.totalorder %s435_s27, %s8535_s29  ;;  %p8544_p4 = scmp.lt.s32.totalorder %s8535_s29, %s8535_s29 }
  0x1e   : > { %p8538_p13 = pnand %p8536_p12, %p8524_p7  ;;  %p8545_p3 = por %p8544_p4, %p8543_p1 }
  0x20   : > { %p8539_p0 = pneg %p8538_p13 }
  0x22   : > { %p8546_p2 = pnand %p8545_p3, %p8539_p0 }
  0x24   : > { %8549 = shalt.err (!%p8546_p2)
}
  0x25   : > { %s8596_s18 = smov 256   ;;  %s8597_s19 = smov 16  }
  0x26   : > { %8495 = dma.hbm_to_vmem [thread:$0]  (!%p8709_p5), %s11347_s1, 73728, %s435_s27, [#allocation3], %s8596_s18, %s8596_s18, %s8597_s19  }
  0x27   : > { %s8550_s26 = scalar_lea.hbm %s10809_s2, 512 }
  0x28   : > { %p8551_p6 = scmp.ne.s32.totalorder %s10809_s2, %s8550_s26  ;;  %p8557_p8 = scmp.lt.u32.totalorder %s8550_s26, %s10809_s2 }
  0x2a   : > { %p8553_p2 = pnand %p8551_p6, %p8524_p7 }
  0x2c   : > { %p8554_p3 = pneg %p8553_p2 }
  0x2e   : > { %p8559_p9 = pnand %p8557_p8, %p8554_p3 }
  0x30   : > { %8562 = shalt.err (!%p8559_p9)
}
  0x31   : > { %s8563_s27 = scalar_lea.vmem %s8713_s0, 512  ;;  %p8571_p13 = scmp.lt.s32.totalorder %s8713_s0, %s8713_s0 }
  0x32   : > { %p8564_p10 = scmp.ne.s32.totalorder %s8713_s0, %s8563_s27  ;;  %p8572_p0 = scmp.lt.s32.totalorder %s8563_s27, %s8563_s27 }
  0x34   : > { %p8566_p11 = pnand %p8564_p10, %p8524_p7  ;;  %p8573_p1 = por %p8572_p0, %p8571_p13 }
  0x36   : > { %p8567_p12 = pneg %p8566_p11 }
  0x38   : > { %p8574_p4 = pnand %p8573_p1, %p8567_p12 }
  0x3a   : > { %8577 = shalt.err (!%p8574_p4)
}
  0x3b   : > { %8498 = dma.hbm_to_vmem [thread:$0]  (!%p8709_p5), %s10809_s2, 512, %s8713_s0, [#allocation5], %s8596_s18, %s8596_s18, %s8597_s19  }
  0x3c   : > { %p11348_p6 = scmp.ne.s32.totalorder %s11345_s28, 0 }
  0x3e   : > { %513 = sbr.rel (%p11348_p6) target bundleno = 4660 (0x1234), region = 88 }
  0x45   : > { %p11349_p2 = scmp.eq.s32.totalorder %s8696_s25, 0 }
  0x47   : > { %8583 = dma.done.wait (%p11349_p2), [#allocation3], 73728   ;;  %p11350_p7 = pmov %p11349_p2 }
  0x48   : > { %p11351_p3 = pmov %p11349_p2 }
  0x49   : > { %8585 = vsyncadd (%p11350_p7), [#allocation3], 4294893568 }
  0x4a   : > { %8587 = dma.done.wait (%p11351_p3), [#allocation5], 512   ;;  %p11352_p8 = pmov %p11349_p2 }
  0x4b   : > { %p569_p9 = scmp.lt.s32.totalorder %s8696_s25, 1  ;;  %v10832_v0 = vmov 0.0   ;;  %v10830_v1 = vmov 0   ;;  %s11353_s30 = sld [smem:[#allocation256_spill]]  ;;  %vm597_vm0 = vcmask 1043456   ;;  %vm593_vm1 = vcmask 31744  }
  0x4c   : > { %8589 = vsyncadd (%p11352_p8), [#allocation5], 4294966784  ;;  %666 = vmatprep.mubr.f32.mxu0 %v10832_v0  ;;  %1051 = vmatprep.mubr.f32.mxu1 %v10832_v0  ;;  %v676_v4 = vld [vmem:[%s10813_s6] sm:$0x3]  ;;  %v762_v6 = vld [vmem:[#allocation2 + $0x8] sm:$0xff]  ;;  %vm900_vm2 = vcmask 1041408  }
  0x4d   : > { %s12124_s25 = smov (!%p569_p9, %s8696_s25), 1  ;;  %8517 = vset.pattern.permute.xlu0 %v10830_v1  ;;  %8518 = vset.pattern.permute.xlu1 %v10830_v1  ;;  %v584_v5 = vld [vmem:[%s10810_s3] sm:$0x3]  ;;  %v764_v7 = vld [vmem:[#allocation2 + $0x18] sm:$0xff]  ;;  %v763_v10 = vld [vmem:[#allocation2 + $0x10] sm:$0xff]  ;;  %vm896_vm3 = vcmask 15360  }
  0x4e   : > { %s6386_s24 = sshll.u32 %s12124_s25, 3  ;;  %679 = vperm.xlu0 %8517, %v676_v4   ;;  %v8797_v8 = vpack.c.bf16 %v764_v7, %v762_v6  ;;  %v761_v9 = vld [vmem:[#allocation2] sm:$0xff]  ;;  %v766_v12 = vld [vmem:[#allocation2 + $0x28] sm:$0xff]  ;;  %v768_v13 = vld [vmem:[#allocation2 + $0x38] sm:$0xff]  ;;  %s6387_s0 = sshll.u32 %s12124_s25, 4 }
  0x4f   : > { %v2609_v11 = vld [vmem:[%s10817_s10] sm:$0x3]  ;;  %v8811_v15 = vpack.c.bf16 %v763_v10, %v761_v9  ;;  %v8814_v16 = vpack.c.bf16 %v768_v13, %v766_v12  ;;  %v767_v18 = vld [vmem:[#allocation2 + $0x30] sm:$0xff]  ;;  %v770_v20 = vld [vmem:[#allocation2 + $0x48] sm:$0xff]  ;;  %s8920_s20 = scalar_lea.vmem %s10824_s17, %s6387_s0  ;;  %s11853_s26 = sld [smem:[#allocation258_spill]] }
  0x50   : > { %11355 = vst [vmem:[#allocation10_spill] sm:$0xff] %v8797_v8  ;;  %v675_v14 = vld [vmem:[%s10812_s5] sm:$0x3]  ;;  %v772_v21 = vld [vmem:[#allocation2 + $0x58] sm:$0xff]  ;;  %v771_v25 = vld [vmem:[#allocation2 + $0x50] sm:$0xff] }
  0x51   : > { %s8784_s18 = scalar_lea.vmem %s11353_s30, %s6386_s24  ;;  %11356 = vst [vmem:[#allocation11_spill] sm:$0xff] %v8811_v15  ;;  %11357 = vst [vmem:[#allocation12_spill] sm:$0xff] %v8814_v16  ;;  %v765_v17 = vld [vmem:[#allocation2 + $0x20] sm:$0xff]  ;;  %v8824_v23 = vpack.c.bf16 %v772_v21, %v770_v20  ;;  %v774_v27 = vld [vmem:[#allocation2 + $0x68] sm:$0xff] }
  0x52   : > { %v579_v2 = vld [vmem:[%s8784_s18] sm:$0xff]  ;;  %2612 = vperm.xlu0 %8517, %v2609_v11   ;;  %v8821_v22 = vpack.c.bf16 %v767_v18, %v765_v17  ;;  %v776_v28 = vld [vmem:[#allocation2 + $0x78] sm:$0xff]  ;;  %v775_v32 = vld [vmem:[#allocation2 + $0x70] sm:$0xff] }
  0x53   : > { %v8787_v3 = vcombine.high %v579_v2, %v579_v2  ;;  %v5339_v19 = vld [vmem:[%s10821_s14] sm:$0x3]  ;;  %11359 = vst [vmem:[#allocation14_spill] sm:$0xff] %v8824_v23  ;;  %v8833_v30 = vpack.c.bf16 %v776_v28, %v774_v27  ;;  %v778_v33 = vld [vmem:[#allocation2 + $0x88] sm:$0xff]  ;;  %v780_v34 = vld [vmem:[#allocation2 + $0x98] sm:$0xff] }
  0x54   : > { %11358 = vst [vmem:[#allocation13_spill] sm:$0xff] %v8821_v22  ;;  %v769_v24 = vld [vmem:[#allocation2 + $0x40] sm:$0xff]  ;;  %v8839_v36 = vpack.c.bf16 %v780_v34, %v778_v33  ;;  %v779_v38 = vld [vmem:[#allocation2 + $0x90] sm:$0xff]  ;;  %v782_v39 = vld [vmem:[#allocation2 + $0xa8] sm:$0xff] }
  0x55   : > { %11354 = vst [vmem:[#allocation9_spill] sm:$0xff] %v8787_v3  ;;  %6267 = vmatprep.subr.msk.mxu0 %vm597_vm0, %v8787_v3  ;;  %v585_v26 = vld [vmem:[%s10811_s4] sm:$0x3]  ;;  %v8830_v29 = vpack.c.bf16 %v771_v25, %v769_v24  ;;  %11361 = vst [vmem:[#allocation16_spill] sm:$0xff] %v8833_v30  ;;  %v784_v40 = vld [vmem:[#allocation2 + $0xb8] sm:$0xff] }
  0x56   : > { %6268 = vmatpush1.msk.msra.mxu0 %vm597_vm0, %v579_v2  ;;  %5342 = vperm.xlu0 %8517, %v5339_v19   ;;  %v773_v31 = vld [vmem:[#allocation2 + $0x60] sm:$0xff]  ;;  %11363 = vst [vmem:[#allocation18_spill] sm:$0xff] %v8839_v36  ;;  %v8845_v42 = vpack.c.bf16 %v784_v40, %v782_v39  ;;  %v783_v44 = vld [vmem:[#allocation2 + $0xb0] sm:$0xff]  ;;  %v786_v45 = vld [vmem:[#allocation2 + $0xc8] sm:$0xff] }
  0x57   : > { %6269 = vmatmul.mubr.msk.f32.vlgmr.msra.gmra.mrb[0].mxu0 %vm593_vm1, %v584_v5  ;;  %6270 = vmatprep.subr.msk.mxu0 %vm597_vm0, %v8787_v3  ;;  %11360 = vst [vmem:[#allocation15_spill] sm:$0xff] %v8830_v29  ;;  %v8836_v35 = vpack.c.bf16 %v775_v32, %v773_v31  ;;  %v777_v37 = vld [vmem:[#allocation2 + $0x80] sm:$0xff]  ;;  %v788_v46 = vld [vmem:[#allocation2 + $0xd8] sm:$0xff]  ;;  %v787_v50 = vld [vmem:[#allocation2 + $0xd0] sm:$0xff] }
  0x58   : > { %6271 = vmatpush1.msk.msra.mxu0 %vm597_vm0, %v579_v2  ;;  %749 = vmatprep.mubr.f32.mxu0 %v10832_v0  ;;  %v8842_v41 = vpack.c.bf16 %v779_v38, %v777_v37  ;;  %11365 = vst [vmem:[#allocation20_spill] sm:$0xff] %v8845_v42  ;;  %v781_v43 = vld [vmem:[#allocation2 + $0xa0] sm:$0xff]  ;;  %v8851_v48 = vpack.c.bf16 %v788_v46, %v786_v45  ;;  %v790_v51 = vld [vmem:[#allocation2 + $0xe8] sm:$0xff]  ;;  %v792_v52 = vld [vmem:[#allocation2 + $0xf8] sm:$0xff] }
  0x59   : > { %6389 = vmatprep.subr.bf16.mxu0 %v8797_v8  ;;  %11362 = vst [vmem:[#allocation17_spill] sm:$0xff] %v8836_v35  ;;  %v8848_v47 = vpack.c.bf16 %v783_v44, %v781_v43  ;;  %v785_v49 = vld [vmem:[#allocation2 + $0xc0] sm:$0xff]  ;;  %v8857_v54 = vpack.c.bf16 %v792_v52, %v790_v51  ;;  %v791_v56 = vld [vmem:[#allocation2 + $0xf0] sm:$0xff]  ;;  %v794_v57 = vld [vmem:[#allocation2 + $0x108] sm:$0xff] }
  0x5a   : > { %588 = vperm.xlu0 %8517, %v585_v26   ;;  %11364 = vst [vmem:[#allocation19_spill] sm:$0xff] %v8842_v41  ;;  %11367 = vst [vmem:[#allocation22_spill] sm:$0xff] %v8851_v48  ;;  %v8854_v53 = vpack.c.bf16 %v787_v50, %v785_v49  ;;  %v789_v55 = vld [vmem:[#allocation2 + $0xe0] sm:$0xff]  ;;  %v796_v58 = vld [vmem:[#allocation2 + $0x118] sm:$0xff] }
  0x5b   : > { %6272 = vmatmul.mubr.msk.f32.vlgmr.msra.gmra.mrb[2].mxu0 %vm593_vm1, %v675_v14  ;;  %11366 = vst [vmem:[#allocation21_spill] sm:$0xff] %v8848_v47  ;;  %11369 = vst [vmem:[#allocation24_spill] sm:$0xff] %v8857_v54  ;;  %v8860_v59 = vpack.c.bf16 %v791_v56, %v789_v55  ;;  %v8863_v60 = vpack.c.bf16 %v796_v58, %v794_v57  ;;  %v793_v61 = vld [vmem:[#allocation2 + $0x100] sm:$0xff]  ;;  %v795_v62 = vld [vmem:[#allocation2 + $0x110] sm:$0xff] }
  0x5c   : > { %6391 = vmatpush1.bf16.msra.mxu0 %v8811_v15  ;;  %11368 = vst [vmem:[#allocation23_spill] sm:$0xff] %v8854_v53  ;;  %v798_v63 = vld [vmem:[#allocation2 + $0x128] sm:$0xff]  ;;  %v800_v2 = vld [vmem:[#allocation2 + $0x138] sm:$0xff]  ;;  %v8866_v4 = vpack.c.bf16 %v795_v62, %v793_v61  ;;  %v797_v6 = vld [vmem:[#allocation2 + $0x120] sm:$0xff] }
  0x5d   : > { %6393 = vmatprep.subr.bf16.mxu0 %v8814_v16  ;;  %11370 = vst [vmem:[#allocation25_spill] sm:$0xff] %v8860_v59  ;;  %11371 = vst [vmem:[#allocation26_spill] sm:$0xff] %v8863_v60  ;;  %v8869_v5 = vpack.c.bf16 %v800_v2, %v798_v63  ;;  %v799_v7 = vld [vmem:[#allocation2 + $0x130] sm:$0xff]  ;;  %v802_v9 = vld [vmem:[#allocation2 + $0x148] sm:$0xff] }
  0x5e   : > { %11372 = vst [vmem:[#allocation27_spill] sm:$0xff] %v8866_v4  ;;  %v804_v10 = vld [vmem:[#allocation2 + $0x158] sm:$0xff]  ;;  %v8872_v11 = vpack.c.bf16 %v799_v7, %v797_v6  ;;  %v801_v13 = vld [vmem:[#allocation2 + $0x140] sm:$0xff]  ;;  %v803_v14 = vld [vmem:[#allocation2 + $0x150] sm:$0xff] }
  0x5f   : > { %11373 = vst [vmem:[#allocation28_spill] sm:$0xff] %v8869_v5  ;;  %v8875_v12 = vpack.c.bf16 %v804_v10, %v802_v9  ;;  %v806_v17 = vld [vmem:[#allocation2 + $0x168] sm:$0xff]  ;;  %v808_v18 = vld [vmem:[#allocation2 + $0x178] sm:$0xff]  ;;  %v8878_v19 = vpack.c.bf16 %v803_v14, %v801_v13  ;;  %v805_v21 = vld [vmem:[#allocation2 + $0x160] sm:$0xff] }
  0x60   : > { %6395 = vmatpush1.bf16.msra.mxu0 %v8821_v22  ;;  %11374 = vst [vmem:[#allocation29_spill] sm:$0xff] %v8872_v11  ;;  %v8881_v20 = vpack.c.bf16 %v808_v18, %v806_v17  ;;  %v807_v24 = vld [vmem:[#allocation2 + $0x170] sm:$0xff]  ;;  %v810_v25 = vld [vmem:[#allocation2 + $0x188] sm:$0xff]  ;;  %v812_v26 = vld [vmem:[#allocation2 + $0x198] sm:$0xff] }
  0x61   : > { %6397 = vmatprep.subr.bf16.mxu0 %v8824_v23  ;;  %11375 = vst [vmem:[#allocation30_spill] sm:$0xff] %v8875_v12  ;;  %11376 = vst [vmem:[#allocation31_spill] sm:$0xff] %v8878_v19  ;;  %v8884_v27 = vpack.c.bf16 %v807_v24, %v805_v21  ;;  %v8887_v28 = vpack.c.bf16 %v812_v26, %v810_v25  ;;  %v809_v31 = vld [vmem:[#allocation2 + $0x180] sm:$0xff]  ;;  %v811_v32 = vld [vmem:[#allocation2 + $0x190] sm:$0xff] }
  0x62   : > { %11377 = vst [vmem:[#allocation32_spill] sm:$0xff] %v8881_v20  ;;  %v814_v33 = vld [vmem:[#allocation2 + $0x1a8] sm:$0xff]  ;;  %v816_v34 = vld [vmem:[#allocation2 + $0x1b8] sm:$0xff]  ;;  %v8890_v37 = vpack.c.bf16 %v811_v32, %v809_v31  ;;  %v813_v39 = vld [vmem:[#allocation2 + $0x1a0] sm:$0xff] }
  0x63   : > { %11378 = vst [vmem:[#allocation33_spill] sm:$0xff] %v8884_v27  ;;  %11379 = vst [vmem:[#allocation34_spill] sm:$0xff] %v8887_v28  ;;  %v8893_v38 = vpack.c.bf16 %v816_v34, %v814_v33  ;;  %v815_v40 = vld [vmem:[#allocation2 + $0x1b0] sm:$0xff]  ;;  %v818_v44 = vld [vmem:[#allocation2 + $0x1c8] sm:$0xff] }
  0x64   : > { %6399 = vmatpush1.bf16.msra.mxu0 %v8830_v29  ;;  %11380 = vst [vmem:[#allocation35_spill] sm:$0xff] %v8890_v37  ;;  %v8897_v43 = vpack.c.bf16 %v815_v40, %v813_v39  ;;  %v820_v45 = vld [vmem:[#allocation2 + $0x1d8] sm:$0xff]  ;;  %v817_v49 = vld [vmem:[#allocation2 + $0x1c0] sm:$0xff]  ;;  %v819_v50 = vld [vmem:[#allocation2 + $0x1d0] sm:$0xff] }
  0x65   : > { %6401 = vmatprep.subr.bf16.mxu0 %v8833_v30  ;;  %11381 = vst [vmem:[#allocation36_spill] sm:$0xff] %v8893_v38  ;;  %v8900_v46 = vpack.c.bf16 %v820_v45, %v818_v44  ;;  %v8902_v51 = vpack.c.bf16 %v819_v50, %v817_v49  ;;  %v822_v52 = vld [vmem:[#allocation2 + $0x1e8] sm:$0xff]  ;;  %v824_v55 = vld [vmem:[#allocation2 + $0x1f8] sm:$0xff]  ;;  %v821_v57 = vld [vmem:[#allocation2 + $0x1e0] sm:$0xff] }
  0x66   : > { %11382 = vst [vmem:[#allocation37_spill] sm:$0xff] %v8897_v43  ;;  %v8906_v56 = vpack.c.bf16 %v824_v55, %v822_v52  ;;  %v823_v58 = vld [vmem:[#allocation2 + $0x1f0] sm:$0xff]  ;;  %v1062_v25 = vld [vmem:[#allocation2 + $0x208] sm:$0xff]  ;;  %v1064_v26 = vld [vmem:[#allocation2 + $0x218] sm:$0xff] }
  0x67   : > { %11383 = vst [vmem:[#allocation38_spill] sm:$0xff] %v8900_v46  ;;  %11384 = vst [vmem:[#allocation39_spill] sm:$0xff] %v8902_v51  ;;  %v8908_v61 = vpack.c.bf16 %v823_v58, %v821_v57  ;;  %v1061_v32 = vld [vmem:[#allocation2 + $0x200] sm:$0xff]  ;;  %v1063_v33 = vld [vmem:[#allocation2 + $0x210] sm:$0xff]  ;;  %v8926_v44 = vpack.c.bf16 %v1064_v26, %v1062_v25 }
  0x68   : > { %6403 = vmatpush1.bf16.msra.mxu0 %v8836_v35  ;;  %11385 = vst [vmem:[#allocation40_spill] sm:$0xff] %v8906_v56  ;;  %v1066_v34 = vld [vmem:[#allocation2 + $0x228] sm:$0xff]  ;;  %v1068_v39 = vld [vmem:[#allocation2 + $0x238] sm:$0xff]  ;;  %v8933_v50 = vpack.c.bf16 %v1063_v33, %v1061_v32  ;;  %v1065_v55 = vld [vmem:[#allocation2 + $0x220] sm:$0xff] }
  0x69   : > { %6405 = vmatprep.subr.bf16.mxu0 %v8839_v36  ;;  %11386 = vst [vmem:[#allocation41_spill] sm:$0xff] %v8908_v61  ;;  %11388 = vst [vmem:[#allocation43_spill] sm:$0xff] %v8926_v44  ;;  %v6273_v49 = vld [vmem:[%s10814_s7 + $0x8] sm:$0x3]  ;;  %v8938_v52 = vpack.c.bf16 %v1068_v39, %v1066_v34  ;;  %v1067_v57 = vld [vmem:[#allocation2 + $0x230] sm:$0xff] }
  0x6a   : > { %11389 = vst [vmem:[#allocation44_spill] sm:$0xff] %v8933_v50  ;;  %v1070_v58 = vld [vmem:[#allocation2 + $0x248] sm:$0xff]  ;;  %v1080_v26 = vld [vmem:[#allocation2 + $0x298] sm:$0xff]  ;;  %v1077_v33 = vld [vmem:[#allocation2 + $0x280] sm:$0xff] }
  0x6b   : > { %11390 = vst [vmem:[#allocation45_spill] sm:$0xff] %v8938_v52  ;;  %v1078_v25 = vld [vmem:[#allocation2 + $0x288] sm:$0xff]  ;;  %v1079_v34 = vld [vmem:[#allocation2 + $0x290] sm:$0xff]  ;;  %v1093_v1 = vld [vmem:[#allocation2 + $0x300] sm:$0xff] }
  0x6c   : > { %6407 = vmatpush1.bf16.msra.mxu0 %v8842_v41  ;;  %v8963_v32 = vpack.c.bf16 %v1080_v26, %v1078_v25  ;;  %v1082_v39 = vld [vmem:[#allocation2 + $0x2a8] sm:$0xff]  ;;  %v1092_v26 = vld [vmem:[#allocation2 + $0x2f8] sm:$0xff] }
  0x6d   : > { %6409 = vmatprep.subr.bf16.mxu0 %v8845_v42  ;;  %v1090_v25 = vld [vmem:[#allocation2 + $0x2e8] sm:$0xff] }
  0x6e   : > { %11396 = vst [vmem:[#allocation51_spill] sm:$0xff] %v8963_v32 }
  0x70   : > { %6411 = vmatpush1.bf16.msra.mxu0 %v8848_v47 }
  0x71   : > { %6413 = vmatprep.subr.bf16.mxu0 %v8851_v48 }
  0x74   : > { %6415 = vmatpush1.bf16.msra.mxu0 %v8854_v53 }
  0x75   : > { %6417 = vmatprep.subr.bf16.mxu0 %v8857_v54 }
  0x78   : > { %6419 = vmatpush1.bf16.msra.mxu0 %v8860_v59 }
  0x79   : > { %6421 = vmatprep.subr.bf16.mxu0 %v8863_v60 }
  0x7c   : > { %6423 = vmatpush1.bf16.msra.mxu0 %v8866_v4 }
  0x7d   : > { %6425 = vmatprep.subr.bf16.mxu0 %v8869_v5 }
  0x80   : > { %6427 = vmatpush1.bf16.msra.mxu0 %v8872_v11 }
  0x81   : > { %6429 = vmatprep.subr.bf16.mxu0 %v8875_v12 }
  0x84   : > { %6431 = vmatpush1.bf16.msra.mxu0 %v8878_v19 }
  0x85   : > { %6433 = vmatprep.subr.bf16.mxu0 %v8881_v20 }
  0x88   : > { %6435 = vmatpush1.bf16.msra.mxu0 %v8884_v27 }
  0x89   : > { %6437 = vmatprep.subr.bf16.mxu0 %v8887_v28 }
  0x8c   : > { %6439 = vmatpush1.bf16.msra.mxu0 %v8890_v37 }
  0x8d   : > { %6441 = vmatprep.subr.bf16.mxu0 %v8893_v38 }
  0x90   : > { %6443 = vmatpush1.bf16.msra.mxu0 %v8897_v43 }
  0x91   : > { %6445 = vmatprep.subr.bf16.mxu0 %v8900_v46 }
  0x94   : > { %6447 = vmatpush1.bf16.msra.mxu0 %v8902_v51 }
  0x95   : > { %6449 = vmatprep.subr.bf16.mxu0 %v8906_v56 }
  0x98   : > { %6451 = vmatpush1.bf16.msra.mxu0 %v8908_v61 }
  0xcd   : > { %v680_v62 = vpop.permute.xlu0 %679 }
  0xd1   : > { %v8912_v63 = vpop.permute.xlu0 %2612 }
  0xd5   : > { %v8914_v2 = vpop.permute.xlu0 %5342 }
  0xd6   : > { %11387 = vst [vmem:[#allocation42_spill] sm:$0xff] %v8914_v2  ;;  %v1097_v2 = vld [vmem:[#allocation2 + $0x320] sm:$0xff] }
  0xd9   : > { %v589_v6 = vpop.permute.xlu0 %588 }
 0x12a   : > { %v668_v7 = vpop.f32.mrb[0].mxu0 }
 0x12b   : > { %v669_v9 = vadd.f32 %v668_v7, %v589_v6  ;;  %v670_v10 = vpop.f32.mrb[1].mxu0 }
 0x12c   : > { %v671_v13 = vadd.f32 %v670_v10, %v589_v6  ;;  %v8947_v6 = vpack.c.bf16 %v1067_v57, %v1065_v55  ;;  %v1071_v10 = vld [vmem:[#allocation2 + $0x250] sm:$0xff]  ;;  %v8966_v55 = vpack.c.bf16 %v1079_v34, %v1077_v33  ;;  %v8981_v34 = vpack.c.bf16 %v1092_v26, %v1090_v25 }
 0x12d   : > { %v673_v14 = vmax.f32 %v669_v9, 0.0  ;;  %v1069_v9 = vld [vmem:[#allocation2 + $0x240] sm:$0xff] }
 0x12e   : > { %v674_v17 = vmax.f32 %v671_v13, 0.0  ;;  %v751_v18 = vpop.f32.mrb[2].mxu0  ;;  %11391 = vst [vmem:[#allocation46_spill] sm:$0xff] %v8947_v6  ;;  %v1074_v13 = vld [vmem:[#allocation2 + $0x268] sm:$0xff]  ;;  %11397 = vst [vmem:[#allocation52_spill] sm:$0xff] %v8966_v55 }
 0x12f   : > { %6151 = vst [vmem:[%s8920_s20] sm:$0x3] %v673_v14  ;;  %v752_v21 = vadd.f32 %v751_v18, %v680_v62  ;;  %v753_v24 = vpop.f32.mrb[3].mxu0  ;;  %v1076_v14 = vld [vmem:[#allocation2 + $0x278] sm:$0xff]  ;;  %11402 = vst [vmem:[#allocation57_spill] sm:$0xff] %v8981_v34 }
 0x130   : > { %6152 = vst [vmem:[%s8920_s20 + $0x8] sm:$0x3] %v674_v17  ;;  %v754_v31 = vadd.f32 %v753_v24, %v680_v62  ;;  %v1072_v62 = vld [vmem:[#allocation2 + $0x258] sm:$0xff]  ;;  %v8954_v17 = vpack.c.bf16 %v1071_v10, %v1069_v9  ;;  %v8957_v18 = vpack.c.bf16 %v1076_v14, %v1074_v13  ;;  %v1075_v24 = vld [vmem:[#allocation2 + $0x270] sm:$0xff]  ;;  %v1086_v9 = vld [vmem:[#allocation2 + $0x2c8] sm:$0xff] }
 0x131   : > { %v8928_v45 = vmax.f32 %v752_v21, 0.0  ;;  %v8950_v7 = vpack.c.bf16 %v1072_v62, %v1070_v58  ;;  %v1073_v21 = vld [vmem:[#allocation2 + $0x260] sm:$0xff]  ;;  %v1083_v62 = vld [vmem:[#allocation2 + $0x2b0] sm:$0xff]  ;;  %v1088_v10 = vld [vmem:[#allocation2 + $0x2d8] sm:$0xff] }
 0x132   : > { %v8924_v40 = vmax.f32 %v754_v31, 0.0  ;;  %11393 = vst [vmem:[#allocation48_spill] sm:$0xff] %v8954_v17  ;;  %11394 = vst [vmem:[#allocation49_spill] sm:$0xff] %v8957_v18  ;;  %v8960_v31 = vpack.c.bf16 %v1075_v24, %v1073_v21  ;;  %v1081_v58 = vld [vmem:[#allocation2 + $0x2a0] sm:$0xff]  ;;  %v8975_v14 = vpack.c.bf16 %v1088_v10, %v1086_v9  ;;  %v1087_v24 = vld [vmem:[#allocation2 + $0x2d0] sm:$0xff] }
 0x133   : > { %11392 = vst [vmem:[#allocation47_spill] sm:$0xff] %v8950_v7  ;;  %v8972_v13 = vpack.c.bf16 %v1083_v62, %v1081_v58  ;;  %v1085_v21 = vld [vmem:[#allocation2 + $0x2c0] sm:$0xff]  ;;  %v1094_v58 = vld [vmem:[#allocation2 + $0x308] sm:$0xff]  ;;  %v1096_v62 = vld [vmem:[#allocation2 + $0x318] sm:$0xff] }
 0x134   : > { %889 = vmatprep.mubr.f32.mxu0 %v8924_v40  ;;  %6277 = vmatprep.subr.msk.mxu1 %vm900_vm2, %v8924_v40  ;;  %11395 = vst [vmem:[#allocation50_spill] sm:$0xff] %v8960_v31  ;;  %11400 = vst [vmem:[#allocation55_spill] sm:$0xff] %v8975_v14  ;;  %v8978_v33 = vpack.c.bf16 %v1087_v24, %v1085_v21  ;;  %v8987_v10 = vpack.c.bf16 %v1096_v62, %v1094_v58  ;;  %v1098_v21 = vld [vmem:[#allocation2 + $0x328] sm:$0xff]  ;;  %v1100_v24 = vld [vmem:[#allocation2 + $0x338] sm:$0xff] }
 0x135   : > { %890 = vmatmul.mubr.f32.vlgmr.msra.gmra.mrb[4].mxu0 %v8928_v45  ;;  %6278 = vmatpush1.msk.msra.mxu1 %vm900_vm2, %v8928_v45  ;;  %11399 = vst [vmem:[#allocation54_spill] sm:$0xff] %v8972_v13  ;;  %v8993_v26 = vpack.c.bf16 %v1100_v24, %v1098_v21 }
 0x136   : > { %6279 = vmatmul.mubr.msk.f32.vlgmr.msra.gmra.mrb[0].mxu1 %vm896_vm3, %v6273_v49  ;;  %6453 = vmatprep.subr.bf16.mxu1 %v8926_v44  ;;  %v1084_v49 = vld [vmem:[#allocation2 + $0x2b8] sm:$0xff]  ;;  %11401 = vst [vmem:[#allocation56_spill] sm:$0xff] %v8978_v33  ;;  %11404 = vst [vmem:[#allocation59_spill] sm:$0xff] %v8987_v10  ;;  %v1311_v44 = vld [vmem:[#allocation2 + $0x4f0] sm:$0xff] }
 0x137   : > { %6455 = vmatpush1.bf16.msra.mxu1 %v8933_v50  ;;  %1189 = vmatprep.mubr.f32.mxu1 %v8924_v40  ;;  %v8969_v57 = vpack.c.bf16 %v1084_v49, %v1082_v39  ;;  %v1089_v39 = vld [vmem:[#allocation2 + $0x2e0] sm:$0xff]  ;;  %v1091_v49 = vld [vmem:[#allocation2 + $0x2f0] sm:$0xff]  ;;  %11406 = vst [vmem:[#allocation61_spill] sm:$0xff] %v8993_v26 }
 0x138   : > { %6457 = vmatprep.subr.bf16.mxu1 %v8938_v52  ;;  %971 = vmatprep.mubr.f32.mxu0 %v10832_v0  ;;  %v8984_v9 = vpack.c.bf16 %v1091_v49, %v1089_v39  ;;  %v1095_v0 = vld [vmem:[#allocation2 + $0x310] sm:$0xff]  ;;  %v1102_v39 = vld [vmem:[#allocation2 + $0x348] sm:$0xff]  ;;  %v1104_v49 = vld [vmem:[#allocation2 + $0x358] sm:$0xff] }
 0x139   : > { %11398 = vst [vmem:[#allocation53_spill] sm:$0xff] %v8969_v57  ;;  %v8990_v25 = vpack.c.bf16 %v1095_v0, %v1093_v1  ;;  %v8999_v62 = vpack.c.bf16 %v1104_v49, %v1102_v39  ;;  %v1106_v0 = vld [vmem:[#allocation2 + $0x368] sm:$0xff]  ;;  %v1108_v1 = vld [vmem:[#allocation2 + $0x378] sm:$0xff]  ;;  %v1307_v52 = vld [vmem:[#allocation2 + $0x4d0] sm:$0xff] }
 0x13a   : > { %11403 = vst [vmem:[#allocation58_spill] sm:$0xff] %v8984_v9  ;;  %v9005_v24 = vpack.c.bf16 %v1108_v1, %v1106_v0  ;;  %v1309_v50 = vld [vmem:[#allocation2 + $0x4e0] sm:$0xff] }
 0x13b   : > { %6459 = vmatpush1.bf16.msra.mxu1 %v8947_v6  ;;  %11405 = vst [vmem:[#allocation60_spill] sm:$0xff] %v8990_v25  ;;  %11408 = vst [vmem:[#allocation63_spill] sm:$0xff] %v8999_v62  ;;  %v1305_v6 = vld [vmem:[#allocation2 + $0x4c0] sm:$0xff] }
 0x13c   : > { %6461 = vmatprep.subr.bf16.mxu1 %v8950_v7  ;;  %11410 = vst [vmem:[#allocation65_spill] sm:$0xff] %v9005_v24  ;;  %v1303_v7 = vld [vmem:[#allocation2 + $0x4b0] sm:$0xff] }
 0x13f   : > { %6463 = vmatpush1.bf16.msra.mxu1 %v8954_v17  ;;  %v1301_v17 = vld [vmem:[#allocation2 + $0x4a0] sm:$0xff] }
 0x140   : > { %6465 = vmatprep.subr.bf16.mxu1 %v8957_v18  ;;  %v1299_v18 = vld [vmem:[#allocation2 + $0x490] sm:$0xff] }
 0x143   : > { %6467 = vmatpush1.bf16.msra.mxu1 %v8960_v31  ;;  %v1297_v31 = vld [vmem:[#allocation2 + $0x480] sm:$0xff] }
 0x144   : > { %6469 = vmatprep.subr.bf16.mxu1 %v8963_v32  ;;  %v1295_v32 = vld [vmem:[#allocation2 + $0x470] sm:$0xff] }
 0x147   : > { %6471 = vmatpush1.bf16.msra.mxu1 %v8966_v55  ;;  %v1292_v55 = vld [vmem:[#allocation2 + $0x458] sm:$0xff] }
 0x148   : > { %6473 = vmatprep.subr.bf16.mxu1 %v8969_v57  ;;  %v1290_v57 = vld [vmem:[#allocation2 + $0x448] sm:$0xff] }
 0x14b   : > { %6475 = vmatpush1.bf16.msra.mxu1 %v8972_v13  ;;  %v1287_v13 = vld [vmem:[#allocation2 + $0x430] sm:$0xff] }
 0x14c   : > { %6477 = vmatprep.subr.bf16.mxu1 %v8975_v14 }
 0x14f   : > { %6479 = vmatpush1.bf16.msra.mxu1 %v8978_v33  ;;  %v1099_v33 = vld [vmem:[#allocation2 + $0x330] sm:$0xff] }
 0x150   : > { %6481 = vmatprep.subr.bf16.mxu1 %v8981_v34  ;;  %v8996_v58 = vpack.c.bf16 %v1099_v33, %v1097_v2  ;;  %v1101_v34 = vld [vmem:[#allocation2 + $0x340] sm:$0xff]  ;;  %v1110_v2 = vld [vmem:[#allocation2 + $0x388] sm:$0xff]  ;;  %v1112_v33 = vld [vmem:[#allocation2 + $0x398] sm:$0xff] }
 0x151   : > { %v9011_v49 = vpack.c.bf16 %v1112_v33, %v1110_v2 }
 0x152   : > { %11407 = vst [vmem:[#allocation62_spill] sm:$0xff] %v8996_v58 }
 0x153   : > { %6483 = vmatpush1.bf16.msra.mxu1 %v8984_v9  ;;  %v1103_v9 = vld [vmem:[#allocation2 + $0x350] sm:$0xff]  ;;  %11412 = vst [vmem:[#allocation67_spill] sm:$0xff] %v9011_v49 }
 0x154   : > { %6485 = vmatprep.subr.bf16.mxu1 %v8987_v10  ;;  %v9002_v21 = vpack.c.bf16 %v1103_v9, %v1101_v34  ;;  %v1105_v10 = vld [vmem:[#allocation2 + $0x360] sm:$0xff]  ;;  %v1114_v34 = vld [vmem:[#allocation2 + $0x3a8] sm:$0xff]  ;;  %v1116_v9 = vld [vmem:[#allocation2 + $0x3b8] sm:$0xff] }
 0x155   : > { %v9017_v1 = vpack.c.bf16 %v1116_v9, %v1114_v34 }
 0x156   : > { %11409 = vst [vmem:[#allocation64_spill] sm:$0xff] %v9002_v21 }
 0x157   : > { %6487 = vmatpush1.bf16.msra.mxu1 %v8990_v25  ;;  %v1107_v25 = vld [vmem:[#allocation2 + $0x370] sm:$0xff]  ;;  %11414 = vst [vmem:[#allocation69_spill] sm:$0xff] %v9017_v1 }
 0x158   : > { %6489 = vmatprep.subr.bf16.mxu1 %v8993_v26  ;;  %v9008_v39 = vpack.c.bf16 %v1107_v25, %v1105_v10  ;;  %v1109_v26 = vld [vmem:[#allocation2 + $0x380] sm:$0xff]  ;;  %v1118_v10 = vld [vmem:[#allocation2 + $0x3c8] sm:$0xff]  ;;  %v1120_v25 = vld [vmem:[#allocation2 + $0x3d8] sm:$0xff] }
 0x159   : > { %v9023_v33 = vpack.c.bf16 %v1120_v25, %v1118_v10  ;;  %v760_v25 = vld [vmem:[%s10814_s7] sm:$0x3] }
 0x15a   : > { %11411 = vst [vmem:[#allocation66_spill] sm:$0xff] %v9008_v39 }
 0x15b   : > { %6491 = vmatpush1.bf16.msra.mxu1 %v8996_v58  ;;  %v1111_v58 = vld [vmem:[#allocation2 + $0x390] sm:$0xff]  ;;  %11416 = vst [vmem:[#allocation71_spill] sm:$0xff] %v9023_v33 }
 0x15c   : > { %6493 = vmatprep.subr.bf16.mxu1 %v8999_v62  ;;  %v9014_v0 = vpack.c.bf16 %v1111_v58, %v1109_v26  ;;  %v1113_v62 = vld [vmem:[#allocation2 + $0x3a0] sm:$0xff]  ;;  %v1122_v26 = vld [vmem:[#allocation2 + $0x3e8] sm:$0xff]  ;;  %v1124_v58 = vld [vmem:[#allocation2 + $0x3f8] sm:$0xff] }
 0x15d   : > { %v9029_v9 = vpack.c.bf16 %v1124_v58, %v1122_v26  ;;  %v1284_v26 = vld [vmem:[#allocation2 + $0x418] sm:$0xff]  ;;  %v1281_v58 = vld [vmem:[#allocation2 + $0x400] sm:$0xff] }
 0x15e   : > { %11413 = vst [vmem:[#allocation68_spill] sm:$0xff] %v9014_v0 }
 0x15f   : > { %6495 = vmatpush1.bf16.msra.mxu1 %v9002_v21  ;;  %v1115_v21 = vld [vmem:[#allocation2 + $0x3b0] sm:$0xff]  ;;  %11418 = vst [vmem:[#allocation73_spill] sm:$0xff] %v9029_v9 }
 0x160   : > { %6497 = vmatprep.subr.bf16.mxu1 %v9005_v24  ;;  %v9020_v2 = vpack.c.bf16 %v1115_v21, %v1113_v62  ;;  %v1117_v24 = vld [vmem:[#allocation2 + $0x3c0] sm:$0xff]  ;;  %v11420_v21 = vmov 0.0  }
 0x162   : > { %11415 = vst [vmem:[#allocation70_spill] sm:$0xff] %v9020_v2 }
 0x163   : > { %6499 = vmatpush1.bf16.msra.mxu1 %v9008_v39  ;;  %v1119_v39 = vld [vmem:[#allocation2 + $0x3d0] sm:$0xff] }
 0x164   : > { %6501 = vmatprep.subr.bf16.mxu1 %v9011_v49  ;;  %v9026_v34 = vpack.c.bf16 %v1119_v39, %v1117_v24  ;;  %v1121_v49 = vld [vmem:[#allocation2 + $0x3e0] sm:$0xff] }
 0x166   : > { %11417 = vst [vmem:[#allocation72_spill] sm:$0xff] %v9026_v34 }
 0x167   : > { %6503 = vmatpush1.bf16.msra.mxu1 %v9014_v0  ;;  %v1123_v0 = vld [vmem:[#allocation2 + $0x3f0] sm:$0xff] }
 0x168   : > { %6505 = vmatprep.subr.bf16.mxu1 %v9017_v1  ;;  %v9032_v62 = vpack.c.bf16 %v1123_v0, %v1121_v49  ;;  %v1282_v0 = vld [vmem:[#allocation2 + $0x408] sm:$0xff] }
 0x16a   : > { %11419 = vst [vmem:[#allocation74_spill] sm:$0xff] %v9032_v62 }
 0x16b   : > { %6507 = vmatpush1.bf16.msra.mxu1 %v9020_v2  ;;  %v9049_v2 = vpack.c.bf16 %v1284_v26, %v1282_v0  ;;  %v1294_v0 = vld [vmem:[#allocation2 + $0x468] sm:$0xff] }
 0x16c   : > { %6509 = vmatprep.subr.bf16.mxu1 %v9023_v33 }
 0x16d   : > { %11421 = vst [vmem:[#allocation75_spill] sm:$0xff] %v9049_v2 }
 0x16f   : > { %6511 = vmatpush1.bf16.msra.mxu1 %v9026_v34  ;;  %v1288_v34 = vld [vmem:[#allocation2 + $0x438] sm:$0xff] }
 0x170   : > { %6513 = vmatprep.subr.bf16.mxu1 %v9029_v9  ;;  %v1286_v9 = vld [vmem:[#allocation2 + $0x428] sm:$0xff] }
 0x173   : > { %6515 = vmatpush1.bf16.msra.mxu1 %v9032_v62  ;;  %v1283_v62 = vld [vmem:[#allocation2 + $0x410] sm:$0xff] }
 0x174   : > { %v9054_v14 = vpack.c.bf16 %v1283_v62, %v1281_v58 }
 0x176   : > { %1190 = vmatmul.mubr.f32.vlgmr.msra.gmra.mrb[2].mxu1 %v8928_v45  ;;  %11422 = vst [vmem:[#allocation76_spill] sm:$0xff] %v9054_v14 }
 0x177   : > { %1489 = vmatprep.mubr.f32.mxu1 %v11420_v21 }
 0x208   : > { %v891_v24 = vpop.f32.mrb[4].mxu0 }
 0x209   : > { %v893_v39 = vpop.f32.mrb[5].mxu0  ;;  %v9038_v10 = vpop.f32.mrb[0].mxu1 }
 0x20a   : > { %6274 = vmatprep.subr.msk.mxu0 %vm900_vm2, %v893_v39  ;;  %v9044_v49 = vpop.f32.mrb[1].mxu1  ;;  %v6280_v39 = vld [vmem:[%s10814_s7 + $0x2] sm:$0x3] }
 0x20b   : > { %6275 = vmatpush1.msk.msra.mxu0 %vm900_vm2, %v891_v24  ;;  %v9057_v24 = vpack.c.bf16 %v1288_v34, %v1286_v9  ;;  %v1289_v34 = vld [vmem:[#allocation2 + $0x440] sm:$0xff]  ;;  %v1291_v9 = vld [vmem:[#allocation2 + $0x450] sm:$0xff] }
 0x20c   : > { %6276 = vmatmul.mubr.msk.f32.vlgmr.msra.gmra.mrb[6].mxu0 %vm896_vm3, %v760_v25  ;;  %v1285_v25 = vld [vmem:[#allocation2 + $0x420] sm:$0xff]  ;;  %v9070_v26 = vpack.c.bf16 %v1291_v9, %v1289_v34  ;;  %v1302_v34 = vld [vmem:[#allocation2 + $0x4a8] sm:$0xff]  ;;  %v1304_v9 = vld [vmem:[#allocation2 + $0x4b8] sm:$0xff] }
 0x20d   : > { %1269 = vmatprep.mubr.f32.mxu0 %v11420_v21  ;;  %11423 = vst [vmem:[#allocation77_spill] sm:$0xff] %v9057_v24  ;;  %v9064_v62 = vpack.c.bf16 %v1287_v13, %v1285_v25  ;;  %v1298_v13 = vld [vmem:[#allocation2 + $0x488] sm:$0xff]  ;;  %v1300_v25 = vld [vmem:[#allocation2 + $0x498] sm:$0xff] }
 0x20e   : > { %11426 = vst [vmem:[#allocation80_spill] sm:$0xff] %v9070_v26 }
 0x20f   : > { %11424 = vst [vmem:[#allocation78_spill] sm:$0xff] %v9064_v62 }
 0x249   : > { %v1191_v33 = vpop.f32.mrb[2].mxu1 }
 0x24a   : > { %v1193_v1 = vpop.f32.mrb[3].mxu1 }
 0x24b   : > { %6281 = vmatprep.subr.msk.mxu0 %vm900_vm2, %v1193_v1  ;;  %v9067_v1 = vpack.c.bf16 %v1292_v55, %v1290_v57  ;;  %v9079_v57 = vpack.c.bf16 %v1300_v25, %v1298_v13  ;;  %v9088_v13 = vpack.c.bf16 %v1303_v7, %v1301_v17  ;;  %v1314_v7 = vld [vmem:[#allocation2 + $0x508] sm:$0xff]  ;;  %v1316_v17 = vld [vmem:[#allocation2 + $0x518] sm:$0xff] }
 0x24c   : > { %6282 = vmatpush1.msk.msra.mxu0 %vm900_vm2, %v1191_v33  ;;  %v1296_v33 = vld [vmem:[#allocation2 + $0x478] sm:$0xff] }
 0x24d   : > { %6283 = vmatmul.mubr.msk.f32.vlgmr.msra.gmra.mrb[8].mxu0 %vm896_vm3, %v6280_v39  ;;  %6517 = vmatprep.subr.bf16.mxu0 %v9049_v2  ;;  %11425 = vst [vmem:[#allocation79_spill] sm:$0xff] %v9067_v1  ;;  %v9073_v58 = vpack.c.bf16 %v1296_v33, %v1294_v0  ;;  %v1293_v39 = vld [vmem:[#allocation2 + $0x460] sm:$0xff]  ;;  %11429 = vst [vmem:[#allocation83_spill] sm:$0xff] %v9079_v57  ;;  %v9082_v0 = vpack.c.bf16 %v1299_v18, %v1297_v31  ;;  %v1310_v18 = vld [vmem:[#allocation2 + $0x4e8] sm:$0xff] }
 0x24e   : > { %6519 = vmatpush1.bf16.msra.mxu0 %v9054_v14  ;;  %1409 = vmatprep.mubr.f32.mxu0 %v8924_v40  ;;  %v9076_v55 = vpack.c.bf16 %v1295_v32, %v1293_v39  ;;  %v9085_v33 = vpack.c.bf16 %v1304_v9, %v1302_v34  ;;  %v1306_v32 = vld [vmem:[#allocation2 + $0x4c8] sm:$0xff]  ;;  %v1308_v39 = vld [vmem:[#allocation2 + $0x4d8] sm:$0xff]  ;;  %11432 = vst [vmem:[#allocation86_spill] sm:$0xff] %v9088_v13 }
 0x24f   : > { %6521 = vmatprep.subr.bf16.mxu0 %v9057_v24  ;;  %11427 = vst [vmem:[#allocation81_spill] sm:$0xff] %v9073_v58  ;;  %11430 = vst [vmem:[#allocation84_spill] sm:$0xff] %v9082_v0  ;;  %v9091_v25 = vpack.c.bf16 %v1308_v39, %v1306_v32  ;;  %v1312_v31 = vld [vmem:[#allocation2 + $0x4f8] sm:$0xff]  ;;  %v9094_v34 = vpack.c.bf16 %v1307_v52, %v1305_v6  ;;  %v9100_v32 = vpack.c.bf16 %v1311_v44, %v1309_v50  ;;  %v1318_v52 = vld [vmem:[#allocation2 + $0x528] sm:$0xff] }
 0x250   : > { %11428 = vst [vmem:[#allocation82_spill] sm:$0xff] %v9076_v55  ;;  %11431 = vst [vmem:[#allocation85_spill] sm:$0xff] %v9085_v33  ;;  %v9097_v9 = vpack.c.bf16 %v1312_v31, %v1310_v18  ;;  %v9103_v39 = vpack.c.bf16 %v1316_v17, %v1314_v7  ;;  %v1320_v6 = vld [vmem:[#allocation2 + $0x538] sm:$0xff]  ;;  %v1322_v44 = vld [vmem:[#allocation2 + $0x548] sm:$0xff] }
 0x251   : > { %11433 = vst [vmem:[#allocation87_spill] sm:$0xff] %v9091_v25  ;;  %11434 = vst [vmem:[#allocation88_spill] sm:$0xff] %v9094_v34  ;;  %v9109_v31 = vpack.c.bf16 %v1320_v6, %v1318_v52  ;;  %v1324_v50 = vld [vmem:[#allocation2 + $0x558] sm:$0xff] }
 0x252   : > { %6523 = vmatpush1.bf16.msra.mxu0 %v9064_v62  ;;  %11435 = vst [vmem:[#allocation89_spill] sm:$0xff] %v9097_v9  ;;  %11436 = vst [vmem:[#allocation90_spill] sm:$0xff] %v9100_v32  ;;  %v9115_v17 = vpack.c.bf16 %v1324_v50, %v1322_v44 }
 0x253   : > { %6525 = vmatprep.subr.bf16.mxu0 %v9067_v1  ;;  %11437 = vst [vmem:[#allocation91_spill] sm:$0xff] %v9103_v39  ;;  %11439 = vst [vmem:[#allocation93_spill] sm:$0xff] %v9109_v31 }
 0x254   : > { %11441 = vst [vmem:[#allocation95_spill] sm:$0xff] %v9115_v17 }
 0x256   : > { %6527 = vmatpush1.bf16.msra.mxu0 %v9070_v26 }
 0x257   : > { %6529 = vmatprep.subr.bf16.mxu0 %v9073_v58 }
 0x25a   : > { %6531 = vmatpush1.bf16.msra.mxu0 %v9076_v55 }
 0x25b   : > { %6533 = vmatprep.subr.bf16.mxu0 %v9079_v57 }
 0x25e   : > { %6535 = vmatpush1.bf16.msra.mxu0 %v9082_v0 }
 0x25f   : > { %6537 = vmatprep.subr.bf16.mxu0 %v9085_v33  ;;  %v1313_v33 = vld [vmem:[#allocation2 + $0x500] sm:$0xff] }
 0x262   : > { %6539 = vmatpush1.bf16.msra.mxu0 %v9088_v13  ;;  %v1315_v13 = vld [vmem:[#allocation2 + $0x510] sm:$0xff] }
 0x263   : > { %6541 = vmatprep.subr.bf16.mxu0 %v9091_v25  ;;  %v9106_v18 = vpack.c.bf16 %v1315_v13, %v1313_v33  ;;  %v1317_v25 = vld [vmem:[#allocation2 + $0x520] sm:$0xff]  ;;  %v1326_v33 = vld [vmem:[#allocation2 + $0x568] sm:$0xff]  ;;  %v1328_v13 = vld [vmem:[#allocation2 + $0x578] sm:$0xff] }
 0x264   : > { %v9121_v6 = vpack.c.bf16 %v1328_v13, %v1326_v33 }
 0x265   : > { %11438 = vst [vmem:[#allocation92_spill] sm:$0xff] %v9106_v18 }
 0x266   : > { %6543 = vmatpush1.bf16.msra.mxu0 %v9094_v34  ;;  %v1319_v34 = vld [vmem:[#allocation2 + $0x530] sm:$0xff]  ;;  %11443 = vst [vmem:[#allocation97_spill] sm:$0xff] %v9121_v6 }
 0x267   : > { %6545 = vmatprep.subr.bf16.mxu0 %v9097_v9  ;;  %v9112_v7 = vpack.c.bf16 %v1319_v34, %v1317_v25  ;;  %v1321_v9 = vld [vmem:[#allocation2 + $0x540] sm:$0xff]  ;;  %v1330_v25 = vld [vmem:[#allocation2 + $0x588] sm:$0xff]  ;;  %v1332_v34 = vld [vmem:[#allocation2 + $0x598] sm:$0xff] }
 0x268   : > { %v9127_v50 = vpack.c.bf16 %v1332_v34, %v1330_v25 }
 0x269   : > { %11440 = vst [vmem:[#allocation94_spill] sm:$0xff] %v9112_v7 }
 0x26a   : > { %6547 = vmatpush1.bf16.msra.mxu0 %v9100_v32  ;;  %v1323_v32 = vld [vmem:[#allocation2 + $0x550] sm:$0xff]  ;;  %11445 = vst [vmem:[#allocation99_spill] sm:$0xff] %v9127_v50 }
 0x26b   : > { %6549 = vmatprep.subr.bf16.mxu0 %v9103_v39  ;;  %v9118_v52 = vpack.c.bf16 %v1323_v32, %v1321_v9  ;;  %v1325_v39 = vld [vmem:[#allocation2 + $0x560] sm:$0xff]  ;;  %v1334_v9 = vld [vmem:[#allocation2 + $0x5a8] sm:$0xff]  ;;  %v1336_v32 = vld [vmem:[#allocation2 + $0x5b8] sm:$0xff] }
 0x26c   : > { %v9133_v13 = vpack.c.bf16 %v1336_v32, %v1334_v9 }
 0x26d   : > { %11442 = vst [vmem:[#allocation96_spill] sm:$0xff] %v9118_v52 }
 0x26e   : > { %6551 = vmatpush1.bf16.msra.mxu0 %v9106_v18  ;;  %v1327_v18 = vld [vmem:[#allocation2 + $0x570] sm:$0xff]  ;;  %11447 = vst [vmem:[#allocation101_spill] sm:$0xff] %v9133_v13 }
 0x26f   : > { %6553 = vmatprep.subr.bf16.mxu0 %v9109_v31  ;;  %v9124_v44 = vpack.c.bf16 %v1327_v18, %v1325_v39  ;;  %v1329_v31 = vld [vmem:[#allocation2 + $0x580] sm:$0xff]  ;;  %v1338_v39 = vld [vmem:[#allocation2 + $0x5c8] sm:$0xff]  ;;  %v1340_v18 = vld [vmem:[#allocation2 + $0x5d8] sm:$0xff] }
 0x270   : > { %v9139_v34 = vpack.c.bf16 %v1340_v18, %v1338_v39 }
 0x271   : > { %11444 = vst [vmem:[#allocation98_spill] sm:$0xff] %v9124_v44 }
 0x272   : > { %6555 = vmatpush1.bf16.msra.mxu0 %v9112_v7  ;;  %v1331_v7 = vld [vmem:[#allocation2 + $0x590] sm:$0xff]  ;;  %11449 = vst [vmem:[#allocation103_spill] sm:$0xff] %v9139_v34 }
 0x273   : > { %6557 = vmatprep.subr.bf16.mxu0 %v9115_v17  ;;  %v9130_v33 = vpack.c.bf16 %v1331_v7, %v1329_v31  ;;  %v1333_v17 = vld [vmem:[#allocation2 + $0x5a0] sm:$0xff]  ;;  %v1342_v31 = vld [vmem:[#allocation2 + $0x5e8] sm:$0xff]  ;;  %v1344_v7 = vld [vmem:[#allocation2 + $0x5f8] sm:$0xff] }
 0x274   : > { %v9145_v32 = vpack.c.bf16 %v1344_v7, %v1342_v31 }
 0x275   : > { %11446 = vst [vmem:[#allocation100_spill] sm:$0xff] %v9130_v33 }
 0x276   : > { %6559 = vmatpush1.bf16.msra.mxu0 %v9118_v52  ;;  %v1335_v52 = vld [vmem:[#allocation2 + $0x5b0] sm:$0xff]  ;;  %11451 = vst [vmem:[#allocation105_spill] sm:$0xff] %v9145_v32 }
 0x277   : > { %6561 = vmatprep.subr.bf16.mxu0 %v9121_v6  ;;  %v9136_v25 = vpack.c.bf16 %v1335_v52, %v1333_v17  ;;  %v1337_v6 = vld [vmem:[#allocation2 + $0x5c0] sm:$0xff]  ;;  %v1722_v17 = vld [vmem:[#allocation2 + $0xa08] sm:$0xff]  ;;  %v1724_v52 = vld [vmem:[#allocation2 + $0xa18] sm:$0xff] }
 0x278   : > { %v9151_v18 = vpack.c.bf16 %v1724_v52, %v1722_v17  ;;  %v1731_v52 = vld [vmem:[#allocation2 + $0xa50] sm:$0xff] }
 0x279   : > { %11448 = vst [vmem:[#allocation102_spill] sm:$0xff] %v9136_v25 }
 0x27a   : > { %6563 = vmatpush1.bf16.msra.mxu0 %v9124_v44  ;;  %v1339_v44 = vld [vmem:[#allocation2 + $0x5d0] sm:$0xff]  ;;  %11453 = vst [vmem:[#allocation107_spill] sm:$0xff] %v9151_v18 }
 0x27b   : > { %6565 = vmatprep.subr.bf16.mxu0 %v9127_v50  ;;  %v9142_v9 = vpack.c.bf16 %v1339_v44, %v1337_v6  ;;  %v1341_v50 = vld [vmem:[#allocation2 + $0x5e0] sm:$0xff]  ;;  %v1726_v6 = vld [vmem:[#allocation2 + $0xa28] sm:$0xff]  ;;  %v1728_v44 = vld [vmem:[#allocation2 + $0xa38] sm:$0xff] }
 0x27c   : > { %v9157_v7 = vpack.c.bf16 %v1728_v44, %v1726_v6  ;;  %v1734_v6 = vld [vmem:[#allocation2 + $0xa68] sm:$0xff]  ;;  %v1736_v44 = vld [vmem:[#allocation2 + $0xa78] sm:$0xff] }
 0x27d   : > { %11450 = vst [vmem:[#allocation104_spill] sm:$0xff] %v9142_v9 }
 0x27e   : > { %6567 = vmatpush1.bf16.msra.mxu0 %v9130_v33  ;;  %v1343_v33 = vld [vmem:[#allocation2 + $0x5f0] sm:$0xff]  ;;  %11455 = vst [vmem:[#allocation109_spill] sm:$0xff] %v9157_v7 }
 0x27f   : > { %6569 = vmatprep.subr.bf16.mxu0 %v9133_v13  ;;  %v9148_v39 = vpack.c.bf16 %v1343_v33, %v1341_v50  ;;  %v1721_v13 = vld [vmem:[#allocation2 + $0xa00] sm:$0xff]  ;;  %v1730_v50 = vld [vmem:[#allocation2 + $0xa48] sm:$0xff]  ;;  %v1732_v33 = vld [vmem:[#allocation2 + $0xa58] sm:$0xff] }
 0x281   : > { %11452 = vst [vmem:[#allocation106_spill] sm:$0xff] %v9148_v39 }
 0x282   : > { %6571 = vmatpush1.bf16.msra.mxu0 %v9136_v25  ;;  %v1723_v25 = vld [vmem:[#allocation2 + $0xa10] sm:$0xff] }
 0x283   : > { %6573 = vmatprep.subr.bf16.mxu0 %v9139_v34  ;;  %v9154_v31 = vpack.c.bf16 %v1723_v25, %v1721_v13  ;;  %v1725_v34 = vld [vmem:[#allocation2 + $0xa20] sm:$0xff]  ;;  %v9165_v13 = vpack.c.bf16 %v1732_v33, %v1730_v50 }
 0x284   : > { %v1729_v25 = vld [vmem:[#allocation2 + $0xa40] sm:$0xff] }
 0x285   : > { %11454 = vst [vmem:[#allocation108_spill] sm:$0xff] %v9154_v31  ;;  %11457 = vst [vmem:[#allocation111_spill] sm:$0xff] %v9165_v13 }
 0x286   : > { %6575 = vmatpush1.bf16.msra.mxu0 %v9142_v9  ;;  %v1727_v9 = vld [vmem:[#allocation2 + $0xa30] sm:$0xff] }
 0x287   : > { %6577 = vmatprep.subr.bf16.mxu0 %v9145_v32  ;;  %v9162_v17 = vpack.c.bf16 %v1727_v9, %v1725_v34  ;;  %v1735_v32 = vld [vmem:[#allocation2 + $0xa70] sm:$0xff]  ;;  %v1738_v34 = vld [vmem:[#allocation2 + $0xa88] sm:$0xff]  ;;  %v1740_v9 = vld [vmem:[#allocation2 + $0xa98] sm:$0xff] }
 0x288   : > { %v9177_v33 = vpack.c.bf16 %v1740_v9, %v1738_v34 }
 0x289   : > { %11456 = vst [vmem:[#allocation110_spill] sm:$0xff] %v9162_v17 }
 0x28a   : > { %6579 = vmatpush1.bf16.msra.mxu0 %v9148_v39  ;;  %v9171_v39 = vpack.c.bf16 %v1736_v44, %v1734_v6  ;;  %11461 = vst [vmem:[#allocation115_spill] sm:$0xff] %v9177_v33 }
 0x28b   : > { %6645 = vmatprep.subr.bf16.mxu0 %v9151_v18  ;;  %v9168_v18 = vpack.c.bf16 %v1731_v52, %v1729_v25  ;;  %v1742_v25 = vld [vmem:[#allocation2 + $0xaa8] sm:$0xff]  ;;  %v1744_v52 = vld [vmem:[#allocation2 + $0xab8] sm:$0xff] }
 0x28c   : > { %11459 = vst [vmem:[#allocation113_spill] sm:$0xff] %v9171_v39  ;;  %v9183_v44 = vpack.c.bf16 %v1744_v52, %v1742_v25 }
 0x28d   : > { %1410 = vmatmul.mubr.f32.vlgmr.msra.gmra.mrb[10].mxu0 %v8928_v45  ;;  %11458 = vst [vmem:[#allocation112_spill] sm:$0xff] %v9168_v18 }
 0x28e   : > { %6647 = vmatpush1.bf16.msra.mxu0 %v9154_v31  ;;  %1849 = vmatprep.mubr.f32.mxu0 %v8924_v40  ;;  %v1733_v31 = vld [vmem:[#allocation2 + $0xa60] sm:$0xff]  ;;  %11463 = vst [vmem:[#allocation117_spill] sm:$0xff] %v9183_v44 }
 0x28f   : > { %6649 = vmatprep.subr.bf16.mxu0 %v9157_v7  ;;  %v9174_v50 = vpack.c.bf16 %v1735_v32, %v1733_v31  ;;  %v1737_v7 = vld [vmem:[#allocation2 + $0xa80] sm:$0xff]  ;;  %v1746_v32 = vld [vmem:[#allocation2 + $0xac8] sm:$0xff]  ;;  %v1748_v31 = vld [vmem:[#allocation2 + $0xad8] sm:$0xff] }
 0x290   : > { %v9189_v9 = vpack.c.bf16 %v1748_v31, %v1746_v32 }
 0x291   : > { %11460 = vst [vmem:[#allocation114_spill] sm:$0xff] %v9174_v50 }
 0x292   : > { %6651 = vmatpush1.bf16.msra.mxu0 %v9162_v17  ;;  %v1739_v17 = vld [vmem:[#allocation2 + $0xa90] sm:$0xff]  ;;  %11465 = vst [vmem:[#allocation119_spill] sm:$0xff] %v9189_v9 }
 0x293   : > { %6653 = vmatprep.subr.bf16.mxu0 %v9165_v13  ;;  %v9180_v6 = vpack.c.bf16 %v1739_v17, %v1737_v7  ;;  %v1741_v13 = vld [vmem:[#allocation2 + $0xaa0] sm:$0xff]  ;;  %v1750_v7 = vld [vmem:[#allocation2 + $0xae8] sm:$0xff]  ;;  %v1752_v17 = vld [vmem:[#allocation2 + $0xaf8] sm:$0xff] }
 0x294   : > { %v9195_v52 = vpack.c.bf16 %v1752_v17, %v1750_v7 }
 0x295   : > { %11462 = vst [vmem:[#allocation116_spill] sm:$0xff] %v9180_v6 }
 0x296   : > { %6655 = vmatpush1.bf16.msra.mxu0 %v9168_v18  ;;  %v1743_v18 = vld [vmem:[#allocation2 + $0xab0] sm:$0xff]  ;;  %11467 = vst [vmem:[#allocation121_spill] sm:$0xff] %v9195_v52 }
 0x297   : > { %6657 = vmatprep.subr.bf16.mxu0 %v9171_v39  ;;  %v9186_v34 = vpack.c.bf16 %v1743_v18, %v1741_v13  ;;  %v1745_v39 = vld [vmem:[#allocation2 + $0xac0] sm:$0xff]  ;;  %v1754_v18 = vld [vmem:[#allocation2 + $0xb08] sm:$0xff]  ;;  %v1756_v13 = vld [vmem:[#allocation2 + $0xb18] sm:$0xff] }
 0x298   : > { %v9201_v31 = vpack.c.bf16 %v1756_v13, %v1754_v18 }
 0x299   : > { %11464 = vst [vmem:[#allocation118_spill] sm:$0xff] %v9186_v34 }
 0x29a   : > { %6659 = vmatpush1.bf16.msra.mxu0 %v9174_v50  ;;  %v1747_v50 = vld [vmem:[#allocation2 + $0xad0] sm:$0xff]  ;;  %11469 = vst [vmem:[#allocation123_spill] sm:$0xff] %v9201_v31 }
 0x29b   : > { %6661 = vmatprep.subr.bf16.mxu0 %v9177_v33  ;;  %v9192_v25 = vpack.c.bf16 %v1747_v50, %v1745_v39  ;;  %v1749_v33 = vld [vmem:[#allocation2 + $0xae0] sm:$0xff]  ;;  %v1758_v39 = vld [vmem:[#allocation2 + $0xb28] sm:$0xff]  ;;  %v1760_v50 = vld [vmem:[#allocation2 + $0xb38] sm:$0xff] }
 0x29c   : > { %v9207_v17 = vpack.c.bf16 %v1760_v50, %v1758_v39 }
 0x29d   : > { %11466 = vst [vmem:[#allocation120_spill] sm:$0xff] %v9192_v25 }
 0x29e   : > { %6663 = vmatpush1.bf16.msra.mxu0 %v9180_v6  ;;  %v1751_v6 = vld [vmem:[#allocation2 + $0xaf0] sm:$0xff]  ;;  %11471 = vst [vmem:[#allocation125_spill] sm:$0xff] %v9207_v17 }
 0x29f   : > { %6665 = vmatprep.subr.bf16.mxu0 %v9183_v44  ;;  %v9198_v32 = vpack.c.bf16 %v1751_v6, %v1749_v33  ;;  %v1753_v44 = vld [vmem:[#allocation2 + $0xb00] sm:$0xff]  ;;  %v1762_v33 = vld [vmem:[#allocation2 + $0xb48] sm:$0xff]  ;;  %v1764_v6 = vld [vmem:[#allocation2 + $0xb58] sm:$0xff] }
 0x2a0   : > { %v9213_v13 = vpack.c.bf16 %v1764_v6, %v1762_v33 }
 0x2a1   : > { %11468 = vst [vmem:[#allocation122_spill] sm:$0xff] %v9198_v32 }
 0x2a2   : > { %6667 = vmatpush1.bf16.msra.mxu0 %v9186_v34  ;;  %v1755_v34 = vld [vmem:[#allocation2 + $0xb10] sm:$0xff]  ;;  %11473 = vst [vmem:[#allocation127_spill] sm:$0xff] %v9213_v13 }
 0x2a3   : > { %6669 = vmatprep.subr.bf16.mxu0 %v9189_v9  ;;  %v9204_v7 = vpack.c.bf16 %v1755_v34, %v1753_v44  ;;  %v1757_v9 = vld [vmem:[#allocation2 + $0xb20] sm:$0xff]  ;;  %v1766_v44 = vld [vmem:[#allocation2 + $0xb68] sm:$0xff]  ;;  %v1768_v34 = vld [vmem:[#allocation2 + $0xb78] sm:$0xff] }
 0x2a4   : > { %v9219_v50 = vpack.c.bf16 %v1768_v34, %v1766_v44 }
 0x2a5   : > { %11470 = vst [vmem:[#allocation124_spill] sm:$0xff] %v9204_v7 }
 0x2a6   : > { %6671 = vmatpush1.bf16.msra.mxu0 %v9192_v25  ;;  %v1759_v25 = vld [vmem:[#allocation2 + $0xb30] sm:$0xff]  ;;  %11475 = vst [vmem:[#allocation129_spill] sm:$0xff] %v9219_v50 }
 0x2a7   : > { %6673 = vmatprep.subr.bf16.mxu0 %v9195_v52  ;;  %v9210_v18 = vpack.c.bf16 %v1759_v25, %v1757_v9  ;;  %v1761_v52 = vld [vmem:[#allocation2 + $0xb40] sm:$0xff]  ;;  %v1770_v9 = vld [vmem:[#allocation2 + $0xb88] sm:$0xff]  ;;  %v1772_v25 = vld [vmem:[#allocation2 + $0xb98] sm:$0xff] }
 0x2a8   : > { %v9225_v6 = vpack.c.bf16 %v1772_v25, %v1770_v9 }
 0x2a9   : > { %11472 = vst [vmem:[#allocation126_spill] sm:$0xff] %v9210_v18 }
 0x2aa   : > { %6675 = vmatpush1.bf16.msra.mxu0 %v9198_v32  ;;  %v1763_v32 = vld [vmem:[#allocation2 + $0xb50] sm:$0xff]  ;;  %11477 = vst [vmem:[#allocation131_spill] sm:$0xff] %v9225_v6 }
 0x2ab   : > { %6677 = vmatprep.subr.bf16.mxu0 %v9201_v31  ;;  %v9216_v39 = vpack.c.bf16 %v1763_v32, %v1761_v52  ;;  %v1765_v31 = vld [vmem:[#allocation2 + $0xb60] sm:$0xff]  ;;  %v1774_v52 = vld [vmem:[#allocation2 + $0xba8] sm:$0xff]  ;;  %v1776_v32 = vld [vmem:[#allocation2 + $0xbb8] sm:$0xff] }
 0x2ac   : > { %v9231_v34 = vpack.c.bf16 %v1776_v32, %v1774_v52 }
 0x2ad   : > { %11474 = vst [vmem:[#allocation128_spill] sm:$0xff] %v9216_v39 }
 0x2ae   : > { %6679 = vmatpush1.bf16.msra.mxu0 %v9204_v7  ;;  %v1767_v7 = vld [vmem:[#allocation2 + $0xb70] sm:$0xff]  ;;  %11479 = vst [vmem:[#allocation133_spill] sm:$0xff] %v9231_v34 }
 0x2af   : > { %6681 = vmatprep.subr.bf16.mxu0 %v9207_v17  ;;  %v9222_v33 = vpack.c.bf16 %v1767_v7, %v1765_v31  ;;  %v1769_v17 = vld [vmem:[#allocation2 + $0xb80] sm:$0xff]  ;;  %v1778_v31 = vld [vmem:[#allocation2 + $0xbc8] sm:$0xff]  ;;  %v1780_v7 = vld [vmem:[#allocation2 + $0xbd8] sm:$0xff] }
 0x2b0   : > { %v9237_v25 = vpack.c.bf16 %v1780_v7, %v1778_v31 }
 0x2b1   : > { %11476 = vst [vmem:[#allocation130_spill] sm:$0xff] %v9222_v33 }
 0x2b2   : > { %6683 = vmatpush1.bf16.msra.mxu0 %v9210_v18  ;;  %v1771_v18 = vld [vmem:[#allocation2 + $0xb90] sm:$0xff]  ;;  %11481 = vst [vmem:[#allocation135_spill] sm:$0xff] %v9237_v25 }
 0x2b3   : > { %6685 = vmatprep.subr.bf16.mxu0 %v9213_v13  ;;  %v9228_v44 = vpack.c.bf16 %v1771_v18, %v1769_v17  ;;  %v1773_v13 = vld [vmem:[#allocation2 + $0xba0] sm:$0xff]  ;;  %v1782_v17 = vld [vmem:[#allocation2 + $0xbe8] sm:$0xff]  ;;  %v1784_v18 = vld [vmem:[#allocation2 + $0xbf8] sm:$0xff] }
 0x2b4   : > { %v9243_v32 = vpack.c.bf16 %v1784_v18, %v1782_v17 }
 0x2b5   : > { %11478 = vst [vmem:[#allocation132_spill] sm:$0xff] %v9228_v44 }
 0x2b6   : > { %6687 = vmatpush1.bf16.msra.mxu0 %v9216_v39  ;;  %v1775_v39 = vld [vmem:[#allocation2 + $0xbb0] sm:$0xff]  ;;  %11483 = vst [vmem:[#allocation137_spill] sm:$0xff] %v9243_v32 }
 0x2b7   : > { %6689 = vmatprep.subr.bf16.mxu0 %v9219_v50  ;;  %v9234_v9 = vpack.c.bf16 %v1775_v39, %v1773_v13  ;;  %v1777_v50 = vld [vmem:[#allocation2 + $0xbc0] sm:$0xff]  ;;  %v2162_v13 = vld [vmem:[#allocation2 + $0xe08] sm:$0xff]  ;;  %v2164_v39 = vld [vmem:[#allocation2 + $0xe18] sm:$0xff] }
 0x2b8   : > { %v9249_v7 = vpack.c.bf16 %v2164_v39, %v2162_v13  ;;  %v2171_v39 = vld [vmem:[#allocation2 + $0xe50] sm:$0xff] }
 0x2b9   : > { %11480 = vst [vmem:[#allocation134_spill] sm:$0xff] %v9234_v9 }
 0x2ba   : > { %6691 = vmatpush1.bf16.msra.mxu0 %v9222_v33  ;;  %v1779_v33 = vld [vmem:[#allocation2 + $0xbd0] sm:$0xff]  ;;  %11485 = vst [vmem:[#allocation139_spill] sm:$0xff] %v9249_v7 }
 0x2bb   : > { %6693 = vmatprep.subr.bf16.mxu0 %v9225_v6  ;;  %v9240_v52 = vpack.c.bf16 %v1779_v33, %v1777_v50  ;;  %v1781_v6 = vld [vmem:[#allocation2 + $0xbe0] sm:$0xff]  ;;  %v2166_v50 = vld [vmem:[#allocation2 + $0xe28] sm:$0xff]  ;;  %v2168_v33 = vld [vmem:[#allocation2 + $0xe38] sm:$0xff] }
 0x2bc   : > { %v9255_v18 = vpack.c.bf16 %v2168_v33, %v2166_v50  ;;  %v2174_v50 = vld [vmem:[#allocation2 + $0xe68] sm:$0xff]  ;;  %v2176_v33 = vld [vmem:[#allocation2 + $0xe78] sm:$0xff] }
 0x2bd   : > { %11482 = vst [vmem:[#allocation136_spill] sm:$0xff] %v9240_v52 }
 0x2be   : > { %6695 = vmatpush1.bf16.msra.mxu0 %v9228_v44  ;;  %v1783_v44 = vld [vmem:[#allocation2 + $0xbf0] sm:$0xff]  ;;  %11487 = vst [vmem:[#allocation141_spill] sm:$0xff] %v9255_v18 }
 0x2bf   : > { %6697 = vmatprep.subr.bf16.mxu0 %v9231_v34  ;;  %v9246_v31 = vpack.c.bf16 %v1783_v44, %v1781_v6  ;;  %v2161_v34 = vld [vmem:[#allocation2 + $0xe00] sm:$0xff]  ;;  %v2170_v6 = vld [vmem:[#allocation2 + $0xe48] sm:$0xff]  ;;  %v2172_v44 = vld [vmem:[#allocation2 + $0xe58] sm:$0xff] }
 0x2c1   : > { %11484 = vst [vmem:[#allocation138_spill] sm:$0xff] %v9246_v31 }
 0x2c2   : > { %6699 = vmatpush1.bf16.msra.mxu0 %v9234_v9  ;;  %v2163_v9 = vld [vmem:[#allocation2 + $0xe10] sm:$0xff] }
 0x2c3   : > { %6701 = vmatprep.subr.bf16.mxu0 %v9237_v25  ;;  %v9252_v17 = vpack.c.bf16 %v2163_v9, %v2161_v34  ;;  %v2165_v25 = vld [vmem:[#allocation2 + $0xe20] sm:$0xff]  ;;  %v9263_v34 = vpack.c.bf16 %v2172_v44, %v2170_v6 }
 0x2c4   : > { %v2169_v9 = vld [vmem:[#allocation2 + $0xe40] sm:$0xff] }
 0x2c5   : > { %11486 = vst [vmem:[#allocation140_spill] sm:$0xff] %v9252_v17  ;;  %11489 = vst [vmem:[#allocation143_spill] sm:$0xff] %v9263_v34 }
 0x2c6   : > { %6703 = vmatpush1.bf16.msra.mxu0 %v9240_v52  ;;  %v2167_v52 = vld [vmem:[#allocation2 + $0xe30] sm:$0xff] }
 0x2c7   : > { %6705 = vmatprep.subr.bf16.mxu0 %v9243_v32  ;;  %v9260_v13 = vpack.c.bf16 %v2167_v52, %v2165_v25  ;;  %v2175_v32 = vld [vmem:[#allocation2 + $0xe70] sm:$0xff]  ;;  %v2178_v25 = vld [vmem:[#allocation2 + $0xe88] sm:$0xff]  ;;  %v2180_v52 = vld [vmem:[#allocation2 + $0xe98] sm:$0xff] }
 0x2c8   : > { %v9275_v44 = vpack.c.bf16 %v2180_v52, %v2178_v25 }
 0x2c9   : > { %11488 = vst [vmem:[#allocation142_spill] sm:$0xff] %v9260_v13 }
 0x2ca   : > { %6707 = vmatpush1.bf16.msra.mxu0 %v9246_v31  ;;  %v9269_v31 = vpack.c.bf16 %v2176_v33, %v2174_v50  ;;  %11493 = vst [vmem:[#allocation147_spill] sm:$0xff] %v9275_v44 }
 0x2cb   : > { %6773 = vmatprep.subr.bf16.mxu0 %v9249_v7  ;;  %v9266_v7 = vpack.c.bf16 %v2171_v39, %v2169_v9  ;;  %v2182_v9 = vld [vmem:[#allocation2 + $0xea8] sm:$0xff]  ;;  %v2184_v39 = vld [vmem:[#allocation2 + $0xeb8] sm:$0xff] }
 0x2cc   : > { %11491 = vst [vmem:[#allocation145_spill] sm:$0xff] %v9269_v31  ;;  %v9281_v33 = vpack.c.bf16 %v2184_v39, %v2182_v9  ;;  %v2190_v39 = vld [vmem:[#allocation2 + $0xee8] sm:$0xff] }
 0x2cd   : > { %1850 = vmatmul.mubr.f32.vlgmr.msra.gmra.mrb[12].mxu0 %v8928_v45  ;;  %11490 = vst [vmem:[#allocation144_spill] sm:$0xff] %v9266_v7 }
 0x2ce   : > { %6775 = vmatpush1.bf16.msra.mxu0 %v9252_v17  ;;  %2289 = vmatprep.mubr.f32.mxu0 %v8924_v40  ;;  %v2173_v17 = vld [vmem:[#allocation2 + $0xe60] sm:$0xff]  ;;  %11495 = vst [vmem:[#allocation149_spill] sm:$0xff] %v9281_v33 }
 0x2cf   : > { %6777 = vmatprep.subr.bf16.mxu0 %v9255_v18  ;;  %v9272_v6 = vpack.c.bf16 %v2175_v32, %v2173_v17  ;;  %v2177_v18 = vld [vmem:[#allocation2 + $0xe80] sm:$0xff]  ;;  %v2186_v32 = vld [vmem:[#allocation2 + $0xec8] sm:$0xff]  ;;  %v2188_v17 = vld [vmem:[#allocation2 + $0xed8] sm:$0xff] }
 0x2d1   : > { %11492 = vst [vmem:[#allocation146_spill] sm:$0xff] %v9272_v6 }
 0x2d2   : > { %6779 = vmatpush1.bf16.msra.mxu0 %v9260_v13  ;;  %v2179_v13 = vld [vmem:[#allocation2 + $0xe90] sm:$0xff] }
 0x2d3   : > { %6781 = vmatprep.subr.bf16.mxu0 %v9263_v34  ;;  %v9278_v50 = vpack.c.bf16 %v2179_v13, %v2177_v18  ;;  %v2181_v34 = vld [vmem:[#allocation2 + $0xea0] sm:$0xff]  ;;  %v2187_v18 = vld [vmem:[#allocation2 + $0xed0] sm:$0xff] }
 0x2d5   : > { %11494 = vst [vmem:[#allocation148_spill] sm:$0xff] %v9278_v50 }
 0x2d6   : > { %6783 = vmatpush1.bf16.msra.mxu0 %v9266_v7  ;;  %v2183_v7 = vld [vmem:[#allocation2 + $0xeb0] sm:$0xff] }
 0x2d7   : > { %6785 = vmatprep.subr.bf16.mxu0 %v9269_v31  ;;  %v9284_v25 = vpack.c.bf16 %v2183_v7, %v2181_v34  ;;  %v9287_v31 = vpack.c.bf16 %v2188_v17, %v2186_v32  ;;  %v2189_v32 = vld [vmem:[#allocation2 + $0xee0] sm:$0xff]  ;;  %v2191_v17 = vld [vmem:[#allocation2 + $0xef0] sm:$0xff] }
 0x2d9   : > { %11496 = vst [vmem:[#allocation150_spill] sm:$0xff] %v9284_v25  ;;  %11497 = vst [vmem:[#allocation151_spill] sm:$0xff] %v9287_v31 }
 0x2da   : > { %6787 = vmatpush1.bf16.msra.mxu0 %v9272_v6  ;;  %v2185_v6 = vld [vmem:[#allocation2 + $0xec0] sm:$0xff] }
 0x2db   : > { %6789 = vmatprep.subr.bf16.mxu0 %v9275_v44  ;;  %v2192_v44 = vld [vmem:[#allocation2 + $0xef8] sm:$0xff]  ;;  %v9296_v7 = vpack.c.bf16 %v2187_v18, %v2185_v6  ;;  %v2198_v6 = vld [vmem:[#allocation2 + $0xf28] sm:$0xff] }
 0x2dc   : > { %v9299_v34 = vpack.c.bf16 %v2192_v44, %v2190_v39  ;;  %v2200_v18 = vld [vmem:[#allocation2 + $0xf38] sm:$0xff] }
 0x2dd   : > { %11498 = vst [vmem:[#allocation152_spill] sm:$0xff] %v9296_v7  ;;  %v9311_v39 = vpack.c.bf16 %v2200_v18, %v2198_v6 }
 0x2de   : > { %6791 = vmatpush1.bf16.msra.mxu0 %v9278_v50  ;;  %11499 = vst [vmem:[#allocation153_spill] sm:$0xff] %v9299_v34  ;;  %v2196_v50 = vld [vmem:[#allocation2 + $0xf18] sm:$0xff] }
 0x2df   : > { %v973_v52 = vpop.f32.mrb[6].mxu0  ;;  %6793 = vmatprep.subr.bf16.mxu0 %v9281_v33  ;;  %v2194_v33 = vld [vmem:[#allocation2 + $0xf08] sm:$0xff]  ;;  %11503 = vst [vmem:[#allocation157_spill] sm:$0xff] %v9311_v39 }
 0x2e0   : > { %v9290_v13 = vadd.f32 %v9038_v10, %v973_v52  ;;  %v975_v9 = vpop.f32.mrb[7].mxu0  ;;  %v9302_v10 = vpack.c.bf16 %v2191_v17, %v2189_v32  ;;  %v2193_v52 = vld [vmem:[#allocation2 + $0xf00] sm:$0xff]  ;;  %v2202_v32 = vld [vmem:[#allocation2 + $0xf48] sm:$0xff]  ;;  %v2204_v17 = vld [vmem:[#allocation2 + $0xf58] sm:$0xff] }
 0x2e1   : > { %v9293_v0 = vadd.f32 %v9044_v49, %v975_v9  ;;  %v9305_v49 = vpack.c.bf16 %v2196_v50, %v2194_v33  ;;  %v2195_v9 = vld [vmem:[#allocation2 + $0xf10] sm:$0xff]  ;;  %v9317_v33 = vpack.c.bf16 %v2204_v17, %v2202_v32 }
 0x2e2   : > { %6795 = vmatpush1.bf16.msra.mxu0 %v9284_v25  ;;  %11500 = vst [vmem:[#allocation154_spill] sm:$0xff] %v9302_v10  ;;  %v9308_v44 = vpack.c.bf16 %v2195_v9, %v2193_v52  ;;  %v2206_v52 = vld [vmem:[#allocation2 + $0xf68] sm:$0xff]  ;;  %v2208_v9 = vld [vmem:[#allocation2 + $0xf78] sm:$0xff] }
 0x2e3   : > { %6797 = vmatprep.subr.bf16.mxu0 %v9287_v31  ;;  %11501 = vst [vmem:[#allocation155_spill] sm:$0xff] %v9305_v49  ;;  %v2197_v31 = vld [vmem:[#allocation2 + $0xf20] sm:$0xff]  ;;  %11505 = vst [vmem:[#allocation159_spill] sm:$0xff] %v9317_v33  ;;  %v9323_v18 = vpack.c.bf16 %v2208_v9, %v2206_v52 }
 0x2e4   : > { %11502 = vst [vmem:[#allocation156_spill] sm:$0xff] %v9308_v44 }
 0x2e5   : > { %11507 = vst [vmem:[#allocation161_spill] sm:$0xff] %v9323_v18 }
 0x2e6   : > { %6799 = vmatpush1.bf16.msra.mxu0 %v9296_v7  ;;  %v2199_v7 = vld [vmem:[#allocation2 + $0xf30] sm:$0xff] }
 0x2e7   : > { %6801 = vmatprep.subr.bf16.mxu0 %v9299_v34  ;;  %v9314_v50 = vpack.c.bf16 %v2199_v7, %v2197_v31  ;;  %v2201_v34 = vld [vmem:[#allocation2 + $0xf40] sm:$0xff]  ;;  %v2210_v31 = vld [vmem:[#allocation2 + $0xf88] sm:$0xff]  ;;  %v2212_v7 = vld [vmem:[#allocation2 + $0xf98] sm:$0xff] }
 0x2e8   : > { %v9329_v17 = vpack.c.bf16 %v2212_v7, %v2210_v31 }
 0x2e9   : > { %11504 = vst [vmem:[#allocation158_spill] sm:$0xff] %v9314_v50 }
 0x2ea   : > { %6803 = vmatpush1.bf16.msra.mxu0 %v9302_v10  ;;  %v2203_v10 = vld [vmem:[#allocation2 + $0xf50] sm:$0xff]  ;;  %11509 = vst [vmem:[#allocation163_spill] sm:$0xff] %v9329_v17 }
 0x2eb   : > { %6805 = vmatprep.subr.bf16.mxu0 %v9305_v49  ;;  %v9320_v6 = vpack.c.bf16 %v2203_v10, %v2201_v34  ;;  %v2205_v49 = vld [vmem:[#allocation2 + $0xf60] sm:$0xff]  ;;  %v2214_v34 = vld [vmem:[#allocation2 + $0xfa8] sm:$0xff]  ;;  %v2216_v10 = vld [vmem:[#allocation2 + $0xfb8] sm:$0xff] }
 0x2ec   : > { %v9335_v9 = vpack.c.bf16 %v2216_v10, %v2214_v34 }
 0x2ed   : > { %11506 = vst [vmem:[#allocation160_spill] sm:$0xff] %v9320_v6 }
 0x2ee   : > { %6807 = vmatpush1.bf16.msra.mxu0 %v9308_v44  ;;  %v2207_v44 = vld [vmem:[#allocation2 + $0xf70] sm:$0xff]  ;;  %11511 = vst [vmem:[#allocation165_spill] sm:$0xff] %v9335_v9 }
 0x2ef   : > { %6809 = vmatprep.subr.bf16.mxu0 %v9311_v39  ;;  %v9326_v32 = vpack.c.bf16 %v2207_v44, %v2205_v49  ;;  %v2209_v39 = vld [vmem:[#allocation2 + $0xf80] sm:$0xff]  ;;  %v2218_v49 = vld [vmem:[#allocation2 + $0xfc8] sm:$0xff]  ;;  %v2220_v44 = vld [vmem:[#allocation2 + $0xfd8] sm:$0xff] }
 0x2f0   : > { %v9341_v7 = vpack.c.bf16 %v2220_v44, %v2218_v49 }
 0x2f1   : > { %11508 = vst [vmem:[#allocation162_spill] sm:$0xff] %v9326_v32 }
 0x2f2   : > { %6811 = vmatpush1.bf16.msra.mxu0 %v9314_v50  ;;  %v2211_v50 = vld [vmem:[#allocation2 + $0xf90] sm:$0xff]  ;;  %11513 = vst [vmem:[#allocation167_spill] sm:$0xff] %v9341_v7 }
 0x2f3   : > { %6813 = vmatprep.subr.bf16.mxu0 %v9317_v33  ;;  %v9332_v52 = vpack.c.bf16 %v2211_v50, %v2209_v39  ;;  %v2213_v33 = vld [vmem:[#allocation2 + $0xfa0] sm:$0xff]  ;;  %v2219_v39 = vld [vmem:[#allocation2 + $0xfd0] sm:$0xff]  ;;  %v2222_v50 = vld [vmem:[#allocation2 + $0xfe8] sm:$0xff] }
 0x2f5   : > { %11510 = vst [vmem:[#allocation164_spill] sm:$0xff] %v9332_v52 }
 0x2f6   : > { %6815 = vmatpush1.bf16.msra.mxu0 %v9320_v6  ;;  %v2215_v6 = vld [vmem:[#allocation2 + $0xfb0] sm:$0xff] }
 0x2f7   : > { %6817 = vmatprep.subr.bf16.mxu0 %v9323_v18  ;;  %v9338_v31 = vpack.c.bf16 %v2215_v6, %v2213_v33  ;;  %v2217_v18 = vld [vmem:[#allocation2 + $0xfc0] sm:$0xff]  ;;  %v2223_v33 = vld [vmem:[#allocation2 + $0xff0] sm:$0xff] }
 0x2f8   : > { %v9344_v34 = vpack.c.bf16 %v2219_v39, %v2217_v18  ;;  %v8520_v18 = vld [vmem:[%s8784_s18] sm:$0xff] }
 0x2f9   : > { %11512 = vst [vmem:[#allocation166_spill] sm:$0xff] %v9338_v31 }
 0x2fa   : > { %6819 = vmatpush1.bf16.msra.mxu0 %v9326_v32  ;;  %v2224_v32 = vld [vmem:[#allocation2 + $0xff8] sm:$0xff]  ;;  %11514 = vst [vmem:[#allocation168_spill] sm:$0xff] %v9344_v34 }
 0x2fb   : > { %6821 = vmatprep.subr.bf16.mxu0 %v9329_v17  ;;  %v9347_v10 = vpack.c.bf16 %v2224_v32, %v2222_v50  ;;  %v2608_v32 = vld [vmem:[%s10816_s9] sm:$0x3] }
 0x2fc   : > { %v1501_v50 = vld [vmem:[#allocation2 + $0x600] sm:$0xff] }
 0x2fd   : > { %11515 = vst [vmem:[#allocation169_spill] sm:$0xff] %v9347_v10 }
 0x2fe   : > { %6823 = vmatpush1.bf16.msra.mxu0 %v9332_v52  ;;  %v2221_v52 = vld [vmem:[#allocation2 + $0xfe0] sm:$0xff] }
 0x2ff   : > { %6825 = vmatprep.subr.bf16.mxu0 %v9335_v9  ;;  %v9350_v6 = vpack.c.bf16 %v2223_v33, %v2221_v52  ;;  %v1503_v33 = vld [vmem:[#allocation2 + $0x610] sm:$0xff] }
 0x301   : > { %11516 = vst [vmem:[#allocation170_spill] sm:$0xff] %v9350_v6 }
 0x302   : > { %6827 = vmatpush1.bf16.msra.mxu0 %v9338_v31 }
 0x303   : > { %6829 = vmatprep.subr.bf16.mxu0 %v9341_v7 }
 0x306   : > { %6831 = vmatpush1.bf16.msra.mxu0 %v9344_v34 }
 0x307   : > { %6833 = vmatprep.subr.bf16.mxu0 %v9347_v10 }
 0x30a   : > { %6835 = vmatpush1.bf16.msra.mxu0 %v9350_v6 }
 0x30b   : > { %6308 = vmatprep.subr.msk.mxu0 %vm597_vm0, %v8787_v3 }
 0x30d   : > { %2290 = vmatmul.mubr.f32.vlgmr.msra.gmra.mrb[14].mxu0 %v8928_v45 }
 0x30e   : > { %6309 = vmatpush1.msk.msra.mxu0 %vm597_vm0, %v8520_v18  ;;  %2682 = vmatprep.mubr.f32.mxu0 %v11420_v21  ;;  %v1506_v18 = vld [vmem:[#allocation2 + $0x628] sm:$0xff] }
 0x30f   : > { %6901 = vmatprep.subr.bf16.mxu0 %v8797_v8 }
 0x311   : > { %6310 = vmatmul.mubr.msk.f32.vlgmr.msra.gmra.mrb[16].mxu0 %vm593_vm1, %v2608_v32  ;;  %v1508_v32 = vld [vmem:[#allocation2 + $0x638] sm:$0xff] }
 0x312   : > { %6903 = vmatpush1.bf16.msra.mxu0 %v8811_v15  ;;  %v1563_v15 = vld [vmem:[#allocation2 + $0x7f0] sm:$0xff] }
 0x313   : > { %6905 = vmatprep.subr.bf16.mxu0 %v8814_v16  ;;  %v1561_v16 = vld [vmem:[#allocation2 + $0x7e0] sm:$0xff] }
 0x316   : > { %6907 = vmatpush1.bf16.msra.mxu0 %v8821_v22  ;;  %v1559_v22 = vld [vmem:[#allocation2 + $0x7d0] sm:$0xff] }
 0x317   : > { %6909 = vmatprep.subr.bf16.mxu0 %v8824_v23  ;;  %v1557_v23 = vld [vmem:[#allocation2 + $0x7c0] sm:$0xff] }
 0x31a   : > { %6911 = vmatpush1.bf16.msra.mxu0 %v8830_v29  ;;  %v1555_v29 = vld [vmem:[#allocation2 + $0x7b0] sm:$0xff] }
 0x31b   : > { %6913 = vmatprep.subr.bf16.mxu0 %v8833_v30  ;;  %v1553_v30 = vld [vmem:[#allocation2 + $0x7a0] sm:$0xff] }
 0x31e   : > { %6915 = vmatpush1.bf16.msra.mxu0 %v8836_v35  ;;  %v1551_v35 = vld [vmem:[#allocation2 + $0x790] sm:$0xff] }
 0x31f   : > { %6917 = vmatprep.subr.bf16.mxu0 %v8839_v36  ;;  %v1549_v36 = vld [vmem:[#allocation2 + $0x780] sm:$0xff] }
 0x320   : > { %v1271_v52 = vpop.f32.mrb[8].mxu0 }
 0x321   : > { %v9374_v49 = vadd.f32 %v1271_v52, %v9290_v13  ;;  %v1273_v44 = vpop.f32.mrb[9].mxu0  ;;  %v1504_v13 = vld [vmem:[#allocation2 + $0x618] sm:$0xff] }
 0x322   : > { %v9377_v39 = vadd.f32 %v1273_v44, %v9293_v0  ;;  %6919 = vmatpush1.bf16.msra.mxu0 %v8842_v41  ;;  %v1502_v0 = vld [vmem:[#allocation2 + $0x608] sm:$0xff]  ;;  %v1547_v41 = vld [vmem:[#allocation2 + $0x770] sm:$0xff] }
 0x323   : > { %6921 = vmatprep.subr.bf16.mxu0 %v8845_v42  ;;  %v9403_v44 = vpack.c.bf16 %v1504_v13, %v1502_v0  ;;  %v1509_v13 = vld [vmem:[#allocation2 + $0x640] sm:$0xff] }
 0x324   : > { %v1545_v42 = vld [vmem:[#allocation2 + $0x760] sm:$0xff] }
 0x326   : > { %6923 = vmatpush1.bf16.msra.mxu0 %v8848_v47  ;;  %v1543_v47 = vld [vmem:[#allocation2 + $0x750] sm:$0xff] }
 0x327   : > { %6925 = vmatprep.subr.bf16.mxu0 %v8851_v48  ;;  %v1541_v48 = vld [vmem:[#allocation2 + $0x740] sm:$0xff] }
 0x32a   : > { %6927 = vmatpush1.bf16.msra.mxu0 %v8854_v53  ;;  %v1539_v53 = vld [vmem:[#allocation2 + $0x730] sm:$0xff] }
 0x32b   : > { %6929 = vmatprep.subr.bf16.mxu0 %v8857_v54  ;;  %v1537_v54 = vld [vmem:[#allocation2 + $0x720] sm:$0xff] }
 0x32e   : > { %6931 = vmatpush1.bf16.msra.mxu0 %v8860_v59  ;;  %v1535_v59 = vld [vmem:[#allocation2 + $0x710] sm:$0xff] }
 0x32f   : > { %6933 = vmatprep.subr.bf16.mxu0 %v8863_v60  ;;  %v1533_v60 = vld [vmem:[#allocation2 + $0x700] sm:$0xff] }
 0x332   : > { %6935 = vmatpush1.bf16.msra.mxu0 %v8866_v4  ;;  %v1531_v4 = vld [vmem:[#allocation2 + $0x6f0] sm:$0xff] }
 0x333   : > { %6937 = vmatprep.subr.bf16.mxu0 %v8869_v5  ;;  %v1529_v5 = vld [vmem:[#allocation2 + $0x6e0] sm:$0xff] }
 0x336   : > { %6939 = vmatpush1.bf16.msra.mxu0 %v8872_v11  ;;  %v1527_v11 = vld [vmem:[#allocation2 + $0x6d0] sm:$0xff] }
 0x337   : > { %6941 = vmatprep.subr.bf16.mxu0 %v8875_v12  ;;  %v1525_v12 = vld [vmem:[#allocation2 + $0x6c0] sm:$0xff] }
 0x33a   : > { %6943 = vmatpush1.bf16.msra.mxu0 %v8878_v19  ;;  %v1523_v19 = vld [vmem:[#allocation2 + $0x6b0] sm:$0xff] }
 0x33b   : > { %6945 = vmatprep.subr.bf16.mxu0 %v8881_v20  ;;  %v1521_v20 = vld [vmem:[#allocation2 + $0x6a0] sm:$0xff] }
 0x33e   : > { %6947 = vmatpush1.bf16.msra.mxu0 %v8884_v27  ;;  %v1519_v27 = vld [vmem:[#allocation2 + $0x690] sm:$0xff] }
 0x33f   : > { %6949 = vmatprep.subr.bf16.mxu0 %v8887_v28  ;;  %v1517_v28 = vld [vmem:[#allocation2 + $0x680] sm:$0xff] }
 0x342   : > { %6951 = vmatpush1.bf16.msra.mxu0 %v8890_v37  ;;  %v1515_v37 = vld [vmem:[#allocation2 + $0x670] sm:$0xff] }
 0x343   : > { %6953 = vmatprep.subr.bf16.mxu0 %v8893_v38  ;;  %v1512_v38 = vld [vmem:[#allocation2 + $0x658] sm:$0xff] }
 0x346   : > { %6955 = vmatpush1.bf16.msra.mxu0 %v8897_v43  ;;  %v1510_v43 = vld [vmem:[#allocation2 + $0x648] sm:$0xff] }
 0x347   : > { %6957 = vmatprep.subr.bf16.mxu0 %v8900_v46  ;;  %v9408_v46 = vpack.c.bf16 %v1503_v33, %v1501_v50  ;;  %v1511_v50 = vld [vmem:[#allocation2 + $0x650] sm:$0xff]  ;;  %v1514_v33 = vld [vmem:[#allocation2 + $0x668] sm:$0xff] }
 0x34a   : > { %6959 = vmatpush1.bf16.msra.mxu0 %v8902_v51  ;;  %v6284_v51 = vld [vmem:[%s10814_s7 + $0x4] sm:$0x3] }
 0x34b   : > { %6961 = vmatprep.subr.bf16.mxu0 %v8906_v56  ;;  %v1507_v56 = vld [vmem:[#allocation2 + $0x630] sm:$0xff] }
 0x34e   : > { %6963 = vmatpush1.bf16.msra.mxu0 %v8908_v61  ;;  %v9411_v61 = vpack.c.bf16 %v1508_v32, %v1506_v18  ;;  %v1516_v18 = vld [vmem:[#allocation2 + $0x678] sm:$0xff]  ;;  %v9424_v32 = vpack.c.bf16 %v1511_v50, %v1509_v13  ;;  %v1522_v13 = vld [vmem:[#allocation2 + $0x6a8] sm:$0xff] }
 0x34f   : > { %7029 = vmatprep.subr.bf16.mxu0 %v9049_v2  ;;  %v1505_v2 = vld [vmem:[#allocation2 + $0x620] sm:$0xff]  ;;  %v1524_v50 = vld [vmem:[#allocation2 + $0x6b8] sm:$0xff] }
 0x350   : > { %v9418_v0 = vpack.c.bf16 %v1507_v56, %v1505_v2  ;;  %v1518_v56 = vld [vmem:[#allocation2 + $0x688] sm:$0xff]  ;;  %v1520_v2 = vld [vmem:[#allocation2 + $0x698] sm:$0xff] }
 0x360   : > { %v1411_v52 = vpop.f32.mrb[10].mxu0 }
 0x361   : > { %v1413_v3 = vpop.f32.mrb[11].mxu0 }
 0x362   : > { %6285 = vmatprep.subr.msk.mxu1 %vm900_vm2, %v1413_v3  ;;  %v9421_v3 = vpack.c.bf16 %v1512_v38, %v1510_v43  ;;  %v9433_v43 = vpack.c.bf16 %v1520_v2, %v1518_v56  ;;  %v9442_v56 = vpack.c.bf16 %v1523_v19, %v1521_v20  ;;  %v1534_v19 = vld [vmem:[#allocation2 + $0x708] sm:$0xff]  ;;  %v1536_v20 = vld [vmem:[#allocation2 + $0x718] sm:$0xff] }
 0x363   : > { %6286 = vmatpush1.msk.msra.mxu1 %vm900_vm2, %v1411_v52  ;;  %v1513_v52 = vld [vmem:[#allocation2 + $0x660] sm:$0xff] }
 0x364   : > { %6287 = vmatmul.mubr.msk.f32.vlgmr.msra.gmra.mrb[4].mxu1 %vm896_vm3, %v6284_v51  ;;  %6581 = vmatprep.subr.bf16.mxu1 %v9403_v44  ;;  %v9427_v51 = vpack.c.bf16 %v1516_v18, %v1514_v33  ;;  %v9430_v38 = vpack.c.bf16 %v1515_v37, %v1513_v52  ;;  %v9436_v33 = vpack.c.bf16 %v1519_v27, %v1517_v28  ;;  %v1526_v37 = vld [vmem:[#allocation2 + $0x6c8] sm:$0xff]  ;;  %v1528_v52 = vld [vmem:[#allocation2 + $0x6d8] sm:$0xff] }
 0x365   : > { %6583 = vmatpush1.bf16.msra.mxu1 %v9408_v46  ;;  %1629 = vmatprep.mubr.f32.mxu1 %v8924_v40  ;;  %v9439_v18 = vpack.c.bf16 %v1524_v50, %v1522_v13  ;;  %v9445_v2 = vpack.c.bf16 %v1528_v52, %v1526_v37  ;;  %v1530_v27 = vld [vmem:[#allocation2 + $0x6e8] sm:$0xff]  ;;  %v1532_v28 = vld [vmem:[#allocation2 + $0x6f8] sm:$0xff]  ;;  %v9448_v13 = vpack.c.bf16 %v1527_v11, %v1525_v12 }
 0x366   : > { %6585 = vmatprep.subr.bf16.mxu1 %v9411_v61  ;;  %v9451_v50 = vpack.c.bf16 %v1532_v28, %v1530_v27  ;;  %v9454_v37 = vpack.c.bf16 %v1531_v4, %v1529_v5  ;;  %v9457_v52 = vpack.c.bf16 %v1536_v20, %v1534_v19  ;;  %v1538_v11 = vld [vmem:[#allocation2 + $0x728] sm:$0xff]  ;;  %v1540_v12 = vld [vmem:[#allocation2 + $0x738] sm:$0xff]  ;;  %v9460_v27 = vpack.c.bf16 %v1535_v59, %v1533_v60 }
 0x367   : > { %11517 = vst [vmem:[#allocation171_spill] sm:$0xff] %v9445_v2  ;;  %11518 = vst [vmem:[#allocation172_spill] sm:$0xff] %v9448_v13  ;;  %v9463_v28 = vpack.c.bf16 %v1540_v12, %v1538_v11  ;;  %v1542_v4 = vld [vmem:[#allocation2 + $0x748] sm:$0xff]  ;;  %v1544_v5 = vld [vmem:[#allocation2 + $0x758] sm:$0xff]  ;;  %v9466_v19 = vpack.c.bf16 %v1539_v53, %v1537_v54  ;;  %v9472_v11 = vpack.c.bf16 %v1543_v47, %v1541_v48 }
 0x368   : > { %11519 = vst [vmem:[#allocation173_spill] sm:$0xff] %v9451_v50  ;;  %11520 = vst [vmem:[#allocation174_spill] sm:$0xff] %v9454_v37  ;;  %v9469_v20 = vpack.c.bf16 %v1544_v5, %v1542_v4  ;;  %v1546_v59 = vld [vmem:[#allocation2 + $0x768] sm:$0xff]  ;;  %v1548_v60 = vld [vmem:[#allocation2 + $0x778] sm:$0xff]  ;;  %v9478_v4 = vpack.c.bf16 %v1547_v41, %v1545_v42 }
 0x369   : > { %6587 = vmatpush1.bf16.msra.mxu1 %v9418_v0  ;;  %11521 = vst [vmem:[#allocation175_spill] sm:$0xff] %v9457_v52  ;;  %11522 = vst [vmem:[#allocation176_spill] sm:$0xff] %v9460_v27  ;;  %v9475_v12 = vpack.c.bf16 %v1548_v60, %v1546_v59  ;;  %v1550_v53 = vld [vmem:[#allocation2 + $0x788] sm:$0xff]  ;;  %v1552_v54 = vld [vmem:[#allocation2 + $0x798] sm:$0xff]  ;;  %v9484_v59 = vpack.c.bf16 %v1551_v35, %v1549_v36 }
 0x36a   : > { %6589 = vmatprep.subr.bf16.mxu1 %v9421_v3  ;;  %11523 = vst [vmem:[#allocation177_spill] sm:$0xff] %v9463_v28  ;;  %11524 = vst [vmem:[#allocation178_spill] sm:$0xff] %v9466_v19  ;;  %v9481_v5 = vpack.c.bf16 %v1552_v54, %v1550_v53  ;;  %v1554_v47 = vld [vmem:[#allocation2 + $0x7a8] sm:$0xff]  ;;  %v1556_v48 = vld [vmem:[#allocation2 + $0x7b8] sm:$0xff]  ;;  %v9490_v53 = vpack.c.bf16 %v1555_v29, %v1553_v30  ;;  %v9502_v29 = vpack.c.bf16 %v1563_v15, %v1561_v16 }
 0x36b   : > { %11525 = vst [vmem:[#allocation179_spill] sm:$0xff] %v9469_v20  ;;  %11526 = vst [vmem:[#allocation180_spill] sm:$0xff] %v9472_v11  ;;  %v9487_v60 = vpack.c.bf16 %v1556_v48, %v1554_v47  ;;  %v1558_v41 = vld [vmem:[#allocation2 + $0x7c8] sm:$0xff]  ;;  %v1560_v42 = vld [vmem:[#allocation2 + $0x7d8] sm:$0xff]  ;;  %v9496_v47 = vpack.c.bf16 %v1559_v22, %v1557_v23 }
 0x36c   : > { %11527 = vst [vmem:[#allocation181_spill] sm:$0xff] %v9475_v12  ;;  %11528 = vst [vmem:[#allocation182_spill] sm:$0xff] %v9478_v4  ;;  %v9493_v54 = vpack.c.bf16 %v1560_v42, %v1558_v41  ;;  %v1562_v35 = vld [vmem:[#allocation2 + $0x7e8] sm:$0xff]  ;;  %v1564_v36 = vld [vmem:[#allocation2 + $0x7f8] sm:$0xff] }
 0x36d   : > { %6591 = vmatpush1.bf16.msra.mxu1 %v9424_v32  ;;  %11529 = vst [vmem:[#allocation183_spill] sm:$0xff] %v9481_v5  ;;  %11530 = vst [vmem:[#allocation184_spill] sm:$0xff] %v9484_v59  ;;  %v9499_v48 = vpack.c.bf16 %v1564_v36, %v1562_v35 }
 0x36e   : > { %6593 = vmatprep.subr.bf16.mxu1 %v9427_v51  ;;  %11531 = vst [vmem:[#allocation185_spill] sm:$0xff] %v9487_v60  ;;  %11532 = vst [vmem:[#allocation186_spill] sm:$0xff] %v9490_v53 }
 0x36f   : > { %11533 = vst [vmem:[#allocation187_spill] sm:$0xff] %v9493_v54  ;;  %11534 = vst [vmem:[#allocation188_spill] sm:$0xff] %v9496_v47 }
 0x370   : > { %11535 = vst [vmem:[#allocation189_spill] sm:$0xff] %v9499_v48  ;;  %11536 = vst [vmem:[#allocation190_spill] sm:$0xff] %v9502_v29 }
 0x371   : > { %6595 = vmatpush1.bf16.msra.mxu1 %v9430_v38 }
 0x372   : > { %6597 = vmatprep.subr.bf16.mxu1 %v9433_v43 }
 0x375   : > { %6599 = vmatpush1.bf16.msra.mxu1 %v9436_v33 }
 0x376   : > { %6601 = vmatprep.subr.bf16.mxu1 %v9439_v18 }
 0x379   : > { %6603 = vmatpush1.bf16.msra.mxu1 %v9442_v56 }
 0x37a   : > { %6605 = vmatprep.subr.bf16.mxu1 %v9445_v2  ;;  %v2443_v2 = vld [vmem:[#allocation2 + $0x11f0] sm:$0xff] }
 0x37d   : > { %6607 = vmatpush1.bf16.msra.mxu1 %v9448_v13  ;;  %v2441_v13 = vld [vmem:[#allocation2 + $0x11e0] sm:$0xff] }
 0x37e   : > { %6609 = vmatprep.subr.bf16.mxu1 %v9451_v50  ;;  %v2439_v50 = vld [vmem:[#allocation2 + $0x11d0] sm:$0xff] }
 0x381   : > { %6611 = vmatpush1.bf16.msra.mxu1 %v9454_v37  ;;  %v2437_v37 = vld [vmem:[#allocation2 + $0x11c0] sm:$0xff] }
 0x382   : > { %6613 = vmatprep.subr.bf16.mxu1 %v9457_v52  ;;  %v2435_v52 = vld [vmem:[#allocation2 + $0x11b0] sm:$0xff] }
 0x385   : > { %6615 = vmatpush1.bf16.msra.mxu1 %v9460_v27  ;;  %v2433_v27 = vld [vmem:[#allocation2 + $0x11a0] sm:$0xff] }
 0x386   : > { %6617 = vmatprep.subr.bf16.mxu1 %v9463_v28  ;;  %v2431_v28 = vld [vmem:[#allocation2 + $0x1190] sm:$0xff] }
 0x389   : > { %6619 = vmatpush1.bf16.msra.mxu1 %v9466_v19  ;;  %v2429_v19 = vld [vmem:[#allocation2 + $0x1180] sm:$0xff] }
 0x38a   : > { %6621 = vmatprep.subr.bf16.mxu1 %v9469_v20  ;;  %v2427_v20 = vld [vmem:[#allocation2 + $0x1170] sm:$0xff] }
 0x38d   : > { %6623 = vmatpush1.bf16.msra.mxu1 %v9472_v11  ;;  %v2425_v11 = vld [vmem:[#allocation2 + $0x1160] sm:$0xff] }
 0x38e   : > { %6625 = vmatprep.subr.bf16.mxu1 %v9475_v12  ;;  %v2423_v12 = vld [vmem:[#allocation2 + $0x1150] sm:$0xff] }
 0x391   : > { %6627 = vmatpush1.bf16.msra.mxu1 %v9478_v4  ;;  %v2421_v4 = vld [vmem:[#allocation2 + $0x1140] sm:$0xff] }
 0x392   : > { %6629 = vmatprep.subr.bf16.mxu1 %v9481_v5  ;;  %v2424_v5 = vld [vmem:[#allocation2 + $0x1158] sm:$0xff] }
 0x395   : > { %6631 = vmatpush1.bf16.msra.mxu1 %v9484_v59  ;;  %v2422_v59 = vld [vmem:[#allocation2 + $0x1148] sm:$0xff] }
 0x396   : > { %6633 = vmatprep.subr.bf16.mxu1 %v9487_v60 }
 0x399   : > { %6635 = vmatpush1.bf16.msra.mxu1 %v9490_v53  ;;  %v2404_v53 = vld [vmem:[#allocation2 + $0x10b8] sm:$0xff] }
 0x39a   : > { %6637 = vmatprep.subr.bf16.mxu1 %v9493_v54  ;;  %v2402_v54 = vld [vmem:[#allocation2 + $0x10a8] sm:$0xff] }
 0x39d   : > { %6639 = vmatpush1.bf16.msra.mxu1 %v9496_v47  ;;  %v2400_v47 = vld [vmem:[#allocation2 + $0x1098] sm:$0xff] }
 0x39e   : > { %6641 = vmatprep.subr.bf16.mxu1 %v9499_v48  ;;  %v2398_v48 = vld [vmem:[#allocation2 + $0x1088] sm:$0xff] }
 0x3a0   : > { %v9505_v30 = vpop.f32.mrb[12].mxu0 }
 0x3a1   : > { %6643 = vmatpush1.bf16.msra.mxu1 %v9502_v29  ;;  %v9508_v41 = vpop.f32.mrb[13].mxu0  ;;  %v1998_v29 = vld [vmem:[#allocation2 + $0xdc8] sm:$0xff] }
 0x3a4   : > { %1630 = vmatmul.mubr.f32.vlgmr.msra.gmra.mrb[6].mxu1 %v8928_v45 }
 0x3a5   : > { %1709 = vmatprep.mubr.f32.mxu1 %v11420_v21 }
 0x3e0   : > { %v9512_v22 = vpop.f32.mrb[14].mxu0 }
 0x3e1   : > { %v9514_v23 = vpop.f32.mrb[15].mxu0 }
 0x3e4   : > { %v2684_v42 = vpop.f32.mrb[16].mxu0 }
 0x3e5   : > { %v2685_v15 = vadd.f32 %v2684_v42, %v8912_v63  ;;  %v2686_v16 = vpop.f32.mrb[17].mxu0  ;;  %v11538_v42 = vld [vmem:[#allocation85_spill] sm:$0xff] }
 0x3e6   : > { %v2687_v35 = vadd.f32 %v2686_v16, %v8912_v63  ;;  %v11537_v63 = vld [vmem:[#allocation84_spill] sm:$0xff]  ;;  %v11540_v16 = vld [vmem:[#allocation87_spill] sm:$0xff] }
 0x3e7   : > { %v9520_v8 = vmax.f32 %v2685_v15, 0.0  ;;  %v11539_v15 = vld [vmem:[#allocation86_spill] sm:$0xff] }
 0x3e8   : > { %v9518_v36 = vmax.f32 %v2687_v35, 0.0  ;;  %v11541_v35 = vld [vmem:[#allocation88_spill] sm:$0xff] }
 0x3ea   : > { %2758 = vmatprep.mubr.f32.mxu0 %v9518_v36 }
 0x3eb   : > { %2759 = vmatmul.mubr.f32.vlgmr.msra.gmra.mrb[18].mxu0 %v9520_v8 }
 0x3ec   : > { %7031 = vmatpush1.bf16.msra.mxu0 %v9054_v14  ;;  %3146 = vmatprep.mubr.f32.mxu0 %v9518_v36  ;;  %v1956_v14 = vld [vmem:[#allocation2 + $0xc78] sm:$0xff] }
 0x3ed   : > { %7033 = vmatprep.subr.bf16.mxu0 %v9057_v24  ;;  %v11607_v24 = vld [vmem:[#allocation152_spill] sm:$0xff] }
 0x3f0   : > { %7035 = vmatpush1.bf16.msra.mxu0 %v9064_v62  ;;  %v11542_v62 = vld [vmem:[#allocation89_spill] sm:$0xff] }
 0x3f1   : > { %7037 = vmatprep.subr.bf16.mxu0 %v9067_v1  ;;  %v11543_v1 = vld [vmem:[#allocation90_spill] sm:$0xff] }
 0x3f4   : > { %7039 = vmatpush1.bf16.msra.mxu0 %v9070_v26  ;;  %v11544_v26 = vld [vmem:[#allocation91_spill] sm:$0xff] }
 0x3f5   : > { %7041 = vmatprep.subr.bf16.mxu0 %v9073_v58  ;;  %v11545_v58 = vld [vmem:[#allocation92_spill] sm:$0xff] }
 0x3f8   : > { %7043 = vmatpush1.bf16.msra.mxu0 %v9076_v55  ;;  %v11546_v55 = vld [vmem:[#allocation93_spill] sm:$0xff] }
 0x3f9   : > { %7045 = vmatprep.subr.bf16.mxu0 %v9079_v57  ;;  %v11547_v57 = vld [vmem:[#allocation94_spill] sm:$0xff] }
 0x3fc   : > { %7047 = vmatpush1.bf16.msra.mxu0 %v11537_v63  ;;  %v11548_v63 = vld [vmem:[#allocation95_spill] sm:$0xff] }
 0x3fd   : > { %7049 = vmatprep.subr.bf16.mxu0 %v11538_v42  ;;  %v11549_v42 = vld [vmem:[#allocation96_spill] sm:$0xff] }
 0x400   : > { %7051 = vmatpush1.bf16.msra.mxu0 %v11539_v15  ;;  %v11550_v15 = vld [vmem:[#allocation97_spill] sm:$0xff] }
 0x401   : > { %7053 = vmatprep.subr.bf16.mxu0 %v11540_v16  ;;  %v11551_v16 = vld [vmem:[#allocation98_spill] sm:$0xff] }
 0x404   : > { %7055 = vmatpush1.bf16.msra.mxu0 %v11541_v35  ;;  %v11552_v35 = vld [vmem:[#allocation99_spill] sm:$0xff] }
 0x405   : > { %7057 = vmatprep.subr.bf16.mxu0 %v11542_v62  ;;  %v11553_v62 = vld [vmem:[#allocation100_spill] sm:$0xff] }
 0x408   : > { %7059 = vmatpush1.bf16.msra.mxu0 %v11543_v1  ;;  %v11554_v1 = vld [vmem:[#allocation101_spill] sm:$0xff] }
 0x409   : > { %7061 = vmatprep.subr.bf16.mxu0 %v11544_v26  ;;  %v11555_v26 = vld [vmem:[#allocation102_spill] sm:$0xff] }
 0x40c   : > { %7063 = vmatpush1.bf16.msra.mxu0 %v11545_v58  ;;  %v11556_v58 = vld [vmem:[#allocation103_spill] sm:$0xff] }
 0x40d   : > { %7065 = vmatprep.subr.bf16.mxu0 %v11546_v55  ;;  %v11557_v55 = vld [vmem:[#allocation104_spill] sm:$0xff] }
 0x410   : > { %7067 = vmatpush1.bf16.msra.mxu0 %v11547_v57  ;;  %v11558_v57 = vld [vmem:[#allocation105_spill] sm:$0xff] }
 0x411   : > { %7069 = vmatprep.subr.bf16.mxu0 %v11548_v63  ;;  %v11559_v63 = vld [vmem:[#allocation106_spill] sm:$0xff] }
 0x414   : > { %7071 = vmatpush1.bf16.msra.mxu0 %v11549_v42  ;;  %v11560_v42 = vld [vmem:[#allocation107_spill] sm:$0xff] }
 0x415   : > { %7073 = vmatprep.subr.bf16.mxu0 %v11550_v15  ;;  %v11572_v15 = vld [vmem:[#allocation119_spill] sm:$0xff] }
 0x418   : > { %7075 = vmatpush1.bf16.msra.mxu0 %v11551_v16  ;;  %v11561_v16 = vld [vmem:[#allocation108_spill] sm:$0xff] }
 0x419   : > { %7077 = vmatprep.subr.bf16.mxu0 %v11552_v35  ;;  %v11570_v35 = vld [vmem:[#allocation117_spill] sm:$0xff] }
 0x41c   : > { %7079 = vmatpush1.bf16.msra.mxu0 %v11553_v62  ;;  %v11562_v62 = vld [vmem:[#allocation109_spill] sm:$0xff] }
 0x41d   : > { %7081 = vmatprep.subr.bf16.mxu0 %v11554_v1  ;;  %v11563_v1 = vld [vmem:[#allocation110_spill] sm:$0xff] }
 0x420   : > { %7083 = vmatpush1.bf16.msra.mxu0 %v11555_v26  ;;  %v11564_v26 = vld [vmem:[#allocation111_spill] sm:$0xff] }
 0x421   : > { %7085 = vmatprep.subr.bf16.mxu0 %v11556_v58  ;;  %v11565_v58 = vld [vmem:[#allocation112_spill] sm:$0xff] }
 0x424   : > { %7087 = vmatpush1.bf16.msra.mxu0 %v11557_v55  ;;  %v11566_v55 = vld [vmem:[#allocation113_spill] sm:$0xff] }
 0x425   : > { %7089 = vmatprep.subr.bf16.mxu0 %v11558_v57  ;;  %v11567_v57 = vld [vmem:[#allocation114_spill] sm:$0xff] }
 0x428   : > { %7091 = vmatpush1.bf16.msra.mxu0 %v11559_v63  ;;  %v11568_v63 = vld [vmem:[#allocation115_spill] sm:$0xff] }
 0x429   : > { %7157 = vmatprep.subr.bf16.mxu0 %v11560_v42  ;;  %v11569_v42 = vld [vmem:[#allocation116_spill] sm:$0xff] }
 0x42b   : > { %3147 = vmatmul.mubr.f32.vlgmr.msra.gmra.mrb[20].mxu0 %v9520_v8 }
 0x42c   : > { %7159 = vmatpush1.bf16.msra.mxu0 %v11561_v16  ;;  %3456 = vmatprep.mubr.f32.mxu0 %v9518_v36  ;;  %v11571_v16 = vld [vmem:[#allocation118_spill] sm:$0xff] }
 0x42d   : > { %7161 = vmatprep.subr.bf16.mxu0 %v11562_v62  ;;  %v11573_v62 = vld [vmem:[#allocation120_spill] sm:$0xff] }
 0x430   : > { %7163 = vmatpush1.bf16.msra.mxu0 %v11563_v1  ;;  %v11574_v1 = vld [vmem:[#allocation121_spill] sm:$0xff] }
 0x431   : > { %7165 = vmatprep.subr.bf16.mxu0 %v11564_v26  ;;  %v11575_v26 = vld [vmem:[#allocation122_spill] sm:$0xff] }
 0x434   : > { %7167 = vmatpush1.bf16.msra.mxu0 %v11565_v58  ;;  %v11576_v58 = vld [vmem:[#allocation123_spill] sm:$0xff] }
 0x435   : > { %7169 = vmatprep.subr.bf16.mxu0 %v11566_v55  ;;  %v11577_v55 = vld [vmem:[#allocation124_spill] sm:$0xff] }
 0x438   : > { %7171 = vmatpush1.bf16.msra.mxu0 %v11567_v57  ;;  %v11578_v57 = vld [vmem:[#allocation125_spill] sm:$0xff] }
 0x439   : > { %7173 = vmatprep.subr.bf16.mxu0 %v11568_v63  ;;  %v11579_v63 = vld [vmem:[#allocation126_spill] sm:$0xff] }
 0x43c   : > { %7175 = vmatpush1.bf16.msra.mxu0 %v11569_v42  ;;  %v11580_v42 = vld [vmem:[#allocation127_spill] sm:$0xff] }
 0x43d   : > { %7177 = vmatprep.subr.bf16.mxu0 %v11570_v35  ;;  %v11581_v35 = vld [vmem:[#allocation128_spill] sm:$0xff] }
 0x440   : > { %7179 = vmatpush1.bf16.msra.mxu0 %v11571_v16  ;;  %v11582_v16 = vld [vmem:[#allocation129_spill] sm:$0xff] }
 0x441   : > { %7181 = vmatprep.subr.bf16.mxu0 %v11572_v15  ;;  %v11583_v15 = vld [vmem:[#allocation130_spill] sm:$0xff] }
 0x444   : > { %7183 = vmatpush1.bf16.msra.mxu0 %v11573_v62  ;;  %v11584_v62 = vld [vmem:[#allocation131_spill] sm:$0xff] }
 0x445   : > { %7185 = vmatprep.subr.bf16.mxu0 %v11574_v1  ;;  %v11585_v1 = vld [vmem:[#allocation132_spill] sm:$0xff] }
 0x448   : > { %7187 = vmatpush1.bf16.msra.mxu0 %v11575_v26  ;;  %v11586_v26 = vld [vmem:[#allocation133_spill] sm:$0xff] }
 0x449   : > { %7189 = vmatprep.subr.bf16.mxu0 %v11576_v58  ;;  %v11587_v58 = vld [vmem:[#allocation134_spill] sm:$0xff] }
 0x44c   : > { %7191 = vmatpush1.bf16.msra.mxu0 %v11577_v55  ;;  %v11588_v55 = vld [vmem:[#allocation135_spill] sm:$0xff] }
 0x44d   : > { %7193 = vmatprep.subr.bf16.mxu0 %v11578_v57  ;;  %v11589_v57 = vld [vmem:[#allocation136_spill] sm:$0xff] }
 0x450   : > { %7195 = vmatpush1.bf16.msra.mxu0 %v11579_v63  ;;  %v11590_v63 = vld [vmem:[#allocation137_spill] sm:$0xff] }
 0x451   : > { %7197 = vmatprep.subr.bf16.mxu0 %v11580_v42  ;;  %v11591_v42 = vld [vmem:[#allocation138_spill] sm:$0xff] }
 0x454   : > { %7199 = vmatpush1.bf16.msra.mxu0 %v11581_v35  ;;  %v11592_v35 = vld [vmem:[#allocation139_spill] sm:$0xff] }
 0x455   : > { %7201 = vmatprep.subr.bf16.mxu0 %v11582_v16 }
 0x458   : > { %7203 = vmatpush1.bf16.msra.mxu0 %v11583_v15  ;;  %v11593_v15 = vld [vmem:[#allocation140_spill] sm:$0xff] }
 0x459   : > { %7205 = vmatprep.subr.bf16.mxu0 %v11584_v62  ;;  %v1944_v62 = vld [vmem:[#allocation2 + $0xc18] sm:$0xff] }
 0x45c   : > { %7207 = vmatpush1.bf16.msra.mxu0 %v11585_v1  ;;  %v11594_v1 = vld [vmem:[#allocation141_spill] sm:$0xff] }
 0x45d   : > { %7209 = vmatprep.subr.bf16.mxu0 %v11586_v26  ;;  %v11595_v26 = vld [vmem:[#allocation142_spill] sm:$0xff] }
 0x460   : > { %7211 = vmatpush1.bf16.msra.mxu0 %v11587_v58  ;;  %v11596_v58 = vld [vmem:[#allocation143_spill] sm:$0xff] }
 0x461   : > { %7213 = vmatprep.subr.bf16.mxu0 %v11588_v55  ;;  %v11597_v55 = vld [vmem:[#allocation144_spill] sm:$0xff] }
 0x464   : > { %7215 = vmatpush1.bf16.msra.mxu0 %v11589_v57  ;;  %v11598_v57 = vld [vmem:[#allocation145_spill] sm:$0xff] }
 0x465   : > { %7217 = vmatprep.subr.bf16.mxu0 %v11590_v63 }
 0x468   : > { %7219 = vmatpush1.bf16.msra.mxu0 %v11591_v42  ;;  %v1942_v42 = vld [vmem:[#allocation2 + $0xc08] sm:$0xff] }
 0x469   : > { %7285 = vmatprep.subr.bf16.mxu0 %v11592_v35  ;;  %v11599_v35 = vld [vmem:[#allocation146_spill] sm:$0xff] }
 0x46b   : > { %3457 = vmatmul.mubr.f32.vlgmr.msra.gmra.mrb[22].mxu0 %v9520_v8 }
 0x46c   : > { %7287 = vmatpush1.bf16.msra.mxu0 %v11593_v15  ;;  %3766 = vmatprep.mubr.f32.mxu0 %v9518_v36  ;;  %v6288_v15 = vld [vmem:[%s10814_s7 + $0x6] sm:$0x3] }
 0x46d   : > { %7289 = vmatprep.subr.bf16.mxu0 %v11594_v1  ;;  %v11600_v1 = vld [vmem:[#allocation147_spill] sm:$0xff] }
 0x470   : > { %7291 = vmatpush1.bf16.msra.mxu0 %v11595_v26  ;;  %v1952_v26 = vld [vmem:[#allocation2 + $0xc58] sm:$0xff] }
 0x471   : > { %7293 = vmatprep.subr.bf16.mxu0 %v11596_v58  ;;  %v9606_v58 = vpack.c.bf16 %v1944_v62, %v1942_v42  ;;  %v1946_v62 = vld [vmem:[#allocation2 + $0xc28] sm:$0xff] }
 0x473   : > { %11601 = vst [vmem:[#allocation191_spill] sm:$0xff] %v9606_v58 }
 0x474   : > { %7295 = vmatpush1.bf16.msra.mxu0 %v11597_v55  ;;  %v1950_v55 = vld [vmem:[#allocation2 + $0xc48] sm:$0xff] }
 0x475   : > { %7297 = vmatprep.subr.bf16.mxu0 %v11598_v57  ;;  %v11602_v57 = vld [vmem:[#allocation148_spill] sm:$0xff] }
 0x477   : > { %v1631_v63 = vpop.f32.mrb[6].mxu1 }
 0x478   : > { %7299 = vmatpush1.bf16.msra.mxu0 %v11599_v35  ;;  %v1633_v16 = vpop.f32.mrb[7].mxu1  ;;  %v11603_v35 = vld [vmem:[#allocation149_spill] sm:$0xff] }
 0x479   : > { %6289 = vmatprep.subr.msk.mxu1 %vm900_vm2, %v1633_v16  ;;  %7301 = vmatprep.subr.bf16.mxu0 %v11600_v1  ;;  %v1941_v16 = vld [vmem:[#allocation2 + $0xc00] sm:$0xff]  ;;  %v1943_v1 = vld [vmem:[#allocation2 + $0xc10] sm:$0xff] }
 0x47a   : > { %6290 = vmatpush1.msk.msra.mxu1 %vm900_vm2, %v1631_v63  ;;  %v1948_v63 = vld [vmem:[#allocation2 + $0xc38] sm:$0xff]  ;;  %v9621_v42 = vpack.c.bf16 %v1943_v1, %v1941_v16  ;;  %v9633_v1 = vpack.c.bf16 %v1952_v26, %v1950_v55  ;;  %v1949_v16 = vld [vmem:[#allocation2 + $0xc40] sm:$0xff]  ;;  %v1955_v55 = vld [vmem:[#allocation2 + $0xc70] sm:$0xff] }
 0x47b   : > { %6291 = vmatmul.mubr.msk.f32.vlgmr.msra.gmra.mrb[4].mxu1 %vm896_vm3, %v6288_v15  ;;  %6293 = vmatprep.subr.msk.mxu1 %vm900_vm2, %v9508_v41  ;;  %v6292_v41 = vld [vmem:[%s10814_s7 + $0xa] sm:$0x3]  ;;  %v11605_v15 = vld [vmem:[#allocation151_spill] sm:$0xff]  ;;  %v1953_v26 = vld [vmem:[#allocation2 + $0xc60] sm:$0xff] }
 0x47c   : > { %7303 = vmatpush1.bf16.msra.mxu0 %v11602_v57  ;;  %6294 = vmatpush1.msk.msra.mxu1 %vm900_vm2, %v9505_v30  ;;  %11604 = vst [vmem:[#allocation192_spill] sm:$0xff] %v9621_v42  ;;  %v9624_v30 = vpack.c.bf16 %v1948_v63, %v1946_v62  ;;  %v1947_v57 = vld [vmem:[#allocation2 + $0xc30] sm:$0xff]  ;;  %11609 = vst [vmem:[#allocation195_spill] sm:$0xff] %v9633_v1  ;;  %v11610_v63 = vld [vmem:[#allocation153_spill] sm:$0xff] }
 0x47d   : > { %7305 = vmatprep.subr.bf16.mxu0 %v11603_v35  ;;  %1929 = vmatprep.mubr.f32.mxu1 %v11420_v21  ;;  %v1945_v35 = vld [vmem:[#allocation2 + $0xc20] sm:$0xff]  ;;  %v1951_v62 = vld [vmem:[#allocation2 + $0xc50] sm:$0xff] }
 0x47e   : > { %6709 = vmatprep.subr.bf16.mxu1 %v9606_v58  ;;  %11606 = vst [vmem:[#allocation193_spill] sm:$0xff] %v9624_v30  ;;  %v9646_v58 = vpack.c.bf16 %v1955_v55, %v1953_v26  ;;  %v11621_v26 = vld [vmem:[#allocation159_spill] sm:$0xff] }
 0x480   : > { %7307 = vmatpush1.bf16.msra.mxu0 %v9284_v25  ;;  %v9629_v25 = vpack.c.bf16 %v1947_v57, %v1945_v35  ;;  %v11613_v57 = vld [vmem:[#allocation155_spill] sm:$0xff]  ;;  %11616 = vst [vmem:[#allocation198_spill] sm:$0xff] %v9646_v58 }
 0x481   : > { %7309 = vmatprep.subr.bf16.mxu0 %v11605_v15  ;;  %v1954_v15 = vld [vmem:[#allocation2 + $0xc68] sm:$0xff] }
 0x482   : > { %11608 = vst [vmem:[#allocation194_spill] sm:$0xff] %v9629_v25  ;;  %v9642_v35 = vpack.c.bf16 %v1956_v14, %v1954_v15  ;;  %v1962_v14 = vld [vmem:[#allocation2 + $0xca8] sm:$0xff]  ;;  %v1964_v15 = vld [vmem:[#allocation2 + $0xcb8] sm:$0xff] }
 0x483   : > { %6295 = vmatmul.mubr.msk.f32.vlgmr.msra.gmra.mrb[4].mxu1 %vm896_vm3, %v6292_v41  ;;  %v11611_v41 = vld [vmem:[#allocation154_spill] sm:$0xff]  ;;  %v9658_v55 = vpack.c.bf16 %v1964_v15, %v1962_v14  ;;  %v1972_v15 = vld [vmem:[#allocation2 + $0xcf8] sm:$0xff] }
 0x484   : > { %6711 = vmatpush1.bf16.msra.mxu1 %v9621_v42  ;;  %7311 = vmatpush1.bf16.msra.mxu0 %v11607_v24  ;;  %v9638_v42 = vpack.c.bf16 %v1951_v62, %v1949_v16  ;;  %11614 = vst [vmem:[#allocation197_spill] sm:$0xff] %v9642_v35  ;;  %v1958_v24 = vld [vmem:[#allocation2 + $0xc88] sm:$0xff]  ;;  %v11617_v16 = vld [vmem:[#allocation157_spill] sm:$0xff] }
 0x485   : > { %2069 = vmatprep.mubr.f32.mxu1 %v8924_v40  ;;  %6713 = vmatprep.subr.bf16.mxu1 %v9624_v30  ;;  %v1960_v30 = vld [vmem:[#allocation2 + $0xc98] sm:$0xff]  ;;  %11622 = vst [vmem:[#allocation201_spill] sm:$0xff] %v9658_v55  ;;  %v1970_v14 = vld [vmem:[#allocation2 + $0xce8] sm:$0xff] }
 0x486   : > { %7313 = vmatprep.subr.bf16.mxu0 %v11610_v63  ;;  %11612 = vst [vmem:[#allocation196_spill] sm:$0xff] %v9638_v42  ;;  %v11615_v63 = vld [vmem:[#allocation156_spill] sm:$0xff]  ;;  %v9650_v62 = vpack.c.bf16 %v1960_v30, %v1958_v24  ;;  %v1966_v24 = vld [vmem:[#allocation2 + $0xcc8] sm:$0xff] }
 0x487   : > { %v1968_v30 = vld [vmem:[#allocation2 + $0xcd8] sm:$0xff] }
 0x488   : > { %6715 = vmatpush1.bf16.msra.mxu1 %v9629_v25  ;;  %7315 = vmatpush1.bf16.msra.mxu0 %v11611_v41  ;;  %11618 = vst [vmem:[#allocation199_spill] sm:$0xff] %v9650_v62  ;;  %v1957_v41 = vld [vmem:[#allocation2 + $0xc80] sm:$0xff] }
 0x489   : > { %6717 = vmatprep.subr.bf16.mxu1 %v9633_v1  ;;  %7317 = vmatprep.subr.bf16.mxu0 %v11613_v57  ;;  %v1959_v57 = vld [vmem:[#allocation2 + $0xc90] sm:$0xff]  ;;  %v11619_v1 = vld [vmem:[#allocation158_spill] sm:$0xff] }
 0x48a   : > { %v9654_v25 = vpack.c.bf16 %v1959_v57, %v1957_v41  ;;  %v11625_v41 = vld [vmem:[#allocation161_spill] sm:$0xff]  ;;  %v9666_v57 = vpack.c.bf16 %v1968_v30, %v1966_v24  ;;  %v1974_v24 = vld [vmem:[#allocation2 + $0xd08] sm:$0xff]  ;;  %v1976_v30 = vld [vmem:[#allocation2 + $0xd18] sm:$0xff] }
 0x48c   : > { %6719 = vmatpush1.bf16.msra.mxu1 %v9638_v42  ;;  %7319 = vmatpush1.bf16.msra.mxu0 %v11615_v63  ;;  %11620 = vst [vmem:[#allocation200_spill] sm:$0xff] %v9654_v25  ;;  %v1961_v63 = vld [vmem:[#allocation2 + $0xca0] sm:$0xff]  ;;  %11626 = vst [vmem:[#allocation203_spill] sm:$0xff] %v9666_v57 }
 0x48d   : > { %6721 = vmatprep.subr.bf16.mxu1 %v9642_v35  ;;  %7321 = vmatprep.subr.bf16.mxu0 %v11617_v16  ;;  %v1963_v16 = vld [vmem:[#allocation2 + $0xcb0] sm:$0xff]  ;;  %v11623_v35 = vld [vmem:[#allocation160_spill] sm:$0xff] }
 0x48e   : > { %v9662_v42 = vpack.c.bf16 %v1963_v16, %v1961_v63  ;;  %v9674_v63 = vpack.c.bf16 %v1972_v15, %v1970_v14  ;;  %v1969_v16 = vld [vmem:[#allocation2 + $0xce0] sm:$0xff]  ;;  %v1978_v14 = vld [vmem:[#allocation2 + $0xd28] sm:$0xff]  ;;  %v1980_v15 = vld [vmem:[#allocation2 + $0xd38] sm:$0xff] }
 0x490   : > { %6723 = vmatpush1.bf16.msra.mxu1 %v9646_v58  ;;  %7323 = vmatpush1.bf16.msra.mxu0 %v11619_v1  ;;  %11624 = vst [vmem:[#allocation202_spill] sm:$0xff] %v9662_v42  ;;  %v1965_v1 = vld [vmem:[#allocation2 + $0xcc0] sm:$0xff]  ;;  %11629 = vst [vmem:[#allocation205_spill] sm:$0xff] %v9674_v63 }
 0x491   : > { %6725 = vmatprep.subr.bf16.mxu1 %v9650_v62  ;;  %7325 = vmatprep.subr.bf16.mxu0 %v11621_v26  ;;  %v1967_v26 = vld [vmem:[#allocation2 + $0xcd0] sm:$0xff]  ;;  %v11627_v62 = vld [vmem:[#allocation162_spill] sm:$0xff] }
 0x492   : > { %v9670_v58 = vpack.c.bf16 %v1967_v26, %v1965_v1  ;;  %v9682_v1 = vpack.c.bf16 %v1976_v30, %v1974_v24  ;;  %v1973_v26 = vld [vmem:[#allocation2 + $0xd00] sm:$0xff]  ;;  %v1982_v24 = vld [vmem:[#allocation2 + $0xd48] sm:$0xff]  ;;  %v1984_v30 = vld [vmem:[#allocation2 + $0xd58] sm:$0xff] }
 0x494   : > { %6727 = vmatpush1.bf16.msra.mxu1 %v9654_v25  ;;  %7327 = vmatpush1.bf16.msra.mxu0 %v11623_v35  ;;  %11628 = vst [vmem:[#allocation204_spill] sm:$0xff] %v9670_v58  ;;  %v11630_v35 = vld [vmem:[#allocation164_spill] sm:$0xff]  ;;  %11632 = vst [vmem:[#allocation207_spill] sm:$0xff] %v9682_v1  ;;  %v2395_v25 = vld [vmem:[#allocation2 + $0x1070] sm:$0xff] }
 0x495   : > { %6729 = vmatprep.subr.bf16.mxu1 %v9658_v55  ;;  %7329 = vmatprep.subr.bf16.mxu0 %v11625_v41  ;;  %v1971_v41 = vld [vmem:[#allocation2 + $0xcf0] sm:$0xff] }
 0x496   : > { %v9678_v55 = vpack.c.bf16 %v1971_v41, %v1969_v16  ;;  %v9690_v41 = vpack.c.bf16 %v1980_v15, %v1978_v14  ;;  %v1977_v16 = vld [vmem:[#allocation2 + $0xd20] sm:$0xff]  ;;  %v1983_v15 = vld [vmem:[#allocation2 + $0xd50] sm:$0xff] }
 0x498   : > { %6731 = vmatpush1.bf16.msra.mxu1 %v9662_v42  ;;  %7331 = vmatpush1.bf16.msra.mxu0 %v11627_v62  ;;  %11631 = vst [vmem:[#allocation206_spill] sm:$0xff] %v9678_v55  ;;  %11634 = vst [vmem:[#allocation209_spill] sm:$0xff] %v9690_v41  ;;  %v2390_v42 = vld [vmem:[#allocation2 + $0x1048] sm:$0xff] }
 0x499   : > { %6733 = vmatprep.subr.bf16.mxu1 %v9666_v57  ;;  %7333 = vmatprep.subr.bf16.mxu0 %v9329_v17  ;;  %v1975_v17 = vld [vmem:[#allocation2 + $0xd10] sm:$0xff]  ;;  %v2386_v57 = vld [vmem:[#allocation2 + $0x1028] sm:$0xff] }
 0x49a   : > { %v9686_v62 = vpack.c.bf16 %v1975_v17, %v1973_v26  ;;  %v1981_v17 = vld [vmem:[#allocation2 + $0xd40] sm:$0xff]  ;;  %v9698_v26 = vpack.c.bf16 %v1984_v30, %v1982_v24  ;;  %v1987_v24 = vld [vmem:[#allocation2 + $0xd70] sm:$0xff] }
 0x49b   : > { %v2387_v30 = vld [vmem:[#allocation2 + $0x1030] sm:$0xff] }
 0x49c   : > { %6735 = vmatpush1.bf16.msra.mxu1 %v9670_v58  ;;  %7335 = vmatpush1.bf16.msra.mxu0 %v11630_v35  ;;  %11633 = vst [vmem:[#allocation208_spill] sm:$0xff] %v9686_v62  ;;  %v2382_v35 = vld [vmem:[#allocation2 + $0x1008] sm:$0xff]  ;;  %11636 = vst [vmem:[#allocation211_spill] sm:$0xff] %v9698_v26  ;;  %v1988_v58 = vld [vmem:[#allocation2 + $0xd78] sm:$0xff] }
 0x49d   : > { %6737 = vmatprep.subr.bf16.mxu1 %v9674_v63  ;;  %7337 = vmatprep.subr.bf16.mxu0 %v9335_v9  ;;  %v1979_v9 = vld [vmem:[#allocation2 + $0xd30] sm:$0xff]  ;;  %v2384_v63 = vld [vmem:[#allocation2 + $0x1018] sm:$0xff] }
 0x49e   : > { %v9700_v14 = vpack.c.bf16 %v2384_v63, %v2382_v35  ;;  %v2385_v63 = vld [vmem:[#allocation2 + $0x1020] sm:$0xff] }
 0x4a0   : > { %6739 = vmatpush1.bf16.msra.mxu1 %v9678_v55  ;;  %7339 = vmatpush1.bf16.msra.mxu0 %v9338_v31  ;;  %v9694_v55 = vpack.c.bf16 %v1979_v9, %v1977_v16  ;;  %11637 = vst [vmem:[#allocation212_spill] sm:$0xff] %v9700_v14  ;;  %v2383_v31 = vld [vmem:[#allocation2 + $0x1010] sm:$0xff]  ;;  %v9704_v9 = vpack.c.bf16 %v1983_v15, %v1981_v17  ;;  %v2389_v17 = vld [vmem:[#allocation2 + $0x1040] sm:$0xff] }
 0x4a1   : > { %6741 = vmatprep.subr.bf16.mxu1 %v9682_v1  ;;  %7341 = vmatprep.subr.bf16.mxu0 %v9341_v7  ;;  %v2381_v7 = vld [vmem:[#allocation2 + $0x1000] sm:$0xff]  ;;  %v1986_v1 = vld [vmem:[#allocation2 + $0xd68] sm:$0xff]  ;;  %v2391_v15 = vld [vmem:[#allocation2 + $0x1050] sm:$0xff] }
 0x4a2   : > { %11635 = vst [vmem:[#allocation210_spill] sm:$0xff] %v9694_v55  ;;  %11638 = vst [vmem:[#allocation213_spill] sm:$0xff] %v9704_v9  ;;  %v9706_v16 = vpack.c.bf16 %v2383_v31, %v2381_v7  ;;  %v9710_v35 = vpack.c.bf16 %v1988_v58, %v1986_v1  ;;  %v9719_v7 = vpack.c.bf16 %v2387_v30, %v2385_v63  ;;  %v1989_v58 = vld [vmem:[#allocation2 + $0xd80] sm:$0xff]  ;;  %v1991_v1 = vld [vmem:[#allocation2 + $0xd90] sm:$0xff] }
 0x4a3   : > { %v9730_v63 = vpack.c.bf16 %v1991_v1, %v1989_v58  ;;  %v9732_v30 = vpack.c.bf16 %v2391_v15, %v2389_v17  ;;  %v1997_v17 = vld [vmem:[#allocation2 + $0xdc0] sm:$0xff]  ;;  %v1999_v15 = vld [vmem:[#allocation2 + $0xdd0] sm:$0xff] }
 0x4a4   : > { %6743 = vmatpush1.bf16.msra.mxu1 %v9686_v62  ;;  %7343 = vmatpush1.bf16.msra.mxu0 %v9344_v34  ;;  %v2388_v62 = vld [vmem:[#allocation2 + $0x1038] sm:$0xff]  ;;  %11639 = vst [vmem:[#allocation214_spill] sm:$0xff] %v9706_v16  ;;  %11640 = vst [vmem:[#allocation215_spill] sm:$0xff] %v9710_v35  ;;  %v1990_v34 = vld [vmem:[#allocation2 + $0xd88] sm:$0xff] }
 0x4a5   : > { %6745 = vmatprep.subr.bf16.mxu1 %v9690_v41  ;;  %7345 = vmatprep.subr.bf16.mxu0 %v9347_v10  ;;  %v1985_v10 = vld [vmem:[#allocation2 + $0xd60] sm:$0xff]  ;;  %v9712_v41 = vpack.c.bf16 %v2388_v62, %v2386_v57  ;;  %11643 = vst [vmem:[#allocation218_spill] sm:$0xff] %v9719_v7  ;;  %11646 = vst [vmem:[#allocation221_spill] sm:$0xff] %v9730_v63 }
 0x4a6   : > { %v9717_v31 = vpack.c.bf16 %v1987_v24, %v1985_v10  ;;  %v2394_v10 = vld [vmem:[#allocation2 + $0x1068] sm:$0xff]  ;;  %v2396_v24 = vld [vmem:[#allocation2 + $0x1078] sm:$0xff]  ;;  %11647 = vst [vmem:[#allocation222_spill] sm:$0xff] %v9732_v30 }
 0x4a7   : > { %11641 = vst [vmem:[#allocation216_spill] sm:$0xff] %v9712_v41 }
 0x4a8   : > { %6747 = vmatpush1.bf16.msra.mxu1 %v9694_v55  ;;  %7347 = vmatpush1.bf16.msra.mxu0 %v9350_v6  ;;  %v1992_v55 = vld [vmem:[#allocation2 + $0xd98] sm:$0xff]  ;;  %11642 = vst [vmem:[#allocation217_spill] sm:$0xff] %v9717_v31 }
 0x4a9   : > { %6749 = vmatprep.subr.bf16.mxu1 %v9698_v26  ;;  %7349 = vmatprep.subr.bf16.mxu0 %v9700_v14  ;;  %v2392_v6 = vld [vmem:[#allocation2 + $0x1058] sm:$0xff]  ;;  %v9723_v62 = vpack.c.bf16 %v1992_v55, %v1990_v34  ;;  %v1994_v26 = vld [vmem:[#allocation2 + $0xda8] sm:$0xff]  ;;  %v1993_v34 = vld [vmem:[#allocation2 + $0xda0] sm:$0xff] }
 0x4aa   : > { %v9725_v57 = vpack.c.bf16 %v2392_v6, %v2390_v42  ;;  %v1995_v55 = vld [vmem:[#allocation2 + $0xdb0] sm:$0xff]  ;;  %v9738_v42 = vpack.c.bf16 %v2396_v24, %v2394_v10  ;;  %v2397_v10 = vld [vmem:[#allocation2 + $0x1080] sm:$0xff] }
 0x4ab   : > { %3767 = vmatmul.mubr.f32.vlgmr.msra.gmra.mrb[24].mxu0 %v9520_v8  ;;  %11644 = vst [vmem:[#allocation219_spill] sm:$0xff] %v9723_v62  ;;  %v9742_v58 = vpack.c.bf16 %v1995_v55, %v1993_v34  ;;  %v2399_v24 = vld [vmem:[#allocation2 + $0x1090] sm:$0xff]  ;;  %v2001_v34 = vld [vmem:[#allocation2 + $0xde0] sm:$0xff] }
 0x4ac   : > { %6751 = vmatpush1.bf16.msra.mxu1 %v9704_v9  ;;  %7351 = vmatpush1.bf16.msra.mxu0 %v9706_v16  ;;  %11645 = vst [vmem:[#allocation220_spill] sm:$0xff] %v9725_v57  ;;  %v1996_v9 = vld [vmem:[#allocation2 + $0xdb8] sm:$0xff]  ;;  %11649 = vst [vmem:[#allocation224_spill] sm:$0xff] %v9738_v42  ;;  %v2403_v55 = vld [vmem:[#allocation2 + $0x10b0] sm:$0xff] }
 0x4ad   : > { %3921 = vmatprep.mubr.f32.mxu0 %v9518_v36  ;;  %6753 = vmatprep.subr.bf16.mxu1 %v9710_v35  ;;  %v9736_v6 = vpack.c.bf16 %v1996_v9, %v1994_v26  ;;  %v2393_v35 = vld [vmem:[#allocation2 + $0x1060] sm:$0xff]  ;;  %11650 = vst [vmem:[#allocation225_spill] sm:$0xff] %v9742_v58  ;;  %v9750_v9 = vpack.c.bf16 %v2400_v47, %v2398_v48 }
 0x4ae   : > { %7353 = vmatprep.subr.bf16.mxu0 %v9712_v41  ;;  %v9744_v1 = vpack.c.bf16 %v2395_v25, %v2393_v35  ;;  %v9754_v25 = vpack.c.bf16 %v1999_v15, %v1997_v17  ;;  %v9756_v35 = vpack.c.bf16 %v2399_v24, %v2397_v10  ;;  %v9762_v48 = vpack.c.bf16 %v2404_v53, %v2402_v54  ;;  %v2405_v53 = vld [vmem:[#allocation2 + $0x10c0] sm:$0xff]  ;;  %v2407_v54 = vld [vmem:[#allocation2 + $0x10d0] sm:$0xff]  ;;  %v2410_v10 = vld [vmem:[#allocation2 + $0x10e8] sm:$0xff] }
 0x4af   : > { %11648 = vst [vmem:[#allocation223_spill] sm:$0xff] %v9736_v6  ;;  %11653 = vst [vmem:[#allocation228_spill] sm:$0xff] %v9750_v9  ;;  %v2412_v24 = vld [vmem:[#allocation2 + $0x10f8] sm:$0xff] }
 0x4b0   : > { %6755 = vmatpush1.bf16.msra.mxu1 %v9717_v31  ;;  %7355 = vmatpush1.bf16.msra.mxu0 %v9719_v7  ;;  %v2000_v31 = vld [vmem:[#allocation2 + $0xdd8] sm:$0xff]  ;;  %11651 = vst [vmem:[#allocation226_spill] sm:$0xff] %v9744_v1  ;;  %11654 = vst [vmem:[#allocation229_spill] sm:$0xff] %v9754_v25 }
 0x4b1   : > { %6757 = vmatprep.subr.bf16.mxu1 %v9723_v62  ;;  %7357 = vmatprep.subr.bf16.mxu0 %v9725_v57  ;;  %v9748_v26 = vpack.c.bf16 %v2000_v31, %v1998_v29  ;;  %v2002_v62 = vld [vmem:[#allocation2 + $0xde8] sm:$0xff]  ;;  %11655 = vst [vmem:[#allocation230_spill] sm:$0xff] %v9756_v35  ;;  %11657 = vst [vmem:[#allocation232_spill] sm:$0xff] %v9762_v48  ;;  %v2003_v29 = vld [vmem:[#allocation2 + $0xdf0] sm:$0xff] }
 0x4b2   : > { %v2401_v31 = vld [vmem:[#allocation2 + $0x10a0] sm:$0xff]  ;;  %v9766_v17 = vpack.c.bf16 %v2003_v29, %v2001_v34  ;;  %v9780_v34 = vpack.c.bf16 %v2407_v54, %v2405_v53  ;;  %v9783_v29 = vpack.c.bf16 %v2412_v24, %v2410_v10  ;;  %v2418_v10 = vld [vmem:[#allocation2 + $0x1128] sm:$0xff]  ;;  %v2420_v24 = vld [vmem:[#allocation2 + $0x1138] sm:$0xff] }
 0x4b3   : > { %11652 = vst [vmem:[#allocation227_spill] sm:$0xff] %v9748_v26  ;;  %v9768_v15 = vpack.c.bf16 %v2403_v55, %v2401_v31  ;;  %v2414_v31 = vld [vmem:[#allocation2 + $0x1108] sm:$0xff]  ;;  %v2416_v55 = vld [vmem:[#allocation2 + $0x1118] sm:$0xff]  ;;  %v2413_v54 = vld [vmem:[#allocation2 + $0x1100] sm:$0xff]  ;;  %v9797_v60 = vpack.c.bf16 %v2420_v24, %v2418_v10  ;;  %v9806_v10 = vpack.c.bf16 %v2423_v12, %v2421_v4 }
 0x4b4   : > { %6759 = vmatpush1.bf16.msra.mxu1 %v9730_v63  ;;  %7359 = vmatpush1.bf16.msra.mxu0 %v9732_v30  ;;  %v2004_v63 = vld [vmem:[#allocation2 + $0xdf8] sm:$0xff]  ;;  %11658 = vst [vmem:[#allocation233_spill] sm:$0xff] %v9766_v17  ;;  %11661 = vst [vmem:[#allocation236_spill] sm:$0xff] %v9780_v34  ;;  %v9791_v53 = vpack.c.bf16 %v2416_v55, %v2414_v31  ;;  %v9803_v55 = vpack.c.bf16 %v2424_v5, %v2422_v59  ;;  %v2434_v12 = vld [vmem:[#allocation2 + $0x11a8] sm:$0xff] }
 0x4b5   : > { %6761 = vmatprep.subr.bf16.mxu1 %v9736_v6  ;;  %7361 = vmatprep.subr.bf16.mxu0 %v9738_v42  ;;  %v9760_v47 = vpack.c.bf16 %v2004_v63, %v2002_v62  ;;  %v2406_v6 = vld [vmem:[#allocation2 + $0x10c8] sm:$0xff]  ;;  %11659 = vst [vmem:[#allocation234_spill] sm:$0xff] %v9768_v15  ;;  %11662 = vst [vmem:[#allocation237_spill] sm:$0xff] %v9783_v29  ;;  %v9812_v5 = vpack.c.bf16 %v2427_v20, %v2425_v11  ;;  %v2436_v4 = vld [vmem:[#allocation2 + $0x11b8] sm:$0xff] }
 0x4b6   : > { %11664 = vst [vmem:[#allocation239_spill] sm:$0xff] %v9791_v53  ;;  %11666 = vst [vmem:[#allocation241_spill] sm:$0xff] %v9797_v60  ;;  %v2438_v20 = vld [vmem:[#allocation2 + $0x11c8] sm:$0xff]  ;;  %v2440_v11 = vld [vmem:[#allocation2 + $0x11d8] sm:$0xff] }
 0x4b7   : > { %11656 = vst [vmem:[#allocation231_spill] sm:$0xff] %v9760_v47  ;;  %11668 = vst [vmem:[#allocation243_spill] sm:$0xff] %v9803_v55 }
 0x4b8   : > { %6763 = vmatpush1.bf16.msra.mxu1 %v9742_v58  ;;  %7363 = vmatpush1.bf16.msra.mxu0 %v9744_v1  ;;  %v2408_v58 = vld [vmem:[#allocation2 + $0x10d8] sm:$0xff]  ;;  %11669 = vst [vmem:[#allocation244_spill] sm:$0xff] %v9806_v10  ;;  %11671 = vst [vmem:[#allocation246_spill] sm:$0xff] %v9812_v5 }
 0x4b9   : > { %6765 = vmatprep.subr.bf16.mxu1 %v9748_v26  ;;  %7365 = vmatprep.subr.bf16.mxu0 %v9750_v9  ;;  %v9772_v62 = vpack.c.bf16 %v2408_v58, %v2406_v6  ;;  %v2409_v6 = vld [vmem:[#allocation2 + $0x10e0] sm:$0xff]  ;;  %v2411_v58 = vld [vmem:[#allocation2 + $0x10f0] sm:$0xff] }
 0x4bb   : > { %11660 = vst [vmem:[#allocation235_spill] sm:$0xff] %v9772_v62 }
 0x4bc   : > { %6767 = vmatpush1.bf16.msra.mxu1 %v9754_v25  ;;  %7367 = vmatpush1.bf16.msra.mxu0 %v9756_v35 }
 0x4bd   : > { %6769 = vmatprep.subr.bf16.mxu1 %v9760_v47  ;;  %7369 = vmatprep.subr.bf16.mxu0 %v9762_v48  ;;  %v9787_v47 = vpack.c.bf16 %v2411_v58, %v2409_v6  ;;  %v2417_v6 = vld [vmem:[#allocation2 + $0x1120] sm:$0xff]  ;;  %v2419_v58 = vld [vmem:[#allocation2 + $0x1130] sm:$0xff] }
 0x4be   : > { %v9774_v63 = vpop.f32.mrb[18].mxu0  ;;  %v9800_v31 = vpack.c.bf16 %v2419_v58, %v2417_v6  ;;  %v2430_v6 = vld [vmem:[#allocation2 + $0x1188] sm:$0xff]  ;;  %v2432_v58 = vld [vmem:[#allocation2 + $0x1198] sm:$0xff] }
 0x4bf   : > { %v9776_v26 = vpop.f32.mrb[19].mxu0  ;;  %11663 = vst [vmem:[#allocation238_spill] sm:$0xff] %v9787_v47  ;;  %v9815_v59 = vpack.c.bf16 %v2432_v58, %v2430_v6  ;;  %v9824_v6 = vpack.c.bf16 %v2435_v52, %v2433_v27  ;;  %v9827_v58 = vpack.c.bf16 %v2440_v11, %v2438_v20  ;;  %v9836_v52 = vpack.c.bf16 %v2443_v2, %v2441_v13 }
 0x4c0   : > { %6771 = vmatpush1.bf16.msra.mxu1 %v9766_v17  ;;  %7371 = vmatpush1.bf16.msra.mxu0 %v9768_v15  ;;  %v2415_v17 = vld [vmem:[#allocation2 + $0x1110] sm:$0xff]  ;;  %11667 = vst [vmem:[#allocation242_spill] sm:$0xff] %v9800_v31 }
 0x4c1   : > { %7373 = vmatprep.subr.bf16.mxu0 %v9772_v62  ;;  %v9794_v25 = vpack.c.bf16 %v2415_v17, %v2413_v54  ;;  %v2426_v17 = vld [vmem:[#allocation2 + $0x1168] sm:$0xff]  ;;  %v2428_v54 = vld [vmem:[#allocation2 + $0x1178] sm:$0xff]  ;;  %11672 = vst [vmem:[#allocation247_spill] sm:$0xff] %v9815_v59  ;;  %11675 = vst [vmem:[#allocation250_spill] sm:$0xff] %v9824_v6 }
 0x4c2   : > { %v9809_v24 = vpack.c.bf16 %v2428_v54, %v2426_v17  ;;  %v9818_v17 = vpack.c.bf16 %v2431_v28, %v2429_v19  ;;  %v9821_v54 = vpack.c.bf16 %v2436_v4, %v2434_v12  ;;  %11676 = vst [vmem:[#allocation251_spill] sm:$0xff] %v9827_v58  ;;  %v2442_v28 = vld [vmem:[#allocation2 + $0x11e8] sm:$0xff]  ;;  %v2444_v19 = vld [vmem:[#allocation2 + $0x11f8] sm:$0xff]  ;;  %v9830_v12 = vpack.c.bf16 %v2439_v50, %v2437_v37 }
 0x4c3   : > { %2070 = vmatmul.mubr.f32.vlgmr.msra.gmra.mrb[8].mxu1 %v8928_v45  ;;  %11665 = vst [vmem:[#allocation240_spill] sm:$0xff] %v9794_v25  ;;  %v9833_v4 = vpack.c.bf16 %v2444_v19, %v2442_v28  ;;  %11679 = vst [vmem:[#allocation254_spill] sm:$0xff] %v9836_v52  ;;  %v6296_v19 = vld [vmem:[%s10814_s7 + $0xc] sm:$0x3] }
 0x4c4   : > { %7375 = vmatpush1.bf16.msra.mxu0 %v9780_v34  ;;  %2149 = vmatprep.mubr.f32.mxu1 %v11420_v21  ;;  %11670 = vst [vmem:[#allocation245_spill] sm:$0xff] %v9809_v24  ;;  %11673 = vst [vmem:[#allocation248_spill] sm:$0xff] %v9818_v17 }
 0x4c5   : > { %7377 = vmatprep.subr.bf16.mxu0 %v9783_v29  ;;  %11674 = vst [vmem:[#allocation249_spill] sm:$0xff] %v9821_v54  ;;  %11677 = vst [vmem:[#allocation252_spill] sm:$0xff] %v9830_v12 }
 0x4c6   : > { %11678 = vst [vmem:[#allocation253_spill] sm:$0xff] %v9833_v4 }
 0x4c8   : > { %7379 = vmatpush1.bf16.msra.mxu0 %v9787_v47 }
 0x4c9   : > { %7381 = vmatprep.subr.bf16.mxu0 %v9791_v53 }
 0x4cc   : > { %7383 = vmatpush1.bf16.msra.mxu0 %v9794_v25 }
 0x4cd   : > { %7385 = vmatprep.subr.bf16.mxu0 %v9797_v60 }
 0x4d0   : > { %7387 = vmatpush1.bf16.msra.mxu0 %v9800_v31 }
 0x4d1   : > { %7389 = vmatprep.subr.bf16.mxu0 %v9803_v55 }
 0x4d4   : > { %7391 = vmatpush1.bf16.msra.mxu0 %v9806_v10 }
 0x4d5   : > { %7393 = vmatprep.subr.bf16.mxu0 %v9809_v24 }
 0x4d8   : > { %7395 = vmatpush1.bf16.msra.mxu0 %v9812_v5 }
 0x4d9   : > { %7397 = vmatprep.subr.bf16.mxu0 %v9815_v59 }
 0x4dc   : > { %7399 = vmatpush1.bf16.msra.mxu0 %v9818_v17 }
 0x4dd   : > { %7401 = vmatprep.subr.bf16.mxu0 %v9821_v54 }
 0x4e0   : > { %7403 = vmatpush1.bf16.msra.mxu0 %v9824_v6 }
 0x4e1   : > { %7405 = vmatprep.subr.bf16.mxu0 %v9827_v58 }
 0x4e4   : > { %7407 = vmatpush1.bf16.msra.mxu0 %v9830_v12 }
 0x4e5   : > { %7409 = vmatprep.subr.bf16.mxu0 %v9833_v4 }
 0x4e8   : > { %7411 = vmatpush1.bf16.msra.mxu0 %v9836_v52 }
 0x4eb   : > { %3922 = vmatmul.mubr.f32.vlgmr.msra.gmra.mrb[26].mxu0 %v9520_v8 }
 0x4ec   : > { %4167 = vmatprep.mubr.f32.mxu0 %v11420_v21 }
 0x4fe   : > { %v9842_v50 = vpop.f32.mrb[20].mxu0 }
 0x4ff   : > { %v9844_v37 = vpop.f32.mrb[21].mxu0 }
 0x53e   : > { %v9846_v27 = vpop.f32.mrb[22].mxu0 }
 0x53f   : > { %v9848_v20 = vpop.f32.mrb[23].mxu0 }
 0x57e   : > { %v9850_v11 = vpop.f32.mrb[24].mxu0 }
 0x57f   : > { %11680 = vst [vmem:[#allocation255_spill] sm:$0xff] %v9850_v11  ;;  %v9852_v2 = vpop.f32.mrb[25].mxu0  ;;  %v6300_v11 = vld [vmem:[%s10814_s7 + $0xe] sm:$0x3] }
 0x596   : > { %v2071_v13 = vpop.f32.mrb[8].mxu1 }
 0x597   : > { %v2073_v28 = vpop.f32.mrb[9].mxu1 }
 0x598   : > { %6297 = vmatprep.subr.msk.mxu1 %vm900_vm2, %v2073_v28 }
 0x599   : > { %6298 = vmatpush1.msk.msra.mxu1 %vm900_vm2, %v2071_v13 }
 0x59a   : > { %6299 = vmatmul.mubr.msk.f32.vlgmr.msra.gmra.mrb[4].mxu1 %vm896_vm3, %v6296_v19  ;;  %6301 = vmatprep.subr.msk.mxu1 %vm900_vm2, %v9514_v23  ;;  %v4010_v23 = vld [vmem:[%s10819_s12] sm:$0x3]  ;;  %v6304_v19 = vld [vmem:[%s10814_s7 + $0x10] sm:$0x3] }
 0x59b   : > { %6302 = vmatpush1.msk.msra.mxu1 %vm900_vm2, %v9512_v22  ;;  %2369 = vmatprep.mubr.f32.mxu1 %v11420_v21 }
 0x59c   : > { %6837 = vmatprep.subr.bf16.mxu1 %v9700_v14  ;;  %4013 = vperm.xlu1 %8518, %v4010_v23   ;;  %v11682_v23 = vld [vmem:[#allocation44_spill] sm:$0xff] }
 0x5a2   : > { %6303 = vmatmul.mubr.msk.f32.vlgmr.msra.gmra.mrb[4].mxu1 %vm896_vm3, %v6300_v11  ;;  %v2598_v11 = vld [vmem:[%s10815_s8] sm:$0x3] }
 0x5a3   : > { %6839 = vmatpush1.bf16.msra.mxu1 %v9706_v16  ;;  %2509 = vmatprep.mubr.f32.mxu1 %v8924_v40 }
 0x5a4   : > { %6841 = vmatprep.subr.bf16.mxu1 %v9712_v41  ;;  %2601 = vperm.xlu1 %8518, %v2598_v11   ;;  %v11683_v11 = vld [vmem:[#allocation45_spill] sm:$0xff] }
 0x5a7   : > { %6843 = vmatpush1.bf16.msra.mxu1 %v9719_v7 }
 0x5a8   : > { %6845 = vmatprep.subr.bf16.mxu1 %v9725_v57 }
 0x5ab   : > { %6847 = vmatpush1.bf16.msra.mxu1 %v9732_v30 }
 0x5ac   : > { %6849 = vmatprep.subr.bf16.mxu1 %v9738_v42 }
 0x5af   : > { %6851 = vmatpush1.bf16.msra.mxu1 %v9744_v1 }
 0x5b0   : > { %6853 = vmatprep.subr.bf16.mxu1 %v9750_v9  ;;  %v11712_v9 = vld [vmem:[#allocation74_spill] sm:$0xff] }
 0x5b3   : > { %6855 = vmatpush1.bf16.msra.mxu1 %v9756_v35  ;;  %v11711_v35 = vld [vmem:[#allocation73_spill] sm:$0xff] }
 0x5b4   : > { %6857 = vmatprep.subr.bf16.mxu1 %v9762_v48  ;;  %v11710_v48 = vld [vmem:[#allocation72_spill] sm:$0xff] }
 0x5b7   : > { %6859 = vmatpush1.bf16.msra.mxu1 %v9768_v15  ;;  %v11709_v15 = vld [vmem:[#allocation71_spill] sm:$0xff] }
 0x5b8   : > { %6861 = vmatprep.subr.bf16.mxu1 %v9772_v62  ;;  %v11708_v62 = vld [vmem:[#allocation70_spill] sm:$0xff] }
 0x5bb   : > { %6863 = vmatpush1.bf16.msra.mxu1 %v9780_v34  ;;  %v11707_v34 = vld [vmem:[#allocation69_spill] sm:$0xff] }
 0x5bc   : > { %6865 = vmatprep.subr.bf16.mxu1 %v9783_v29  ;;  %v11706_v29 = vld [vmem:[#allocation68_spill] sm:$0xff] }
 0x5be   : > { %v9885_v40 = vpop.f32.mrb[26].mxu0 }
 0x5bf   : > { %6867 = vmatpush1.bf16.msra.mxu1 %v9787_v47  ;;  %v9888_v22 = vpop.f32.mrb[27].mxu0  ;;  %v11705_v47 = vld [vmem:[#allocation67_spill] sm:$0xff] }
 0x5c0   : > { %6869 = vmatprep.subr.bf16.mxu1 %v9791_v53  ;;  %v11704_v53 = vld [vmem:[#allocation66_spill] sm:$0xff] }
 0x5c3   : > { %6871 = vmatpush1.bf16.msra.mxu1 %v9794_v25  ;;  %v11703_v25 = vld [vmem:[#allocation65_spill] sm:$0xff] }
 0x5c4   : > { %6873 = vmatprep.subr.bf16.mxu1 %v9797_v60  ;;  %v11702_v60 = vld [vmem:[#allocation64_spill] sm:$0xff] }
 0x5c7   : > { %6875 = vmatpush1.bf16.msra.mxu1 %v9800_v31  ;;  %v11701_v31 = vld [vmem:[#allocation63_spill] sm:$0xff] }
 0x5c8   : > { %6877 = vmatprep.subr.bf16.mxu1 %v9803_v55  ;;  %v11700_v55 = vld [vmem:[#allocation62_spill] sm:$0xff] }
 0x5cb   : > { %6879 = vmatpush1.bf16.msra.mxu1 %v9806_v10  ;;  %v11699_v10 = vld [vmem:[#allocation61_spill] sm:$0xff] }
 0x5cc   : > { %6881 = vmatprep.subr.bf16.mxu1 %v9809_v24  ;;  %v11698_v24 = vld [vmem:[#allocation60_spill] sm:$0xff] }
 0x5cf   : > { %6883 = vmatpush1.bf16.msra.mxu1 %v9812_v5  ;;  %v11697_v5 = vld [vmem:[#allocation59_spill] sm:$0xff] }
 0x5d0   : > { %6885 = vmatprep.subr.bf16.mxu1 %v9815_v59  ;;  %v11696_v59 = vld [vmem:[#allocation58_spill] sm:$0xff] }
 0x5d3   : > { %6887 = vmatpush1.bf16.msra.mxu1 %v9818_v17  ;;  %v11695_v17 = vld [vmem:[#allocation57_spill] sm:$0xff] }
 0x5d4   : > { %6889 = vmatprep.subr.bf16.mxu1 %v9821_v54  ;;  %v11694_v54 = vld [vmem:[#allocation56_spill] sm:$0xff] }
 0x5d7   : > { %6891 = vmatpush1.bf16.msra.mxu1 %v9824_v6  ;;  %v11693_v6 = vld [vmem:[#allocation55_spill] sm:$0xff] }
 0x5d8   : > { %6893 = vmatprep.subr.bf16.mxu1 %v9827_v58  ;;  %v11692_v58 = vld [vmem:[#allocation54_spill] sm:$0xff] }
 0x5db   : > { %6895 = vmatpush1.bf16.msra.mxu1 %v9830_v12  ;;  %v11690_v12 = vld [vmem:[#allocation52_spill] sm:$0xff] }
 0x5dc   : > { %6897 = vmatprep.subr.bf16.mxu1 %v9833_v4  ;;  %v11689_v4 = vld [vmem:[#allocation51_spill] sm:$0xff] }
 0x5df   : > { %6899 = vmatpush1.bf16.msra.mxu1 %v9836_v52  ;;  %v11688_v52 = vld [vmem:[#allocation50_spill] sm:$0xff] }
 0x5e2   : > { %2510 = vmatmul.mubr.f32.vlgmr.msra.gmra.mrb[10].mxu1 %v8928_v45  ;;  %v2693_v45 = vld [vmem:[%s10818_s11] sm:$0x3] }
 0x5e3   : > { %2589 = vmatprep.mubr.f32.mxu1 %v11420_v21 }
 0x61b   : > { %v9973_v1 = vpop.permute.xlu1 %4013 }
 0x623   : > { %v2602_v30 = vpop.permute.xlu1 %2601 }
 0x6b5   : > { %v2511_v13 = vpop.f32.mrb[10].mxu1 }
 0x6b6   : > { %v2513_v28 = vpop.f32.mrb[11].mxu1 }
 0x6b7   : > { %6305 = vmatprep.subr.msk.mxu1 %vm900_vm2, %v2513_v28  ;;  %v11685_v28 = vld [vmem:[#allocation47_spill] sm:$0xff] }
 0x6b8   : > { %6306 = vmatpush1.msk.msra.mxu1 %vm900_vm2, %v2511_v13  ;;  %v11684_v13 = vld [vmem:[#allocation46_spill] sm:$0xff] }
 0x6b9   : > { %6307 = vmatmul.mubr.msk.f32.vlgmr.msra.gmra.mrb[4].mxu1 %vm896_vm3, %v6304_v19  ;;  %6312 = vmatprep.subr.msk.mxu1 %vm900_vm2, %v9776_v26  ;;  %v11681_v26 = vld [vmem:[#allocation43_spill] sm:$0xff]  ;;  %v11686_v19 = vld [vmem:[#allocation48_spill] sm:$0xff] }
 0x6ba   : > { %6313 = vmatpush1.msk.msra.mxu1 %vm900_vm2, %v9774_v63  ;;  %2838 = vmatprep.mubr.f32.mxu1 %v11420_v21  ;;  %v6311_v63 = vld [vmem:[%s10818_s11 + $0x8] sm:$0x3] }
 0x6bb   : > { %6315 = vmatprep.subr.msk.mxu1 %vm900_vm2, %v9518_v36 }
 0x6bd   : > { %6314 = vmatmul.mubr.msk.f32.vlgmr.msra.gmra.mrb[12].mxu1 %vm896_vm3, %v2693_v45  ;;  %v11687_v45 = vld [vmem:[#allocation49_spill] sm:$0xff] }
 0x6be   : > { %6316 = vmatpush1.msk.msra.mxu1 %vm900_vm2, %v9520_v8  ;;  %2918 = vmatprep.mubr.f32.mxu1 %v11420_v21 }
 0x6bf   : > { %6965 = vmatprep.subr.bf16.mxu1 %v11681_v26 }
 0x6c5   : > { %6317 = vmatmul.mubr.msk.f32.vlgmr.msra.gmra.mrb[12].mxu1 %vm896_vm3, %v6311_v63  ;;  %v11691_v63 = vld [vmem:[#allocation53_spill] sm:$0xff] }
 0x6c6   : > { %6967 = vmatpush1.bf16.msra.mxu1 %v11682_v23  ;;  %2991 = vmatprep.mubr.f32.mxu1 %v9518_v36 }
 0x6c7   : > { %6969 = vmatprep.subr.bf16.mxu1 %v11683_v11 }
 0x6ca   : > { %6971 = vmatpush1.bf16.msra.mxu1 %v11684_v13 }
 0x6cb   : > { %6973 = vmatprep.subr.bf16.mxu1 %v11685_v28 }
 0x6ce   : > { %6975 = vmatpush1.bf16.msra.mxu1 %v11686_v19 }
 0x6cf   : > { %6977 = vmatprep.subr.bf16.mxu1 %v11687_v45 }
 0x6d2   : > { %6979 = vmatpush1.bf16.msra.mxu1 %v11688_v52 }
 0x6d3   : > { %6981 = vmatprep.subr.bf16.mxu1 %v11689_v4 }
 0x6d6   : > { %6983 = vmatpush1.bf16.msra.mxu1 %v11690_v12 }
 0x6d7   : > { %6985 = vmatprep.subr.bf16.mxu1 %v11691_v63 }
 0x6da   : > { %6987 = vmatpush1.bf16.msra.mxu1 %v11692_v58 }
 0x6db   : > { %6989 = vmatprep.subr.bf16.mxu1 %v11693_v6 }
 0x6de   : > { %6991 = vmatpush1.bf16.msra.mxu1 %v11694_v54 }
 0x6df   : > { %6993 = vmatprep.subr.bf16.mxu1 %v11695_v17 }
 0x6e2   : > { %6995 = vmatpush1.bf16.msra.mxu1 %v11696_v59 }
 0x6e3   : > { %6997 = vmatprep.subr.bf16.mxu1 %v11697_v5 }
 0x6e6   : > { %6999 = vmatpush1.bf16.msra.mxu1 %v11698_v24 }
 0x6e7   : > { %7001 = vmatprep.subr.bf16.mxu1 %v11699_v10 }
 0x6ea   : > { %7003 = vmatpush1.bf16.msra.mxu1 %v11700_v55 }
 0x6eb   : > { %7005 = vmatprep.subr.bf16.mxu1 %v11701_v31 }
 0x6ee   : > { %7007 = vmatpush1.bf16.msra.mxu1 %v11702_v60 }
 0x6ef   : > { %7009 = vmatprep.subr.bf16.mxu1 %v11703_v25 }
 0x6f2   : > { %7011 = vmatpush1.bf16.msra.mxu1 %v11704_v53 }
 0x6f3   : > { %7013 = vmatprep.subr.bf16.mxu1 %v11705_v47 }
 0x6f6   : > { %7015 = vmatpush1.bf16.msra.mxu1 %v11706_v29  ;;  %v6318_v29 = vld [vmem:[%s10818_s11 + $0x2] sm:$0x3] }
 0x6f7   : > { %7017 = vmatprep.subr.bf16.mxu1 %v11707_v34 }
 0x6fa   : > { %7019 = vmatpush1.bf16.msra.mxu1 %v11708_v62 }
 0x6fb   : > { %7021 = vmatprep.subr.bf16.mxu1 %v11709_v15 }
 0x6fe   : > { %7023 = vmatpush1.bf16.msra.mxu1 %v11710_v48 }
 0x6ff   : > { %7025 = vmatprep.subr.bf16.mxu1 %v11711_v35 }
 0x702   : > { %7027 = vmatpush1.bf16.msra.mxu1 %v11712_v9 }
 0x705   : > { %2992 = vmatmul.mubr.f32.vlgmr.msra.gmra.mrb[14].mxu1 %v9520_v8 }
 0x706   : > { %3071 = vmatprep.mubr.f32.mxu1 %v11420_v21 }
 0x78c   : > { %v2591_v42 = vpop.f32.mrb[4].mxu1 }
 0x78d   : > { %v8438_v57 = vadd.f32 %v2591_v42, %v9374_v49  ;;  %v2593_v7 = vpop.f32.mrb[5].mxu1  ;;  %v6322_v49 = vld [vmem:[%s10818_s11 + $0x4] sm:$0x3]  ;;  %v11720_v42 = vld [vmem:[#allocation178_spill] sm:$0xff] }
 0x78e   : > { %v8441_v41 = vadd.f32 %v2593_v7, %v9377_v39  ;;  %v11713_v39 = vld [vmem:[#allocation171_spill] sm:$0xff] }
 0x78f   : > { %v2604_v16 = vadd.f32 %v8438_v57, %v2602_v30  ;;  %v11717_v7 = vld [vmem:[#allocation175_spill] sm:$0xff]  ;;  %v11718_v57 = vld [vmem:[#allocation176_spill] sm:$0xff] }
 0x790   : > { %v2605_v14 = vadd.f32 %v8441_v41, %v2602_v30  ;;  %v11714_v41 = vld [vmem:[#allocation172_spill] sm:$0xff]  ;;  %v11719_v30 = vld [vmem:[#allocation177_spill] sm:$0xff] }
 0x791   : > { %v2606_v35 = vmax.f32 %v2604_v16, 0.0  ;;  %v11716_v16 = vld [vmem:[#allocation174_spill] sm:$0xff] }
 0x792   : > { %v2607_v48 = vmax.f32 %v2605_v14, 0.0  ;;  %v11715_v14 = vld [vmem:[#allocation173_spill] sm:$0xff] }
 0x793   : > { %v6155_v15 = vrot.slane %v2606_v35, 6  ;;  %v11722_v35 = vld [vmem:[#allocation180_spill] sm:$0xff] }
 0x794   : > { %v6156_v9 = vrot.slane %v2607_v48, 6  ;;  %v11723_v48 = vld [vmem:[#allocation181_spill] sm:$0xff] }
 0x795   : > { %6159 = vst [vmem:[%s8920_s20] sm:$0xc] %v6155_v15  ;;  %v11724_v15 = vld [vmem:[#allocation182_spill] sm:$0xff] }
 0x796   : > { %6160 = vst [vmem:[%s8920_s20 + $0x8] sm:$0xc] %v6156_v9  ;;  %v11721_v9 = vld [vmem:[#allocation179_spill] sm:$0xff] }
 0x7d8   : > { %v2993_v62 = vpop.f32.mrb[14].mxu1 }
 0x7d9   : > { %v2995_v34 = vpop.f32.mrb[15].mxu1 }
 0x7da   : > { %6319 = vmatprep.subr.msk.mxu1 %vm900_vm2, %v2995_v34  ;;  %v11726_v34 = vld [vmem:[#allocation184_spill] sm:$0xff] }
 0x7db   : > { %6320 = vmatpush1.msk.msra.mxu1 %vm900_vm2, %v2993_v62  ;;  %v11725_v62 = vld [vmem:[#allocation183_spill] sm:$0xff] }
 0x7dc   : > { %6321 = vmatmul.mubr.msk.f32.vlgmr.msra.gmra.mrb[12].mxu1 %vm896_vm3, %v6318_v29  ;;  %6323 = vmatprep.subr.msk.mxu1 %vm900_vm2, %v9844_v37  ;;  %v11727_v29 = vld [vmem:[#allocation185_spill] sm:$0xff]  ;;  %v11729_v37 = vld [vmem:[#allocation187_spill] sm:$0xff] }
 0x7dd   : > { %6324 = vmatpush1.msk.msra.mxu1 %vm900_vm2, %v9842_v50  ;;  %3226 = vmatprep.mubr.f32.mxu1 %v11420_v21  ;;  %v11728_v50 = vld [vmem:[#allocation186_spill] sm:$0xff] }
 0x7de   : > { %7093 = vmatprep.subr.bf16.mxu1 %v9403_v44 }
 0x7e4   : > { %6325 = vmatmul.mubr.msk.f32.vlgmr.msra.gmra.mrb[12].mxu1 %vm896_vm3, %v6322_v49  ;;  %v11730_v49 = vld [vmem:[#allocation188_spill] sm:$0xff] }
 0x7e5   : > { %7095 = vmatpush1.bf16.msra.mxu1 %v9408_v46  ;;  %3301 = vmatprep.mubr.f32.mxu1 %v9518_v36 }
 0x7e6   : > { %7097 = vmatprep.subr.bf16.mxu1 %v9411_v61 }
 0x7e9   : > { %7099 = vmatpush1.bf16.msra.mxu1 %v9418_v0 }
 0x7ea   : > { %7101 = vmatprep.subr.bf16.mxu1 %v9421_v3 }
 0x7ed   : > { %7103 = vmatpush1.bf16.msra.mxu1 %v9424_v32 }
 0x7ee   : > { %7105 = vmatprep.subr.bf16.mxu1 %v9427_v51 }
 0x7f1   : > { %7107 = vmatpush1.bf16.msra.mxu1 %v9430_v38 }
 0x7f2   : > { %7109 = vmatprep.subr.bf16.mxu1 %v9433_v43 }
 0x7f5   : > { %7111 = vmatpush1.bf16.msra.mxu1 %v9436_v33 }
 0x7f6   : > { %7113 = vmatprep.subr.bf16.mxu1 %v9439_v18 }
 0x7f9   : > { %7115 = vmatpush1.bf16.msra.mxu1 %v9442_v56 }
 0x7fa   : > { %7117 = vmatprep.subr.bf16.mxu1 %v11713_v39 }
 0x7fd   : > { %7119 = vmatpush1.bf16.msra.mxu1 %v11714_v41 }
 0x7fe   : > { %7121 = vmatprep.subr.bf16.mxu1 %v11715_v14 }
 0x801   : > { %7123 = vmatpush1.bf16.msra.mxu1 %v11716_v16 }
 0x802   : > { %7125 = vmatprep.subr.bf16.mxu1 %v11717_v7 }
 0x805   : > { %7127 = vmatpush1.bf16.msra.mxu1 %v11718_v57 }
 0x806   : > { %7129 = vmatprep.subr.bf16.mxu1 %v11719_v30 }
 0x809   : > { %7131 = vmatpush1.bf16.msra.mxu1 %v11720_v42  ;;  %v11731_v42 = vld [vmem:[#allocation189_spill] sm:$0xff] }
 0x80a   : > { %7133 = vmatprep.subr.bf16.mxu1 %v11721_v9  ;;  %v11732_v9 = vld [vmem:[#allocation190_spill] sm:$0xff] }
 0x80d   : > { %7135 = vmatpush1.bf16.msra.mxu1 %v11722_v35 }
 0x80e   : > { %7137 = vmatprep.subr.bf16.mxu1 %v11723_v48 }
 0x811   : > { %7139 = vmatpush1.bf16.msra.mxu1 %v11724_v15 }
 0x812   : > { %7141 = vmatprep.subr.bf16.mxu1 %v11725_v62 }
 0x815   : > { %7143 = vmatpush1.bf16.msra.mxu1 %v11726_v34 }
 0x816   : > { %7145 = vmatprep.subr.bf16.mxu1 %v11727_v29  ;;  %v6326_v29 = vld [vmem:[%s10818_s11 + $0x6] sm:$0x3] }
 0x819   : > { %7147 = vmatpush1.bf16.msra.mxu1 %v11728_v50  ;;  %v11742_v50 = vld [vmem:[#allocation200_spill] sm:$0xff] }
 0x81a   : > { %7149 = vmatprep.subr.bf16.mxu1 %v11729_v37  ;;  %v11741_v37 = vld [vmem:[#allocation199_spill] sm:$0xff] }
 0x81d   : > { %7151 = vmatpush1.bf16.msra.mxu1 %v11730_v49  ;;  %v11739_v49 = vld [vmem:[#allocation197_spill] sm:$0xff] }
 0x81e   : > { %7153 = vmatprep.subr.bf16.mxu1 %v11731_v42  ;;  %v6330_v42 = vld [vmem:[%s10818_s11 + $0xa] sm:$0x3] }
 0x821   : > { %7155 = vmatpush1.bf16.msra.mxu1 %v11732_v9  ;;  %v11733_v9 = vld [vmem:[#allocation191_spill] sm:$0xff] }
 0x824   : > { %3302 = vmatmul.mubr.f32.vlgmr.msra.gmra.mrb[16].mxu1 %v9520_v8 }
 0x825   : > { %3381 = vmatprep.mubr.f32.mxu1 %v11420_v21 }
 0x8f7   : > { %v3303_v15 = vpop.f32.mrb[16].mxu1 }
 0x8f8   : > { %v3305_v62 = vpop.f32.mrb[17].mxu1 }
 0x8f9   : > { %6327 = vmatprep.subr.msk.mxu1 %vm900_vm2, %v3305_v62  ;;  %v11734_v62 = vld [vmem:[#allocation192_spill] sm:$0xff] }
 0x8fa   : > { %6328 = vmatpush1.msk.msra.mxu1 %vm900_vm2, %v3303_v15  ;;  %v11735_v15 = vld [vmem:[#allocation193_spill] sm:$0xff] }
 0x8fb   : > { %6329 = vmatmul.mubr.msk.f32.vlgmr.msra.gmra.mrb[12].mxu1 %vm896_vm3, %v6326_v29  ;;  %6331 = vmatprep.subr.msk.mxu1 %vm900_vm2, %v9848_v20  ;;  %v11736_v20 = vld [vmem:[#allocation194_spill] sm:$0xff]  ;;  %v11737_v29 = vld [vmem:[#allocation195_spill] sm:$0xff] }
 0x8fc   : > { %6332 = vmatpush1.msk.msra.mxu1 %vm900_vm2, %v9846_v27  ;;  %3536 = vmatprep.mubr.f32.mxu1 %v11420_v21  ;;  %v11738_v27 = vld [vmem:[#allocation196_spill] sm:$0xff] }
 0x8fd   : > { %7221 = vmatprep.subr.bf16.mxu1 %v11733_v9  ;;  %v11740_v9 = vld [vmem:[#allocation198_spill] sm:$0xff] }
 0x903   : > { %6333 = vmatmul.mubr.msk.f32.vlgmr.msra.gmra.mrb[12].mxu1 %vm896_vm3, %v6330_v42  ;;  %v11743_v42 = vld [vmem:[#allocation201_spill] sm:$0xff] }
 0x904   : > { %7223 = vmatpush1.bf16.msra.mxu1 %v11734_v62  ;;  %3611 = vmatprep.mubr.f32.mxu1 %v9518_v36  ;;  %v11744_v62 = vld [vmem:[#allocation202_spill] sm:$0xff]  ;;  %v11745_v36 = vld [vmem:[#allocation203_spill] sm:$0xff] }
 0x905   : > { %7225 = vmatprep.subr.bf16.mxu1 %v11735_v15  ;;  %v11746_v15 = vld [vmem:[#allocation204_spill] sm:$0xff] }
 0x908   : > { %7227 = vmatpush1.bf16.msra.mxu1 %v11736_v20  ;;  %v11747_v20 = vld [vmem:[#allocation205_spill] sm:$0xff] }
 0x909   : > { %7229 = vmatprep.subr.bf16.mxu1 %v11737_v29  ;;  %v11748_v29 = vld [vmem:[#allocation206_spill] sm:$0xff] }
 0x90c   : > { %7231 = vmatpush1.bf16.msra.mxu1 %v11738_v27  ;;  %v11749_v27 = vld [vmem:[#allocation207_spill] sm:$0xff] }
 0x90d   : > { %7233 = vmatprep.subr.bf16.mxu1 %v11739_v49  ;;  %v11750_v49 = vld [vmem:[#allocation208_spill] sm:$0xff] }
 0x910   : > { %7235 = vmatpush1.bf16.msra.mxu1 %v11740_v9  ;;  %v11751_v9 = vld [vmem:[#allocation209_spill] sm:$0xff] }
 0x911   : > { %7237 = vmatprep.subr.bf16.mxu1 %v11741_v37  ;;  %v11752_v37 = vld [vmem:[#allocation210_spill] sm:$0xff] }
 0x914   : > { %7239 = vmatpush1.bf16.msra.mxu1 %v11742_v50  ;;  %v11753_v50 = vld [vmem:[#allocation211_spill] sm:$0xff] }
 0x915   : > { %7241 = vmatprep.subr.bf16.mxu1 %v11743_v42  ;;  %v11754_v42 = vld [vmem:[#allocation213_spill] sm:$0xff] }
 0x918   : > { %7243 = vmatpush1.bf16.msra.mxu1 %v11744_v62  ;;  %v11755_v62 = vld [vmem:[#allocation215_spill] sm:$0xff] }
 0x919   : > { %7245 = vmatprep.subr.bf16.mxu1 %v11745_v36  ;;  %v11756_v36 = vld [vmem:[#allocation217_spill] sm:$0xff] }
 0x91c   : > { %7247 = vmatpush1.bf16.msra.mxu1 %v11746_v15  ;;  %v11757_v15 = vld [vmem:[#allocation219_spill] sm:$0xff] }
 0x91d   : > { %7249 = vmatprep.subr.bf16.mxu1 %v11747_v20  ;;  %v11758_v20 = vld [vmem:[#allocation221_spill] sm:$0xff] }
 0x920   : > { %7251 = vmatpush1.bf16.msra.mxu1 %v11748_v29  ;;  %v11759_v29 = vld [vmem:[#allocation223_spill] sm:$0xff] }
 0x921   : > { %7253 = vmatprep.subr.bf16.mxu1 %v11749_v27  ;;  %v11760_v27 = vld [vmem:[#allocation225_spill] sm:$0xff] }
 0x924   : > { %7255 = vmatpush1.bf16.msra.mxu1 %v11750_v49  ;;  %v11761_v49 = vld [vmem:[#allocation227_spill] sm:$0xff] }
 0x925   : > { %7257 = vmatprep.subr.bf16.mxu1 %v11751_v9  ;;  %v11762_v9 = vld [vmem:[#allocation229_spill] sm:$0xff] }
 0x928   : > { %7259 = vmatpush1.bf16.msra.mxu1 %v11752_v37  ;;  %v11763_v37 = vld [vmem:[#allocation231_spill] sm:$0xff] }
 0x929   : > { %7261 = vmatprep.subr.bf16.mxu1 %v11753_v50  ;;  %v11764_v50 = vld [vmem:[#allocation233_spill] sm:$0xff] }
 0x92c   : > { %7263 = vmatpush1.bf16.msra.mxu1 %v11754_v42 }
 0x92d   : > { %7265 = vmatprep.subr.bf16.mxu1 %v11755_v62 }
 0x930   : > { %7267 = vmatpush1.bf16.msra.mxu1 %v11756_v36 }
 0x931   : > { %7269 = vmatprep.subr.bf16.mxu1 %v11757_v15 }
 0x934   : > { %7271 = vmatpush1.bf16.msra.mxu1 %v11758_v20  ;;  %v6063_v20 = vld [vmem:[%s10823_s16] sm:$0x3] }
 0x935   : > { %7273 = vmatprep.subr.bf16.mxu1 %v11759_v29  ;;  %6066 = vperm.xlu1 %8518, %v6063_v20   ;;  %v6338_v20 = vld [vmem:[%s10818_s11 + $0xe] sm:$0x3] }
 0x938   : > { %7275 = vmatpush1.bf16.msra.mxu1 %v11760_v27 }
 0x939   : > { %7277 = vmatprep.subr.bf16.mxu1 %v11761_v49  ;;  %v6334_v49 = vld [vmem:[%s10818_s11 + $0xc] sm:$0x3] }
 0x93c   : > { %7279 = vmatpush1.bf16.msra.mxu1 %v11762_v9 }
 0x93d   : > { %7281 = vmatprep.subr.bf16.mxu1 %v11763_v37  ;;  %v11776_v37 = vld [vmem:[#allocation20_spill] sm:$0xff] }
 0x940   : > { %7283 = vmatpush1.bf16.msra.mxu1 %v11764_v50  ;;  %v11775_v50 = vld [vmem:[#allocation19_spill] sm:$0xff] }
 0x943   : > { %3612 = vmatmul.mubr.f32.vlgmr.msra.gmra.mrb[18].mxu1 %v9520_v8  ;;  %v11765_v8 = vld [vmem:[#allocation255_spill] sm:$0xff] }
 0x944   : > { %3691 = vmatprep.mubr.f32.mxu1 %v11420_v21 }
 0xa16   : > { %v3613_v29 = vpop.f32.mrb[18].mxu1 }
 0xa17   : > { %v3615_v15 = vpop.f32.mrb[19].mxu1 }
 0xa18   : > { %6335 = vmatprep.subr.msk.mxu1 %vm900_vm2, %v3615_v15  ;;  %v11768_v15 = vld [vmem:[#allocation12_spill] sm:$0xff] }
 0xa19   : > { %6336 = vmatpush1.msk.msra.mxu1 %vm900_vm2, %v3613_v29  ;;  %v11769_v29 = vld [vmem:[#allocation13_spill] sm:$0xff] }
 0xa1a   : > { %6337 = vmatmul.mubr.msk.f32.vlgmr.msra.gmra.mrb[12].mxu1 %vm896_vm3, %v6334_v49  ;;  %6339 = vmatprep.subr.msk.mxu1 %vm900_vm2, %v9852_v2  ;;  %v11766_v2 = vld [vmem:[#allocation10_spill] sm:$0xff]  ;;  %v6342_v49 = vld [vmem:[%s10818_s11 + $0x10] sm:$0x3] }
 0xa1b   : > { %6340 = vmatpush1.msk.msra.mxu1 %vm900_vm2, %v11765_v8  ;;  %3846 = vmatprep.mubr.f32.mxu1 %v11420_v21  ;;  %v11770_v8 = vld [vmem:[#allocation14_spill] sm:$0xff] }
 0xa1c   : > { %6343 = vmatprep.subr.msk.mxu1 %vm900_vm2, %v9888_v22  ;;  %v11767_v22 = vld [vmem:[#allocation11_spill] sm:$0xff] }
 0xa22   : > { %6341 = vmatmul.mubr.msk.f32.vlgmr.msra.gmra.mrb[12].mxu1 %vm896_vm3, %v6338_v20  ;;  %v11771_v20 = vld [vmem:[#allocation15_spill] sm:$0xff] }
 0xa23   : > { %6344 = vmatpush1.msk.msra.mxu1 %vm900_vm2, %v9885_v40  ;;  %4001 = vmatprep.mubr.f32.mxu1 %v11420_v21  ;;  %v11772_v40 = vld [vmem:[#allocation16_spill] sm:$0xff]  ;;  %v11773_v21 = vld [vmem:[#allocation17_spill] sm:$0xff] }
 0xa24   : > { %7413 = vmatprep.subr.bf16.mxu1 %v11766_v2  ;;  %v11774_v2 = vld [vmem:[#allocation18_spill] sm:$0xff] }
 0xa2a   : > { %6345 = vmatmul.mubr.msk.f32.vlgmr.msra.gmra.mrb[12].mxu1 %vm896_vm3, %v6342_v49  ;;  %v11777_v49 = vld [vmem:[#allocation21_spill] sm:$0xff] }
 0xa2b   : > { %7415 = vmatpush1.bf16.msra.mxu1 %v11767_v22  ;;  %v11778_v22 = vld [vmem:[#allocation22_spill] sm:$0xff] }
 0xa2c   : > { %7417 = vmatprep.subr.bf16.mxu1 %v11768_v15  ;;  %v11779_v15 = vld [vmem:[#allocation23_spill] sm:$0xff] }
 0xa2f   : > { %7419 = vmatpush1.bf16.msra.mxu1 %v11769_v29  ;;  %v11780_v29 = vld [vmem:[#allocation24_spill] sm:$0xff] }
 0xa30   : > { %7421 = vmatprep.subr.bf16.mxu1 %v11770_v8  ;;  %v11781_v8 = vld [vmem:[#allocation25_spill] sm:$0xff] }
 0xa33   : > { %7423 = vmatpush1.bf16.msra.mxu1 %v11771_v20  ;;  %v11782_v20 = vld [vmem:[#allocation26_spill] sm:$0xff] }
 0xa34   : > { %7425 = vmatprep.subr.bf16.mxu1 %v11772_v40  ;;  %v11783_v40 = vld [vmem:[#allocation27_spill] sm:$0xff] }
 0xa37   : > { %7427 = vmatpush1.bf16.msra.mxu1 %v11773_v21  ;;  %v11784_v21 = vld [vmem:[#allocation28_spill] sm:$0xff] }
 0xa38   : > { %7429 = vmatprep.subr.bf16.mxu1 %v11774_v2  ;;  %v11785_v2 = vld [vmem:[#allocation29_spill] sm:$0xff] }
 0xa3b   : > { %7431 = vmatpush1.bf16.msra.mxu1 %v11775_v50  ;;  %v11786_v50 = vld [vmem:[#allocation30_spill] sm:$0xff] }
 0xa3c   : > { %7433 = vmatprep.subr.bf16.mxu1 %v11776_v37  ;;  %v11787_v37 = vld [vmem:[#allocation31_spill] sm:$0xff] }
 0xa3f   : > { %7435 = vmatpush1.bf16.msra.mxu1 %v11777_v49  ;;  %v11788_v49 = vld [vmem:[#allocation32_spill] sm:$0xff] }
 0xa40   : > { %7437 = vmatprep.subr.bf16.mxu1 %v11778_v22  ;;  %v11789_v22 = vld [vmem:[#allocation33_spill] sm:$0xff] }
 0xa43   : > { %7439 = vmatpush1.bf16.msra.mxu1 %v11779_v15  ;;  %v11790_v15 = vld [vmem:[#allocation34_spill] sm:$0xff] }
 0xa44   : > { %7441 = vmatprep.subr.bf16.mxu1 %v11780_v29  ;;  %v11791_v29 = vld [vmem:[#allocation35_spill] sm:$0xff] }
 0xa47   : > { %7443 = vmatpush1.bf16.msra.mxu1 %v11781_v8  ;;  %v11792_v8 = vld [vmem:[#allocation36_spill] sm:$0xff] }
 0xa48   : > { %7445 = vmatprep.subr.bf16.mxu1 %v11782_v20  ;;  %v11793_v20 = vld [vmem:[#allocation37_spill] sm:$0xff] }
 0xa4b   : > { %7447 = vmatpush1.bf16.msra.mxu1 %v11783_v40  ;;  %v11794_v40 = vld [vmem:[#allocation38_spill] sm:$0xff] }
 0xa4c   : > { %7449 = vmatprep.subr.bf16.mxu1 %v11784_v21  ;;  %v11795_v21 = vld [vmem:[#allocation39_spill] sm:$0xff] }
 0xa4f   : > { %7451 = vmatpush1.bf16.msra.mxu1 %v11785_v2  ;;  %v11796_v2 = vld [vmem:[#allocation40_spill] sm:$0xff] }
 0xa50   : > { %7453 = vmatprep.subr.bf16.mxu1 %v11786_v50  ;;  %v11797_v50 = vld [vmem:[#allocation41_spill] sm:$0xff] }
 0xa53   : > { %7455 = vmatpush1.bf16.msra.mxu1 %v11787_v37 }
 0xa54   : > { %7457 = vmatprep.subr.bf16.mxu1 %v11788_v49 }
 0xa57   : > { %7459 = vmatpush1.bf16.msra.mxu1 %v11789_v22 }
 0xa58   : > { %7461 = vmatprep.subr.bf16.mxu1 %v11790_v15 }
 0xa5b   : > { %7463 = vmatpush1.bf16.msra.mxu1 %v11791_v29 }
 0xa5c   : > { %7465 = vmatprep.subr.bf16.mxu1 %v11792_v8 }
 0xa5f   : > { %7467 = vmatpush1.bf16.msra.mxu1 %v11793_v20  ;;  %v11807_v20 = vld [vmem:[#allocation182_spill] sm:$0xff] }
 0xa60   : > { %7469 = vmatprep.subr.bf16.mxu1 %v11794_v40  ;;  %v11806_v40 = vld [vmem:[#allocation179_spill] sm:$0xff] }
 0xa63   : > { %7471 = vmatpush1.bf16.msra.mxu1 %v11795_v21  ;;  %v11805_v21 = vld [vmem:[#allocation178_spill] sm:$0xff] }
 0xa64   : > { %7473 = vmatprep.subr.bf16.mxu1 %v11796_v2  ;;  %v11804_v2 = vld [vmem:[#allocation74_spill] sm:$0xff] }
 0xa67   : > { %7475 = vmatpush1.bf16.msra.mxu1 %v11797_v50  ;;  %v11803_v50 = vld [vmem:[#allocation73_spill] sm:$0xff] }
 0xa68   : > { %7477 = vmatprep.subr.bf16.mxu1 %v11681_v26 }
 0xafd   : > { %v4003_v49 = vpop.f32.mrb[12].mxu1 }
 0xafe   : > { %v4016_v22 = vadd.f32 %v9973_v1, %v4003_v49  ;;  %v4005_v15 = vpop.f32.mrb[13].mxu1  ;;  %v11802_v49 = vld [vmem:[#allocation72_spill] sm:$0xff] }
 0xaff   : > { %v4017_v29 = vadd.f32 %v9973_v1, %v4005_v15  ;;  %v11798_v1 = vld [vmem:[#allocation68_spill] sm:$0xff]  ;;  %v11800_v15 = vld [vmem:[#allocation70_spill] sm:$0xff] }
 0xb00   : > { %v10143_v8 = vmax.f32 %v4016_v22, 0.0  ;;  %v11799_v22 = vld [vmem:[#allocation69_spill] sm:$0xff] }
 0xb01   : > { %v10141_v37 = vmax.f32 %v4017_v29, 0.0  ;;  %v11801_v29 = vld [vmem:[#allocation71_spill] sm:$0xff] }
 0xb03   : > { %4087 = vmatprep.mubr.f32.mxu1 %v10141_v37 }
 0xb04   : > { %4088 = vmatmul.mubr.f32.vlgmr.msra.gmra.mrb[20].mxu1 %v10143_v8 }
 0xb05   : > { %7479 = vmatpush1.bf16.msra.mxu1 %v11682_v23  ;;  %4320 = vmatprep.mubr.f32.mxu1 %v10141_v37 }
 0xb06   : > { %7481 = vmatprep.subr.bf16.mxu1 %v11683_v11 }
 0xb09   : > { %7483 = vmatpush1.bf16.msra.mxu1 %v11684_v13 }
 0xb0a   : > { %7485 = vmatprep.subr.bf16.mxu1 %v11685_v28 }
 0xb0d   : > { %7487 = vmatpush1.bf16.msra.mxu1 %v11686_v19 }
 0xb0e   : > { %7489 = vmatprep.subr.bf16.mxu1 %v11687_v45 }
 0xb11   : > { %7491 = vmatpush1.bf16.msra.mxu1 %v11688_v52 }
 0xb12   : > { %7493 = vmatprep.subr.bf16.mxu1 %v11689_v4 }
 0xb15   : > { %7495 = vmatpush1.bf16.msra.mxu1 %v11690_v12 }
 0xb16   : > { %7497 = vmatprep.subr.bf16.mxu1 %v11691_v63 }
 0xb19   : > { %7499 = vmatpush1.bf16.msra.mxu1 %v11692_v58 }
 0xb1a   : > { %7501 = vmatprep.subr.bf16.mxu1 %v11693_v6 }
 0xb1d   : > { %7503 = vmatpush1.bf16.msra.mxu1 %v11694_v54 }
 0xb1e   : > { %7505 = vmatprep.subr.bf16.mxu1 %v11695_v17 }
 0xb21   : > { %7507 = vmatpush1.bf16.msra.mxu1 %v11696_v59 }
 0xb22   : > { %7509 = vmatprep.subr.bf16.mxu1 %v11697_v5 }
 0xb25   : > { %7511 = vmatpush1.bf16.msra.mxu1 %v11698_v24 }
 0xb26   : > { %7513 = vmatprep.subr.bf16.mxu1 %v11699_v10 }
 0xb29   : > { %7515 = vmatpush1.bf16.msra.mxu1 %v11700_v55 }
 0xb2a   : > { %7517 = vmatprep.subr.bf16.mxu1 %v11701_v31 }
 0xb2d   : > { %7519 = vmatpush1.bf16.msra.mxu1 %v11702_v60 }
 0xb2e   : > { %7521 = vmatprep.subr.bf16.mxu1 %v11703_v25 }
 0xb31   : > { %7523 = vmatpush1.bf16.msra.mxu1 %v11704_v53 }
 0xb32   : > { %7525 = vmatprep.subr.bf16.mxu1 %v11705_v47 }
 0xb35   : > { %7527 = vmatpush1.bf16.msra.mxu1 %v11798_v1 }
 0xb36   : > { %7529 = vmatprep.subr.bf16.mxu1 %v11799_v22 }
 0xb39   : > { %7531 = vmatpush1.bf16.msra.mxu1 %v11800_v15 }
 0xb3a   : > { %7533 = vmatprep.subr.bf16.mxu1 %v11801_v29 }
 0xb3d   : > { %7535 = vmatpush1.bf16.msra.mxu1 %v11802_v49 }
 0xb3e   : > { %7537 = vmatprep.subr.bf16.mxu1 %v11803_v50 }
 0xb41   : > { %7539 = vmatpush1.bf16.msra.mxu1 %v11804_v2 }
 0xb42   : > { %7605 = vmatprep.subr.bf16.mxu1 %v9403_v44 }
 0xb44   : > { %4321 = vmatmul.mubr.f32.vlgmr.msra.gmra.mrb[22].mxu1 %v10143_v8 }
 0xb45   : > { %7607 = vmatpush1.bf16.msra.mxu1 %v9408_v46  ;;  %4630 = vmatprep.mubr.f32.mxu1 %v10141_v37 }
 0xb46   : > { %7609 = vmatprep.subr.bf16.mxu1 %v9411_v61 }
 0xb49   : > { %7611 = vmatpush1.bf16.msra.mxu1 %v9418_v0 }
 0xb4a   : > { %7613 = vmatprep.subr.bf16.mxu1 %v9421_v3 }
 0xb4d   : > { %7615 = vmatpush1.bf16.msra.mxu1 %v9424_v32 }
 0xb4e   : > { %7617 = vmatprep.subr.bf16.mxu1 %v9427_v51 }
 0xb51   : > { %7619 = vmatpush1.bf16.msra.mxu1 %v9430_v38 }
 0xb52   : > { %7621 = vmatprep.subr.bf16.mxu1 %v9433_v43 }
 0xb55   : > { %7623 = vmatpush1.bf16.msra.mxu1 %v9436_v33 }
 0xb56   : > { %7625 = vmatprep.subr.bf16.mxu1 %v9439_v18 }
 0xb59   : > { %7627 = vmatpush1.bf16.msra.mxu1 %v9442_v56 }
 0xb5a   : > { %7629 = vmatprep.subr.bf16.mxu1 %v11713_v39 }
 0xb5d   : > { %7631 = vmatpush1.bf16.msra.mxu1 %v11714_v41  ;;  %v11808_v41 = vld [vmem:[#allocation183_spill] sm:$0xff] }
 0xb5e   : > { %7633 = vmatprep.subr.bf16.mxu1 %v11715_v14 }
 0xb61   : > { %7635 = vmatpush1.bf16.msra.mxu1 %v11716_v16  ;;  %v11809_v16 = vld [vmem:[#allocation185_spill] sm:$0xff] }
 0xb62   : > { %7637 = vmatprep.subr.bf16.mxu1 %v11717_v7  ;;  %v11810_v7 = vld [vmem:[#allocation186_spill] sm:$0xff] }
 0xb65   : > { %7639 = vmatpush1.bf16.msra.mxu1 %v11718_v57  ;;  %v11811_v57 = vld [vmem:[#allocation187_spill] sm:$0xff] }
 0xb66   : > { %7641 = vmatprep.subr.bf16.mxu1 %v11719_v30  ;;  %v11812_v30 = vld [vmem:[#allocation188_spill] sm:$0xff] }
 0xb69   : > { %7643 = vmatpush1.bf16.msra.mxu1 %v11805_v21  ;;  %v11813_v21 = vld [vmem:[#allocation189_spill] sm:$0xff] }
 0xb6a   : > { %7645 = vmatprep.subr.bf16.mxu1 %v11806_v40  ;;  %v11814_v40 = vld [vmem:[#allocation190_spill] sm:$0xff] }
 0xb6d   : > { %7647 = vmatpush1.bf16.msra.mxu1 %v11722_v35  ;;  %v11815_v35 = vld [vmem:[#allocation191_spill] sm:$0xff] }
 0xb6e   : > { %7649 = vmatprep.subr.bf16.mxu1 %v11723_v48  ;;  %v11827_v48 = vld [vmem:[#allocation203_spill] sm:$0xff] }
 0xb71   : > { %7651 = vmatpush1.bf16.msra.mxu1 %v11807_v20  ;;  %v11816_v20 = vld [vmem:[#allocation192_spill] sm:$0xff] }
 0xb72   : > { %7653 = vmatprep.subr.bf16.mxu1 %v11808_v41  ;;  %v11825_v41 = vld [vmem:[#allocation201_spill] sm:$0xff] }
 0xb75   : > { %7655 = vmatpush1.bf16.msra.mxu1 %v11726_v34  ;;  %v11817_v34 = vld [vmem:[#allocation193_spill] sm:$0xff] }
 0xb76   : > { %7657 = vmatprep.subr.bf16.mxu1 %v11809_v16  ;;  %v11818_v16 = vld [vmem:[#allocation194_spill] sm:$0xff] }
 0xb79   : > { %7659 = vmatpush1.bf16.msra.mxu1 %v11810_v7  ;;  %v11819_v7 = vld [vmem:[#allocation195_spill] sm:$0xff] }
 0xb7a   : > { %7661 = vmatprep.subr.bf16.mxu1 %v11811_v57  ;;  %v11820_v57 = vld [vmem:[#allocation196_spill] sm:$0xff] }
 0xb7d   : > { %7663 = vmatpush1.bf16.msra.mxu1 %v11812_v30  ;;  %v11821_v30 = vld [vmem:[#allocation197_spill] sm:$0xff] }
 0xb7e   : > { %7665 = vmatprep.subr.bf16.mxu1 %v11813_v21  ;;  %v11822_v21 = vld [vmem:[#allocation198_spill] sm:$0xff] }
 0xb81   : > { %7667 = vmatpush1.bf16.msra.mxu1 %v11814_v40  ;;  %v11823_v40 = vld [vmem:[#allocation199_spill] sm:$0xff] }
 0xb82   : > { %7733 = vmatprep.subr.bf16.mxu1 %v11815_v35  ;;  %v11824_v35 = vld [vmem:[#allocation200_spill] sm:$0xff] }
 0xb84   : > { %4631 = vmatmul.mubr.f32.vlgmr.msra.gmra.mrb[24].mxu1 %v10143_v8 }
 0xb85   : > { %7735 = vmatpush1.bf16.msra.mxu1 %v11816_v20  ;;  %4940 = vmatprep.mubr.f32.mxu1 %v10141_v37  ;;  %v11826_v20 = vld [vmem:[#allocation202_spill] sm:$0xff] }
 0xb86   : > { %7737 = vmatprep.subr.bf16.mxu1 %v11817_v34  ;;  %v11828_v34 = vld [vmem:[#allocation204_spill] sm:$0xff] }
 0xb89   : > { %7739 = vmatpush1.bf16.msra.mxu1 %v11818_v16  ;;  %v11829_v16 = vld [vmem:[#allocation205_spill] sm:$0xff] }
 0xb8a   : > { %7741 = vmatprep.subr.bf16.mxu1 %v11819_v7  ;;  %v11830_v7 = vld [vmem:[#allocation206_spill] sm:$0xff] }
 0xb8d   : > { %7743 = vmatpush1.bf16.msra.mxu1 %v11820_v57  ;;  %v11831_v57 = vld [vmem:[#allocation207_spill] sm:$0xff] }
 0xb8e   : > { %7745 = vmatprep.subr.bf16.mxu1 %v11821_v30  ;;  %v11832_v30 = vld [vmem:[#allocation208_spill] sm:$0xff] }
 0xb91   : > { %7747 = vmatpush1.bf16.msra.mxu1 %v11822_v21  ;;  %v11833_v21 = vld [vmem:[#allocation209_spill] sm:$0xff] }
 0xb92   : > { %7749 = vmatprep.subr.bf16.mxu1 %v11823_v40  ;;  %v11834_v40 = vld [vmem:[#allocation210_spill] sm:$0xff] }
 0xb95   : > { %7751 = vmatpush1.bf16.msra.mxu1 %v11824_v35  ;;  %v11835_v35 = vld [vmem:[#allocation211_spill] sm:$0xff] }
 0xb96   : > { %7753 = vmatprep.subr.bf16.mxu1 %v11825_v41 }
 0xb99   : > { %7755 = vmatpush1.bf16.msra.mxu1 %v11826_v20 }
 0xb9a   : > { %7757 = vmatprep.subr.bf16.mxu1 %v11827_v48 }
 0xb9d   : > { %7759 = vmatpush1.bf16.msra.mxu1 %v11828_v34  ;;  %v11836_v34 = vld [vmem:[#allocation219_spill] sm:$0xff] }
 0xb9e   : > { %7761 = vmatprep.subr.bf16.mxu1 %v11829_v16  ;;  %v11837_v16 = vld [vmem:[#allocation221_spill] sm:$0xff] }
 0xba1   : > { %7763 = vmatpush1.bf16.msra.mxu1 %v11830_v7  ;;  %v11838_v7 = vld [vmem:[#allocation223_spill] sm:$0xff] }
 0xba2   : > { %7765 = vmatprep.subr.bf16.mxu1 %v11831_v57 }
 0xba5   : > { %7767 = vmatpush1.bf16.msra.mxu1 %v11832_v30  ;;  %v11839_v30 = vld [vmem:[#allocation227_spill] sm:$0xff] }
 0xba6   : > { %7769 = vmatprep.subr.bf16.mxu1 %v11833_v21  ;;  %v11871_v21 = vld [vmem:[#allocation250_spill] sm:$0xff] }
 0xba9   : > { %7771 = vmatpush1.bf16.msra.mxu1 %v11834_v40  ;;  %v11840_v40 = vld [vmem:[#allocation231_spill] sm:$0xff] }
 0xbaa   : > { %7773 = vmatprep.subr.bf16.mxu1 %v11835_v35  ;;  %v11841_v35 = vld [vmem:[#allocation233_spill] sm:$0xff] }
 0xbad   : > { %7775 = vmatpush1.bf16.msra.mxu1 %v11754_v42  ;;  %v11842_v42 = vld [vmem:[#allocation212_spill] sm:$0xff] }
 0xbae   : > { %7777 = vmatprep.subr.bf16.mxu1 %v11755_v62 }
 0xbb1   : > { %7779 = vmatpush1.bf16.msra.mxu1 %v11756_v36  ;;  %v11843_v36 = vld [vmem:[#allocation214_spill] sm:$0xff] }
 0xbb2   : > { %7781 = vmatprep.subr.bf16.mxu1 %v11836_v34  ;;  %v11852_v34 = vld [vmem:[#allocation232_spill] sm:$0xff] }
 0xbb5   : > { %7783 = vmatpush1.bf16.msra.mxu1 %v11837_v16  ;;  %v11844_v16 = vld [vmem:[#allocation216_spill] sm:$0xff] }
 0xbb6   : > { %7785 = vmatprep.subr.bf16.mxu1 %v11838_v7  ;;  %v11845_v7 = vld [vmem:[#allocation218_spill] sm:$0xff] }
 0xbb9   : > { %7787 = vmatpush1.bf16.msra.mxu1 %v11760_v27  ;;  %v11846_v27 = vld [vmem:[#allocation220_spill] sm:$0xff] }
 0xbba   : > { %7789 = vmatprep.subr.bf16.mxu1 %v11839_v30  ;;  %v11847_v30 = vld [vmem:[#allocation222_spill] sm:$0xff] }
 0xbbd   : > { %7791 = vmatpush1.bf16.msra.mxu1 %v11762_v9  ;;  %v11848_v9 = vld [vmem:[#allocation224_spill] sm:$0xff] }
 0xbbe   : > { %7793 = vmatprep.subr.bf16.mxu1 %v11840_v40  ;;  %v11849_v40 = vld [vmem:[#allocation226_spill] sm:$0xff] }
 0xbc1   : > { %7795 = vmatpush1.bf16.msra.mxu1 %v11841_v35  ;;  %v11850_v35 = vld [vmem:[#allocation228_spill] sm:$0xff] }
 0xbc2   : > { %7861 = vmatprep.subr.bf16.mxu1 %v11842_v42  ;;  %v11851_v42 = vld [vmem:[#allocation230_spill] sm:$0xff] }
 0xbc4   : > { %4941 = vmatmul.mubr.f32.vlgmr.msra.gmra.mrb[26].mxu1 %v10143_v8 }
 0xbc5   : > { %7863 = vmatpush1.bf16.msra.mxu1 %v11843_v36  ;;  %5250 = vmatprep.mubr.f32.mxu1 %v10141_v37 }
 0xbc6   : > { %7865 = vmatprep.subr.bf16.mxu1 %v11844_v16  ;;  %v11854_v16 = vld [vmem:[#allocation234_spill] sm:$0xff] }
 0xbc9   : > { %7867 = vmatpush1.bf16.msra.mxu1 %v11845_v7  ;;  %v4022_v7 = vld [vmem:[%s11853_s26] sm:$0x3] }
 0xbca   : > { %7869 = vmatprep.subr.bf16.mxu1 %v11846_v27  ;;  %v11867_v27 = vld [vmem:[#allocation246_spill] sm:$0xff] }
 0xbcd   : > { %7871 = vmatpush1.bf16.msra.mxu1 %v11847_v30  ;;  %v11866_v30 = vld [vmem:[#allocation245_spill] sm:$0xff] }
 0xbce   : > { %7873 = vmatprep.subr.bf16.mxu1 %v11848_v9  ;;  %v11855_v9 = vld [vmem:[#allocation235_spill] sm:$0xff] }
 0xbd1   : > { %7875 = vmatpush1.bf16.msra.mxu1 %v11849_v40  ;;  %v11863_v40 = vld [vmem:[#allocation242_spill] sm:$0xff] }
 0xbd2   : > { %7877 = vmatprep.subr.bf16.mxu1 %v11850_v35  ;;  %v11858_v35 = vld [vmem:[#allocation237_spill] sm:$0xff] }
 0xbd5   : > { %7879 = vmatpush1.bf16.msra.mxu1 %v11851_v42  ;;  %v11857_v42 = vld [vmem:[#allocation236_spill] sm:$0xff] }
 0xbd6   : > { %7881 = vmatprep.subr.bf16.mxu1 %v11852_v34  ;;  %v11856_v34 = vmov 0.0  }
 0xbd7   : > { %v4089_v36 = vpop.f32.mrb[20].mxu1 }
 0xbd8   : > { %v4091_v62 = vpop.f32.mrb[21].mxu1 }
 0xbd9   : > { %7883 = vmatpush1.bf16.msra.mxu1 %v11854_v16  ;;  %6347 = vmatprep.subr.msk.mxu0 %vm900_vm2, %v4091_v62  ;;  %v6346_v62 = vld [vmem:[%s11853_s26 + $0x8] sm:$0x3]  ;;  %v11862_v16 = vld [vmem:[#allocation241_spill] sm:$0xff] }
 0xbda   : > { %6348 = vmatpush1.msk.msra.mxu0 %vm900_vm2, %v4089_v36  ;;  %7885 = vmatprep.subr.bf16.mxu1 %v11855_v9  ;;  %v11859_v36 = vld [vmem:[#allocation238_spill] sm:$0xff]  ;;  %v11860_v9 = vld [vmem:[#allocation239_spill] sm:$0xff] }
 0xbdb   : > { %6350 = vmatprep.subr.msk.mxu0 %vm900_vm2, %v10141_v37  ;;  %6349 = vmatmul.mubr.msk.f32.vlgmr.msra.gmra.mrb[28].mxu0 %vm896_vm3, %v4022_v7  ;;  %v11861_v7 = vld [vmem:[#allocation240_spill] sm:$0xff] }
 0xbdc   : > { %6351 = vmatpush1.msk.msra.mxu0 %vm900_vm2, %v10143_v8  ;;  %4247 = vmatprep.mubr.f32.mxu0 %v11856_v34 }
 0xbdd   : > { %7887 = vmatpush1.bf16.msra.mxu1 %v11857_v42  ;;  %v11864_v42 = vld [vmem:[#allocation243_spill] sm:$0xff] }
 0xbde   : > { %7889 = vmatprep.subr.bf16.mxu1 %v11858_v35  ;;  %v11865_v35 = vld [vmem:[#allocation244_spill] sm:$0xff] }
 0xbe1   : > { %7891 = vmatpush1.bf16.msra.mxu1 %v11859_v36  ;;  %v11868_v36 = vld [vmem:[#allocation247_spill] sm:$0xff] }
 0xbe2   : > { %7893 = vmatprep.subr.bf16.mxu1 %v11860_v9  ;;  %v11869_v9 = vld [vmem:[#allocation248_spill] sm:$0xff] }
 0xbe3   : > { %6352 = vmatmul.mubr.msk.f32.vlgmr.msra.gmra.mrb[28].mxu0 %vm896_vm3, %v6346_v62  ;;  %v11870_v62 = vld [vmem:[#allocation249_spill] sm:$0xff] }
 0xbe4   : > { %4400 = vmatprep.mubr.f32.mxu0 %v11856_v34 }
 0xbe5   : > { %7895 = vmatpush1.bf16.msra.mxu1 %v11861_v7  ;;  %v11872_v7 = vld [vmem:[#allocation251_spill] sm:$0xff] }
 0xbe6   : > { %7897 = vmatprep.subr.bf16.mxu1 %v11862_v16  ;;  %v11873_v16 = vld [vmem:[#allocation252_spill] sm:$0xff] }
 0xbe9   : > { %7899 = vmatpush1.bf16.msra.mxu1 %v11863_v40  ;;  %v11874_v40 = vld [vmem:[#allocation253_spill] sm:$0xff] }
 0xbea   : > { %7901 = vmatprep.subr.bf16.mxu1 %v11864_v42  ;;  %v11875_v42 = vld [vmem:[#allocation254_spill] sm:$0xff] }
 0xbed   : > { %7903 = vmatpush1.bf16.msra.mxu1 %v11865_v35 }
 0xbee   : > { %7905 = vmatprep.subr.bf16.mxu1 %v11866_v30 }
 0xbf1   : > { %7907 = vmatpush1.bf16.msra.mxu1 %v11867_v27 }
 0xbf2   : > { %7909 = vmatprep.subr.bf16.mxu1 %v11868_v36  ;;  %v11876_v36 = vld [vmem:[#allocation9_spill] sm:$0xff] }
 0xbf5   : > { %7911 = vmatpush1.bf16.msra.mxu1 %v11869_v9 }
 0xbf6   : > { %7913 = vmatprep.subr.bf16.mxu1 %v11870_v62 }
 0xbf9   : > { %7915 = vmatpush1.bf16.msra.mxu1 %v11871_v21 }
 0xbfa   : > { %7917 = vmatprep.subr.bf16.mxu1 %v11872_v7 }
 0xbfd   : > { %7919 = vmatpush1.bf16.msra.mxu1 %v11873_v16 }
 0xbfe   : > { %7921 = vmatprep.subr.bf16.mxu1 %v11874_v40 }
 0xc01   : > { %7923 = vmatpush1.bf16.msra.mxu1 %v11875_v42 }
 0xc02   : > { %7989 = vmatprep.subr.bf16.mxu1 %v11681_v26 }
 0xc04   : > { %5251 = vmatmul.mubr.f32.vlgmr.msra.gmra.mrb[28].mxu1 %v10143_v8 }
 0xc05   : > { %7991 = vmatpush1.bf16.msra.mxu1 %v11682_v23  ;;  %5506 = vmatprep.mubr.f32.mxu1 %v11876_v36 }
 0xc06   : > { %7993 = vmatprep.subr.bf16.mxu1 %v11683_v11  ;;  %v6353_v11 = vld [vmem:[%s11853_s26 + $0x2] sm:$0x3] }
 0xc09   : > { %7995 = vmatpush1.bf16.msra.mxu1 %v11684_v13  ;;  %v11880_v13 = vld [vmem:[#allocation78_spill] sm:$0xff] }
 0xc0a   : > { %7997 = vmatprep.subr.bf16.mxu1 %v11685_v28  ;;  %v11883_v28 = vld [vmem:[#allocation81_spill] sm:$0xff] }
 0xc0d   : > { %7999 = vmatpush1.bf16.msra.mxu1 %v11686_v19  ;;  %v11884_v19 = vld [vmem:[#allocation82_spill] sm:$0xff] }
 0xc0e   : > { %8001 = vmatprep.subr.bf16.mxu1 %v11687_v45  ;;  %v11897_v45 = vld [vmem:[#allocation95_spill] sm:$0xff] }
 0xc11   : > { %8003 = vmatpush1.bf16.msra.mxu1 %v11688_v52  ;;  %v11879_v52 = vld [vmem:[#allocation77_spill] sm:$0xff] }
 0xc12   : > { %8005 = vmatprep.subr.bf16.mxu1 %v11689_v4  ;;  %v11877_v4 = vld [vmem:[#allocation75_spill] sm:$0xff] }
 0xc15   : > { %8007 = vmatpush1.bf16.msra.mxu1 %v11690_v12  ;;  %v11878_v12 = vld [vmem:[#allocation76_spill] sm:$0xff] }
 0xc16   : > { %8009 = vmatprep.subr.bf16.mxu1 %v11691_v63  ;;  %v11898_v63 = vld [vmem:[#allocation96_spill] sm:$0xff] }
 0xc17   : > { %v4322_v26 = vpop.f32.mrb[22].mxu1 }
 0xc18   : > { %v4324_v23 = vpop.f32.mrb[23].mxu1 }
 0xc19   : > { %6354 = vmatprep.subr.msk.mxu0 %vm900_vm2, %v4324_v23  ;;  %8011 = vmatpush1.bf16.msra.mxu1 %v11692_v58  ;;  %v11881_v58 = vld [vmem:[#allocation79_spill] sm:$0xff]  ;;  %v11917_v23 = vld [vmem:[#allocation181_spill] sm:$0xff] }
 0xc1a   : > { %6355 = vmatpush1.msk.msra.mxu0 %vm900_vm2, %v4322_v26  ;;  %8013 = vmatprep.subr.bf16.mxu1 %v11693_v6  ;;  %v11882_v6 = vld [vmem:[#allocation80_spill] sm:$0xff]  ;;  %v11914_v26 = vld [vmem:[#allocation178_spill] sm:$0xff] }
 0xc1b   : > { %6356 = vmatmul.mubr.msk.f32.vlgmr.msra.gmra.mrb[28].mxu0 %vm896_vm3, %v6353_v11  ;;  %7541 = vmatprep.subr.bf16.mxu0 %v11877_v4  ;;  %v11918_v11 = vld [vmem:[#allocation182_spill] sm:$0xff] }
 0xc1c   : > { %7543 = vmatpush1.bf16.msra.mxu0 %v11878_v12  ;;  %4475 = vmatprep.mubr.f32.mxu0 %v10141_v37 }
 0xc1d   : > { %7545 = vmatprep.subr.bf16.mxu0 %v11879_v52  ;;  %8015 = vmatpush1.bf16.msra.mxu1 %v11694_v54  ;;  %v11885_v54 = vld [vmem:[#allocation83_spill] sm:$0xff] }
 0xc1e   : > { %8017 = vmatprep.subr.bf16.mxu1 %v11695_v17  ;;  %v11886_v17 = vld [vmem:[#allocation84_spill] sm:$0xff] }
 0xc20   : > { %7547 = vmatpush1.bf16.msra.mxu0 %v11880_v13 }
 0xc21   : > { %7549 = vmatprep.subr.bf16.mxu0 %v11881_v58  ;;  %8019 = vmatpush1.bf16.msra.mxu1 %v11696_v59  ;;  %v11887_v59 = vld [vmem:[#allocation85_spill] sm:$0xff] }
 0xc22   : > { %8021 = vmatprep.subr.bf16.mxu1 %v11697_v5  ;;  %v11888_v5 = vld [vmem:[#allocation86_spill] sm:$0xff] }
 0xc24   : > { %7551 = vmatpush1.bf16.msra.mxu0 %v11882_v6 }
 0xc25   : > { %7553 = vmatprep.subr.bf16.mxu0 %v11883_v28  ;;  %8023 = vmatpush1.bf16.msra.mxu1 %v11698_v24  ;;  %v11889_v24 = vld [vmem:[#allocation87_spill] sm:$0xff] }
 0xc26   : > { %8025 = vmatprep.subr.bf16.mxu1 %v11699_v10  ;;  %v11890_v10 = vld [vmem:[#allocation88_spill] sm:$0xff] }
 0xc28   : > { %7555 = vmatpush1.bf16.msra.mxu0 %v11884_v19 }
 0xc29   : > { %7557 = vmatprep.subr.bf16.mxu0 %v11885_v54  ;;  %8027 = vmatpush1.bf16.msra.mxu1 %v11700_v55  ;;  %v11891_v55 = vld [vmem:[#allocation89_spill] sm:$0xff] }
 0xc2a   : > { %8029 = vmatprep.subr.bf16.mxu1 %v11701_v31  ;;  %v11896_v31 = vld [vmem:[#allocation94_spill] sm:$0xff] }
 0xc2c   : > { %7559 = vmatpush1.bf16.msra.mxu0 %v11886_v17 }
 0xc2d   : > { %7561 = vmatprep.subr.bf16.mxu0 %v11887_v59  ;;  %8031 = vmatpush1.bf16.msra.mxu1 %v11702_v60  ;;  %v11892_v60 = vld [vmem:[#allocation90_spill] sm:$0xff] }
 0xc2e   : > { %8033 = vmatprep.subr.bf16.mxu1 %v11703_v25  ;;  %v11893_v25 = vld [vmem:[#allocation91_spill] sm:$0xff] }
 0xc30   : > { %7563 = vmatpush1.bf16.msra.mxu0 %v11888_v5 }
 0xc31   : > { %7565 = vmatprep.subr.bf16.mxu0 %v11889_v24  ;;  %8035 = vmatpush1.bf16.msra.mxu1 %v11704_v53  ;;  %v11894_v53 = vld [vmem:[#allocation92_spill] sm:$0xff] }
 0xc32   : > { %8037 = vmatprep.subr.bf16.mxu1 %v11705_v47  ;;  %v11895_v47 = vld [vmem:[#allocation93_spill] sm:$0xff] }
 0xc34   : > { %7567 = vmatpush1.bf16.msra.mxu0 %v11890_v10 }
 0xc35   : > { %7569 = vmatprep.subr.bf16.mxu0 %v11891_v55  ;;  %8039 = vmatpush1.bf16.msra.mxu1 %v11798_v1  ;;  %v10362_v1 = vld [vmem:[%s8784_s18] sm:$0xff]  ;;  %s12121_s18 = sld [smem:[#allocation259_spill]] }
 0xc36   : > { %8041 = vmatprep.subr.bf16.mxu1 %v11799_v22  ;;  %v11899_v22 = vld [vmem:[#allocation97_spill] sm:$0xff] }
 0xc38   : > { %7571 = vmatpush1.bf16.msra.mxu0 %v11892_v60 }
 0xc39   : > { %7573 = vmatprep.subr.bf16.mxu0 %v11893_v25  ;;  %8043 = vmatpush1.bf16.msra.mxu1 %v11800_v15  ;;  %v11901_v15 = vld [vmem:[#allocation99_spill] sm:$0xff] }
 0xc3a   : > { %8045 = vmatprep.subr.bf16.mxu1 %v11801_v29  ;;  %v11906_v29 = vld [vmem:[#allocation104_spill] sm:$0xff] }
 0xc3c   : > { %7575 = vmatpush1.bf16.msra.mxu0 %v11894_v53 }
 0xc3d   : > { %7577 = vmatprep.subr.bf16.mxu0 %v11895_v47  ;;  %8047 = vmatpush1.bf16.msra.mxu1 %v11802_v49  ;;  %v11913_v49 = vld [vmem:[#allocation177_spill] sm:$0xff] }
 0xc3e   : > { %8049 = vmatprep.subr.bf16.mxu1 %v11803_v50  ;;  %v11900_v50 = vld [vmem:[#allocation98_spill] sm:$0xff] }
 0xc40   : > { %7579 = vmatpush1.bf16.msra.mxu0 %v11896_v31 }
 0xc41   : > { %7581 = vmatprep.subr.bf16.mxu0 %v11897_v45  ;;  %8051 = vmatpush1.bf16.msra.mxu1 %v11804_v2  ;;  %v11903_v2 = vld [vmem:[#allocation101_spill] sm:$0xff] }
 0xc42   : > { %8117 = vmatprep.subr.bf16.mxu1 %v9403_v44  ;;  %v11902_v44 = vld [vmem:[#allocation100_spill] sm:$0xff] }
 0xc44   : > { %7583 = vmatpush1.bf16.msra.mxu0 %v11898_v63  ;;  %5507 = vmatmul.mubr.f32.vlgmr.msra.gmra.mrb[30].mxu1 %v10362_v1 }
 0xc45   : > { %7585 = vmatprep.subr.bf16.mxu0 %v11899_v22  ;;  %8119 = vmatpush1.bf16.msra.mxu1 %v9408_v46  ;;  %v11904_v46 = vld [vmem:[#allocation102_spill] sm:$0xff] }
 0xc46   : > { %8121 = vmatprep.subr.bf16.mxu1 %v9411_v61  ;;  %5682 = vmatprep.mubr.f32.mxu1 %v11876_v36  ;;  %v11905_v61 = vld [vmem:[#allocation103_spill] sm:$0xff] }
 0xc48   : > { %7587 = vmatpush1.bf16.msra.mxu0 %v11900_v50 }
 0xc49   : > { %7589 = vmatprep.subr.bf16.mxu0 %v11901_v15  ;;  %8123 = vmatpush1.bf16.msra.mxu1 %v9418_v0  ;;  %v11907_v0 = vld [vmem:[#allocation105_spill] sm:$0xff] }
 0xc4a   : > { %8125 = vmatprep.subr.bf16.mxu1 %v9421_v3 }
 0xc4c   : > { %7591 = vmatpush1.bf16.msra.mxu0 %v11902_v44 }
 0xc4d   : > { %7593 = vmatprep.subr.bf16.mxu0 %v11903_v2  ;;  %8127 = vmatpush1.bf16.msra.mxu1 %v9424_v32  ;;  %v11908_v32 = vld [vmem:[#allocation106_spill] sm:$0xff] }
 0xc4e   : > { %8129 = vmatprep.subr.bf16.mxu1 %v9427_v51 }
 0xc50   : > { %7595 = vmatpush1.bf16.msra.mxu0 %v11904_v46 }
 0xc51   : > { %7597 = vmatprep.subr.bf16.mxu0 %v11905_v61  ;;  %8131 = vmatpush1.bf16.msra.mxu1 %v9430_v38  ;;  %v11909_v38 = vld [vmem:[#allocation172_spill] sm:$0xff] }
 0xc52   : > { %8133 = vmatprep.subr.bf16.mxu1 %v9433_v43  ;;  %v11910_v43 = vld [vmem:[#allocation174_spill] sm:$0xff] }
 0xc54   : > { %7599 = vmatpush1.bf16.msra.mxu0 %v11906_v29 }
 0xc55   : > { %7601 = vmatprep.subr.bf16.mxu0 %v11907_v0  ;;  %8135 = vmatpush1.bf16.msra.mxu1 %v9436_v33  ;;  %v11911_v33 = vld [vmem:[#allocation175_spill] sm:$0xff] }
 0xc56   : > { %8137 = vmatprep.subr.bf16.mxu1 %v9439_v18  ;;  %v11912_v18 = vld [vmem:[#allocation176_spill] sm:$0xff] }
 0xc57   : > { %v10385_v3 = vpop.f32.mrb[24].mxu1 }
 0xc58   : > { %7603 = vmatpush1.bf16.msra.mxu0 %v11908_v32  ;;  %v10388_v51 = vpop.f32.mrb[25].mxu1 }
 0xc59   : > { %8139 = vmatpush1.bf16.msra.mxu1 %v9442_v56  ;;  %v11915_v56 = vld [vmem:[#allocation179_spill] sm:$0xff] }
 0xc5a   : > { %8141 = vmatprep.subr.bf16.mxu1 %v11713_v39  ;;  %v11916_v39 = vld [vmem:[#allocation180_spill] sm:$0xff] }
 0xc5b   : > { %4476 = vmatmul.mubr.f32.vlgmr.msra.gmra.mrb[30].mxu0 %v10143_v8 }
 0xc5c   : > { %4555 = vmatprep.mubr.f32.mxu0 %v11856_v34 }
 0xc5d   : > { %8143 = vmatpush1.bf16.msra.mxu1 %v11909_v38  ;;  %v11919_v38 = vld [vmem:[#allocation183_spill] sm:$0xff] }
 0xc5e   : > { %8145 = vmatprep.subr.bf16.mxu1 %v11715_v14  ;;  %v11920_v14 = vld [vmem:[#allocation184_spill] sm:$0xff] }
 0xc61   : > { %8147 = vmatpush1.bf16.msra.mxu1 %v11910_v43  ;;  %v11921_v43 = vld [vmem:[#allocation185_spill] sm:$0xff] }
 0xc62   : > { %8149 = vmatprep.subr.bf16.mxu1 %v11911_v33  ;;  %v11922_v33 = vld [vmem:[#allocation186_spill] sm:$0xff] }
 0xc65   : > { %8151 = vmatpush1.bf16.msra.mxu1 %v11912_v18  ;;  %v11923_v18 = vld [vmem:[#allocation187_spill] sm:$0xff] }
 0xc66   : > { %8153 = vmatprep.subr.bf16.mxu1 %v11913_v49  ;;  %v11924_v49 = vld [vmem:[#allocation188_spill] sm:$0xff] }
 0xc69   : > { %8155 = vmatpush1.bf16.msra.mxu1 %v11914_v26  ;;  %v11925_v26 = vld [vmem:[#allocation189_spill] sm:$0xff] }
 0xc6a   : > { %8157 = vmatprep.subr.bf16.mxu1 %v11915_v56  ;;  %v11926_v56 = vld [vmem:[#allocation190_spill] sm:$0xff] }
 0xc6d   : > { %8159 = vmatpush1.bf16.msra.mxu1 %v11916_v39  ;;  %v11927_v39 = vld [vmem:[#allocation191_spill] sm:$0xff] }
 0xc6e   : > { %8161 = vmatprep.subr.bf16.mxu1 %v11917_v23  ;;  %v11928_v23 = vld [vmem:[#allocation192_spill] sm:$0xff] }
 0xc71   : > { %8163 = vmatpush1.bf16.msra.mxu1 %v11918_v11  ;;  %v11929_v11 = vld [vmem:[#allocation193_spill] sm:$0xff] }
 0xc72   : > { %8165 = vmatprep.subr.bf16.mxu1 %v11919_v38  ;;  %v11930_v38 = vld [vmem:[#allocation194_spill] sm:$0xff] }
 0xc75   : > { %8167 = vmatpush1.bf16.msra.mxu1 %v11920_v14  ;;  %v11931_v14 = vld [vmem:[#allocation195_spill] sm:$0xff] }
 0xc76   : > { %8169 = vmatprep.subr.bf16.mxu1 %v11921_v43  ;;  %v11932_v43 = vld [vmem:[#allocation196_spill] sm:$0xff] }
 0xc79   : > { %8171 = vmatpush1.bf16.msra.mxu1 %v11922_v33  ;;  %v11933_v33 = vld [vmem:[#allocation197_spill] sm:$0xff] }
 0xc7a   : > { %8173 = vmatprep.subr.bf16.mxu1 %v11923_v18  ;;  %v11934_v18 = vld [vmem:[#allocation198_spill] sm:$0xff] }
 0xc7d   : > { %8175 = vmatpush1.bf16.msra.mxu1 %v11924_v49  ;;  %v11935_v49 = vld [vmem:[#allocation199_spill] sm:$0xff] }
 0xc7e   : > { %8177 = vmatprep.subr.bf16.mxu1 %v11925_v26  ;;  %v11936_v26 = vld [vmem:[#allocation200_spill] sm:$0xff] }
 0xc81   : > { %8179 = vmatpush1.bf16.msra.mxu1 %v11926_v56 }
 0xc82   : > { %8245 = vmatprep.subr.bf16.mxu1 %v11927_v39 }
 0xc84   : > { %5683 = vmatmul.mubr.f32.vlgmr.msra.gmra.mrb[32].mxu1 %v10362_v1 }
 0xc85   : > { %8247 = vmatpush1.bf16.msra.mxu1 %v11928_v23  ;;  %5858 = vmatprep.mubr.f32.mxu1 %v11876_v36  ;;  %v11937_v23 = vld [vmem:[#allocation204_spill] sm:$0xff] }
 0xc86   : > { %8249 = vmatprep.subr.bf16.mxu1 %v11929_v11  ;;  %v11938_v11 = vld [vmem:[#allocation205_spill] sm:$0xff] }
 0xc89   : > { %8251 = vmatpush1.bf16.msra.mxu1 %v11930_v38  ;;  %v11939_v38 = vld [vmem:[#allocation206_spill] sm:$0xff] }
 0xc8a   : > { %8253 = vmatprep.subr.bf16.mxu1 %v11931_v14  ;;  %v11940_v14 = vld [vmem:[#allocation208_spill] sm:$0xff] }
 0xc8d   : > { %8255 = vmatpush1.bf16.msra.mxu1 %v11932_v43  ;;  %v11941_v43 = vld [vmem:[#allocation209_spill] sm:$0xff] }
 0xc8e   : > { %8257 = vmatprep.subr.bf16.mxu1 %v11933_v33  ;;  %v11943_v33 = vld [vmem:[#allocation211_spill] sm:$0xff] }
 0xc91   : > { %8259 = vmatpush1.bf16.msra.mxu1 %v11934_v18  ;;  %v11944_v18 = vld [vmem:[#allocation213_spill] sm:$0xff] }
 0xc92   : > { %8261 = vmatprep.subr.bf16.mxu1 %v11935_v49  ;;  %v11947_v49 = vld [vmem:[#allocation219_spill] sm:$0xff] }
 0xc95   : > { %8263 = vmatpush1.bf16.msra.mxu1 %v11936_v26  ;;  %v11948_v26 = vld [vmem:[#allocation221_spill] sm:$0xff] }
 0xc96   : > { %8265 = vmatprep.subr.bf16.mxu1 %v11825_v41  ;;  %v11942_v41 = vld [vmem:[#allocation210_spill] sm:$0xff] }
 0xc97   : > { %v10426_v56 = vpop.f32.mrb[26].mxu1 }
 0xc98   : > { %v10428_v39 = vpop.f32.mrb[27].mxu1 }
 0xc99   : > { %8267 = vmatpush1.bf16.msra.mxu1 %v11826_v20  ;;  %v11945_v20 = vld [vmem:[#allocation215_spill] sm:$0xff] }
 0xc9a   : > { %8269 = vmatprep.subr.bf16.mxu1 %v11827_v48  ;;  %v11946_v48 = vld [vmem:[#allocation217_spill] sm:$0xff] }
 0xc9d   : > { %8271 = vmatpush1.bf16.msra.mxu1 %v11937_v23  ;;  %v11949_v23 = vld [vmem:[#allocation223_spill] sm:$0xff] }
 0xc9e   : > { %8273 = vmatprep.subr.bf16.mxu1 %v11938_v11  ;;  %v11951_v11 = vld [vmem:[#allocation227_spill] sm:$0xff] }
 0xca1   : > { %8275 = vmatpush1.bf16.msra.mxu1 %v11939_v38  ;;  %v11952_v38 = vld [vmem:[#allocation229_spill] sm:$0xff] }
 0xca2   : > { %8277 = vmatprep.subr.bf16.mxu1 %v11831_v57  ;;  %v11950_v57 = vld [vmem:[#allocation225_spill] sm:$0xff] }
 0xca5   : > { %8279 = vmatpush1.bf16.msra.mxu1 %v11940_v14  ;;  %v11953_v14 = vld [vmem:[#allocation231_spill] sm:$0xff] }
 0xca6   : > { %8281 = vmatprep.subr.bf16.mxu1 %v11941_v43  ;;  %v11954_v43 = vld [vmem:[#allocation233_spill] sm:$0xff] }
 0xca9   : > { %8283 = vmatpush1.bf16.msra.mxu1 %v11942_v41  ;;  %v11955_v41 = vld [vmem:[#allocation212_spill] sm:$0xff] }
 0xcaa   : > { %8285 = vmatprep.subr.bf16.mxu1 %v11943_v33  ;;  %v11956_v33 = vld [vmem:[#allocation214_spill] sm:$0xff] }
 0xcad   : > { %8287 = vmatpush1.bf16.msra.mxu1 %v11944_v18  ;;  %v11957_v18 = vld [vmem:[#allocation216_spill] sm:$0xff] }
 0xcae   : > { %8289 = vmatprep.subr.bf16.mxu1 %v11945_v20  ;;  %v11958_v20 = vld [vmem:[#allocation218_spill] sm:$0xff] }
 0xcb1   : > { %8291 = vmatpush1.bf16.msra.mxu1 %v11946_v48  ;;  %v11959_v48 = vld [vmem:[#allocation220_spill] sm:$0xff] }
 0xcb2   : > { %8293 = vmatprep.subr.bf16.mxu1 %v11947_v49  ;;  %v11960_v49 = vld [vmem:[#allocation222_spill] sm:$0xff] }
 0xcb5   : > { %8295 = vmatpush1.bf16.msra.mxu1 %v11948_v26  ;;  %v11961_v26 = vld [vmem:[#allocation224_spill] sm:$0xff] }
 0xcb6   : > { %8297 = vmatprep.subr.bf16.mxu1 %v11949_v23  ;;  %v11962_v23 = vld [vmem:[#allocation226_spill] sm:$0xff] }
 0xcb9   : > { %8299 = vmatpush1.bf16.msra.mxu1 %v11950_v57  ;;  %v11963_v57 = vld [vmem:[#allocation228_spill] sm:$0xff] }
 0xcba   : > { %8301 = vmatprep.subr.bf16.mxu1 %v11951_v11  ;;  %v11964_v11 = vld [vmem:[#allocation230_spill] sm:$0xff] }
 0xcbd   : > { %8303 = vmatpush1.bf16.msra.mxu1 %v11952_v38  ;;  %v11965_v38 = vld [vmem:[#allocation232_spill] sm:$0xff] }
 0xcbe   : > { %8305 = vmatprep.subr.bf16.mxu1 %v11953_v14 }
 0xcc1   : > { %8307 = vmatpush1.bf16.msra.mxu1 %v11954_v43 }
 0xcc2   : > { %8373 = vmatprep.subr.bf16.mxu1 %v11955_v41  ;;  %v11966_v41 = vld [vmem:[#allocation234_spill] sm:$0xff] }
 0xcc4   : > { %5859 = vmatmul.mubr.f32.vlgmr.msra.gmra.mrb[34].mxu1 %v10362_v1 }
 0xcc5   : > { %8375 = vmatpush1.bf16.msra.mxu1 %v11956_v33  ;;  %6036 = vmatprep.mubr.f32.mxu1 %v11876_v36  ;;  %v11967_v33 = vld [vmem:[#allocation235_spill] sm:$0xff] }
 0xcc6   : > { %8377 = vmatprep.subr.bf16.mxu1 %v11957_v18  ;;  %v11968_v18 = vld [vmem:[#allocation236_spill] sm:$0xff] }
 0xcc9   : > { %8379 = vmatpush1.bf16.msra.mxu1 %v11958_v20  ;;  %v11969_v20 = vld [vmem:[#allocation237_spill] sm:$0xff] }
 0xcca   : > { %8381 = vmatprep.subr.bf16.mxu1 %v11959_v48  ;;  %v11970_v48 = vld [vmem:[#allocation238_spill] sm:$0xff] }
 0xccd   : > { %8383 = vmatpush1.bf16.msra.mxu1 %v11960_v49  ;;  %v11971_v49 = vld [vmem:[#allocation239_spill] sm:$0xff] }
 0xcce   : > { %8385 = vmatprep.subr.bf16.mxu1 %v11961_v26  ;;  %v11972_v26 = vld [vmem:[#allocation240_spill] sm:$0xff] }
 0xcd1   : > { %8387 = vmatpush1.bf16.msra.mxu1 %v11962_v23  ;;  %v11973_v23 = vld [vmem:[#allocation241_spill] sm:$0xff] }
 0xcd2   : > { %8389 = vmatprep.subr.bf16.mxu1 %v11963_v57  ;;  %v11974_v57 = vld [vmem:[#allocation242_spill] sm:$0xff] }
 0xcd5   : > { %8391 = vmatpush1.bf16.msra.mxu1 %v11964_v11  ;;  %v11975_v11 = vld [vmem:[#allocation243_spill] sm:$0xff] }
 0xcd6   : > { %8393 = vmatprep.subr.bf16.mxu1 %v11965_v38  ;;  %v11976_v38 = vld [vmem:[#allocation247_spill] sm:$0xff] }
 0xcd7   : > { %v10464_v14 = vpop.f32.mrb[28].mxu1 }
 0xcd8   : > { %v10466_v43 = vpop.f32.mrb[29].mxu1 }
 0xcd9   : > { %8395 = vmatpush1.bf16.msra.mxu1 %v11966_v41  ;;  %v11985_v41 = vld [vmem:[#allocation115_spill] sm:$0xff] }
 0xcda   : > { %8397 = vmatprep.subr.bf16.mxu1 %v11967_v33  ;;  %v11986_v33 = vld [vmem:[#allocation116_spill] sm:$0xff] }
 0xcdd   : > { %8399 = vmatpush1.bf16.msra.mxu1 %v11968_v18  ;;  %v11987_v18 = vld [vmem:[#allocation117_spill] sm:$0xff] }
 0xcde   : > { %8401 = vmatprep.subr.bf16.mxu1 %v11969_v20  ;;  %v11988_v20 = vld [vmem:[#allocation118_spill] sm:$0xff] }
 0xce1   : > { %8403 = vmatpush1.bf16.msra.mxu1 %v11970_v48  ;;  %v11989_v48 = vld [vmem:[#allocation119_spill] sm:$0xff] }
 0xce2   : > { %8405 = vmatprep.subr.bf16.mxu1 %v11971_v49  ;;  %v11990_v49 = vld [vmem:[#allocation120_spill] sm:$0xff] }
 0xce5   : > { %8407 = vmatpush1.bf16.msra.mxu1 %v11972_v26  ;;  %v11991_v26 = vld [vmem:[#allocation121_spill] sm:$0xff] }
 0xce6   : > { %8409 = vmatprep.subr.bf16.mxu1 %v11973_v23  ;;  %v11992_v23 = vld [vmem:[#allocation122_spill] sm:$0xff] }
 0xce9   : > { %8411 = vmatpush1.bf16.msra.mxu1 %v11974_v57  ;;  %v11993_v57 = vld [vmem:[#allocation123_spill] sm:$0xff] }
 0xcea   : > { %8413 = vmatprep.subr.bf16.mxu1 %v11975_v11  ;;  %v11994_v11 = vld [vmem:[#allocation124_spill] sm:$0xff] }
 0xced   : > { %8415 = vmatpush1.bf16.msra.mxu1 %v11865_v35 }
 0xcee   : > { %8417 = vmatprep.subr.bf16.mxu1 %v11866_v30 }
 0xcf1   : > { %8419 = vmatpush1.bf16.msra.mxu1 %v11867_v27  ;;  %v11978_v27 = vld [vmem:[#allocation108_spill] sm:$0xff] }
 0xcf2   : > { %8421 = vmatprep.subr.bf16.mxu1 %v11976_v38  ;;  %v11995_v38 = vld [vmem:[#allocation125_spill] sm:$0xff] }
 0xcf5   : > { %8423 = vmatpush1.bf16.msra.mxu1 %v11869_v9  ;;  %v6357_v9 = vld [vmem:[%s11853_s26 + $0x4] sm:$0x3] }
 0xcf6   : > { %8425 = vmatprep.subr.bf16.mxu1 %v11870_v62  ;;  %v11982_v62 = vld [vmem:[#allocation112_spill] sm:$0xff] }
 0xcf9   : > { %8427 = vmatpush1.bf16.msra.mxu1 %v11871_v21  ;;  %v11977_v21 = vld [vmem:[#allocation107_spill] sm:$0xff] }
 0xcfa   : > { %8429 = vmatprep.subr.bf16.mxu1 %v11872_v7  ;;  %v11981_v7 = vld [vmem:[#allocation111_spill] sm:$0xff] }
 0xcfd   : > { %8431 = vmatpush1.bf16.msra.mxu1 %v11873_v16  ;;  %v6361_v16 = vld [vmem:[%s11853_s26 + $0x6] sm:$0x3] }
 0xcfe   : > { %8433 = vmatprep.subr.bf16.mxu1 %v11874_v40  ;;  %v11980_v40 = vld [vmem:[#allocation110_spill] sm:$0xff] }
 0xd01   : > { %8435 = vmatpush1.bf16.msra.mxu1 %v11875_v42  ;;  %v11979_v42 = vld [vmem:[#allocation109_spill] sm:$0xff] }
 0xd04   : > { %6037 = vmatmul.mubr.f32.vlgmr.msra.gmra.mrb[36].mxu1 %v10362_v1 }
 0xd2e   : > { %v4477_v30 = vpop.f32.mrb[30].mxu0 }
 0xd2f   : > { %v4479_v35 = vpop.f32.mrb[31].mxu0 }
 0xd30   : > { %6358 = vmatprep.subr.msk.mxu0 %vm900_vm2, %v4479_v35  ;;  %v11997_v35 = vld [vmem:[#allocation127_spill] sm:$0xff] }
 0xd31   : > { %6359 = vmatpush1.msk.msra.mxu0 %vm900_vm2, %v4477_v30  ;;  %v11996_v30 = vld [vmem:[#allocation126_spill] sm:$0xff] }
 0xd32   : > { %6360 = vmatmul.mubr.msk.f32.vlgmr.msra.gmra.mrb[28].mxu0 %vm896_vm3, %v6357_v9  ;;  %6362 = vmatprep.subr.msk.mxu0 %vm900_vm2, %v10388_v51  ;;  %v11984_v51 = vld [vmem:[#allocation114_spill] sm:$0xff]  ;;  %v11998_v9 = vld [vmem:[#allocation128_spill] sm:$0xff] }
 0xd33   : > { %6363 = vmatpush1.msk.msra.mxu0 %vm900_vm2, %v10385_v3  ;;  %4710 = vmatprep.mubr.f32.mxu0 %v11856_v34  ;;  %v11983_v3 = vld [vmem:[#allocation113_spill] sm:$0xff] }
 0xd34   : > { %7669 = vmatprep.subr.bf16.mxu0 %v11977_v21 }
 0xd3a   : > { %6364 = vmatmul.mubr.msk.f32.vlgmr.msra.gmra.mrb[28].mxu0 %vm896_vm3, %v6361_v16  ;;  %v11999_v16 = vld [vmem:[#allocation129_spill] sm:$0xff] }
 0xd3b   : > { %7671 = vmatpush1.bf16.msra.mxu0 %v11978_v27  ;;  %4785 = vmatprep.mubr.f32.mxu0 %v10141_v37 }
 0xd3c   : > { %7673 = vmatprep.subr.bf16.mxu0 %v11979_v42 }
 0xd3f   : > { %7675 = vmatpush1.bf16.msra.mxu0 %v11980_v40 }
 0xd40   : > { %7677 = vmatprep.subr.bf16.mxu0 %v11981_v7 }
 0xd43   : > { %7679 = vmatpush1.bf16.msra.mxu0 %v11982_v62 }
 0xd44   : > { %7681 = vmatprep.subr.bf16.mxu0 %v11983_v3 }
 0xd47   : > { %7683 = vmatpush1.bf16.msra.mxu0 %v11984_v51 }
 0xd48   : > { %7685 = vmatprep.subr.bf16.mxu0 %v11985_v41 }
 0xd4b   : > { %7687 = vmatpush1.bf16.msra.mxu0 %v11986_v33 }
 0xd4c   : > { %7689 = vmatprep.subr.bf16.mxu0 %v11987_v18 }
 0xd4f   : > { %7691 = vmatpush1.bf16.msra.mxu0 %v11988_v20 }
 0xd50   : > { %7693 = vmatprep.subr.bf16.mxu0 %v11989_v48  ;;  %v12000_v48 = vld [vmem:[#allocation130_spill] sm:$0xff] }
 0xd53   : > { %7695 = vmatpush1.bf16.msra.mxu0 %v11990_v49  ;;  %v12001_v49 = vld [vmem:[#allocation131_spill] sm:$0xff] }
 0xd54   : > { %7697 = vmatprep.subr.bf16.mxu0 %v11991_v26  ;;  %v12002_v26 = vld [vmem:[#allocation132_spill] sm:$0xff] }
 0xd57   : > { %7699 = vmatpush1.bf16.msra.mxu0 %v11992_v23  ;;  %v12003_v23 = vld [vmem:[#allocation133_spill] sm:$0xff] }
 0xd58   : > { %7701 = vmatprep.subr.bf16.mxu0 %v11993_v57  ;;  %v12004_v57 = vld [vmem:[#allocation134_spill] sm:$0xff] }
 0xd5b   : > { %7703 = vmatpush1.bf16.msra.mxu0 %v11994_v11  ;;  %v12005_v11 = vld [vmem:[#allocation135_spill] sm:$0xff] }
 0xd5c   : > { %7705 = vmatprep.subr.bf16.mxu0 %v11995_v38  ;;  %v12006_v38 = vld [vmem:[#allocation136_spill] sm:$0xff] }
 0xd5f   : > { %7707 = vmatpush1.bf16.msra.mxu0 %v11996_v30  ;;  %v12007_v30 = vld [vmem:[#allocation137_spill] sm:$0xff] }
 0xd60   : > { %7709 = vmatprep.subr.bf16.mxu0 %v11997_v35  ;;  %v12008_v35 = vld [vmem:[#allocation138_spill] sm:$0xff] }
 0xd63   : > { %7711 = vmatpush1.bf16.msra.mxu0 %v11998_v9 }
 0xd64   : > { %7713 = vmatprep.subr.bf16.mxu0 %v11999_v16 }
 0xd67   : > { %7715 = vmatpush1.bf16.msra.mxu0 %v12000_v48 }
 0xd68   : > { %7717 = vmatprep.subr.bf16.mxu0 %v12001_v49 }
 0xd6b   : > { %7719 = vmatpush1.bf16.msra.mxu0 %v12002_v26 }
 0xd6c   : > { %7721 = vmatprep.subr.bf16.mxu0 %v12003_v23  ;;  %v6365_v23 = vld [vmem:[%s11853_s26 + $0xa] sm:$0x3] }
 0xd6f   : > { %7723 = vmatpush1.bf16.msra.mxu0 %v12004_v57  ;;  %v12018_v57 = vld [vmem:[#allocation148_spill] sm:$0xff] }
 0xd70   : > { %7725 = vmatprep.subr.bf16.mxu0 %v12005_v11  ;;  %v12017_v11 = vld [vmem:[#allocation147_spill] sm:$0xff] }
 0xd73   : > { %7727 = vmatpush1.bf16.msra.mxu0 %v12006_v38  ;;  %v12015_v38 = vld [vmem:[#allocation145_spill] sm:$0xff] }
 0xd74   : > { %7729 = vmatprep.subr.bf16.mxu0 %v12007_v30  ;;  %v6369_v30 = vld [vmem:[%s11853_s26 + $0xc] sm:$0x3] }
 0xd77   : > { %7731 = vmatpush1.bf16.msra.mxu0 %v12008_v35  ;;  %v12009_v35 = vld [vmem:[#allocation139_spill] sm:$0xff] }
 0xd7a   : > { %4786 = vmatmul.mubr.f32.vlgmr.msra.gmra.mrb[32].mxu0 %v10143_v8 }
 0xd7b   : > { %4865 = vmatprep.mubr.f32.mxu0 %v11856_v34 }
 0xe4d   : > { %v4787_v48 = vpop.f32.mrb[32].mxu0 }
 0xe4e   : > { %v4789_v49 = vpop.f32.mrb[33].mxu0 }
 0xe4f   : > { %6366 = vmatprep.subr.msk.mxu0 %vm900_vm2, %v4789_v49  ;;  %v12010_v49 = vld [vmem:[#allocation140_spill] sm:$0xff] }
 0xe50   : > { %6367 = vmatpush1.msk.msra.mxu0 %vm900_vm2, %v4787_v48  ;;  %v12011_v48 = vld [vmem:[#allocation141_spill] sm:$0xff] }
 0xe51   : > { %6368 = vmatmul.mubr.msk.f32.vlgmr.msra.gmra.mrb[28].mxu0 %vm896_vm3, %v6365_v23  ;;  %6370 = vmatprep.subr.msk.mxu0 %vm900_vm2, %v10428_v39  ;;  %v12012_v39 = vld [vmem:[#allocation142_spill] sm:$0xff]  ;;  %v12013_v23 = vld [vmem:[#allocation143_spill] sm:$0xff] }
 0xe52   : > { %6371 = vmatpush1.msk.msra.mxu0 %vm900_vm2, %v10426_v56  ;;  %5020 = vmatprep.mubr.f32.mxu0 %v11856_v34  ;;  %v12014_v56 = vld [vmem:[#allocation144_spill] sm:$0xff] }
 0xe53   : > { %7797 = vmatprep.subr.bf16.mxu0 %v12009_v35  ;;  %v12016_v35 = vld [vmem:[#allocation146_spill] sm:$0xff] }
 0xe59   : > { %6372 = vmatmul.mubr.msk.f32.vlgmr.msra.gmra.mrb[28].mxu0 %vm896_vm3, %v6369_v30  ;;  %v12019_v30 = vld [vmem:[#allocation149_spill] sm:$0xff] }
 0xe5a   : > { %7799 = vmatpush1.bf16.msra.mxu0 %v12010_v49  ;;  %5095 = vmatprep.mubr.f32.mxu0 %v10141_v37  ;;  %v12020_v49 = vld [vmem:[#allocation150_spill] sm:$0xff]  ;;  %v12021_v37 = vld [vmem:[#allocation151_spill] sm:$0xff] }
 0xe5b   : > { %7801 = vmatprep.subr.bf16.mxu0 %v12011_v48  ;;  %v12022_v48 = vld [vmem:[#allocation152_spill] sm:$0xff] }
 0xe5e   : > { %7803 = vmatpush1.bf16.msra.mxu0 %v12012_v39  ;;  %v12023_v39 = vld [vmem:[#allocation153_spill] sm:$0xff] }
 0xe5f   : > { %7805 = vmatprep.subr.bf16.mxu0 %v12013_v23  ;;  %v12024_v23 = vld [vmem:[#allocation154_spill] sm:$0xff] }
 0xe62   : > { %7807 = vmatpush1.bf16.msra.mxu0 %v12014_v56  ;;  %v12025_v56 = vld [vmem:[#allocation155_spill] sm:$0xff] }
 0xe63   : > { %7809 = vmatprep.subr.bf16.mxu0 %v12015_v38  ;;  %v12026_v38 = vld [vmem:[#allocation156_spill] sm:$0xff] }
 0xe66   : > { %7811 = vmatpush1.bf16.msra.mxu0 %v12016_v35  ;;  %v12027_v35 = vld [vmem:[#allocation157_spill] sm:$0xff] }
 0xe67   : > { %7813 = vmatprep.subr.bf16.mxu0 %v12017_v11  ;;  %v12028_v11 = vld [vmem:[#allocation158_spill] sm:$0xff] }
 0xe6a   : > { %7815 = vmatpush1.bf16.msra.mxu0 %v12018_v57  ;;  %v12029_v57 = vld [vmem:[#allocation159_spill] sm:$0xff] }
 0xe6b   : > { %7817 = vmatprep.subr.bf16.mxu0 %v12019_v30  ;;  %v12030_v30 = vld [vmem:[#allocation160_spill] sm:$0xff] }
 0xe6e   : > { %7819 = vmatpush1.bf16.msra.mxu0 %v12020_v49  ;;  %v12031_v49 = vld [vmem:[#allocation161_spill] sm:$0xff] }
 0xe6f   : > { %7821 = vmatprep.subr.bf16.mxu0 %v12021_v37  ;;  %v12032_v37 = vld [vmem:[#allocation162_spill] sm:$0xff] }
 0xe72   : > { %7823 = vmatpush1.bf16.msra.mxu0 %v12022_v48  ;;  %v12033_v48 = vld [vmem:[#allocation163_spill] sm:$0xff] }
 0xe73   : > { %7825 = vmatprep.subr.bf16.mxu0 %v12023_v39  ;;  %v12034_v39 = vld [vmem:[#allocation164_spill] sm:$0xff] }
 0xe76   : > { %7827 = vmatpush1.bf16.msra.mxu0 %v12024_v23  ;;  %v12035_v23 = vld [vmem:[#allocation165_spill] sm:$0xff] }
 0xe77   : > { %7829 = vmatprep.subr.bf16.mxu0 %v12025_v56  ;;  %v12036_v56 = vld [vmem:[#allocation166_spill] sm:$0xff] }
 0xe7a   : > { %7831 = vmatpush1.bf16.msra.mxu0 %v12026_v38  ;;  %v12037_v38 = vld [vmem:[#allocation167_spill] sm:$0xff] }
 0xe7b   : > { %7833 = vmatprep.subr.bf16.mxu0 %v12027_v35  ;;  %v12038_v35 = vld [vmem:[#allocation168_spill] sm:$0xff] }
 0xe7e   : > { %7835 = vmatpush1.bf16.msra.mxu0 %v12028_v11  ;;  %v12039_v11 = vld [vmem:[#allocation169_spill] sm:$0xff] }
 0xe7f   : > { %7837 = vmatprep.subr.bf16.mxu0 %v12029_v57  ;;  %v12040_v57 = vld [vmem:[#allocation170_spill] sm:$0xff] }
 0xe82   : > { %7839 = vmatpush1.bf16.msra.mxu0 %v12030_v30 }
 0xe83   : > { %7841 = vmatprep.subr.bf16.mxu0 %v12031_v49 }
 0xe86   : > { %7843 = vmatpush1.bf16.msra.mxu0 %v12032_v37 }
 0xe87   : > { %7845 = vmatprep.subr.bf16.mxu0 %v12033_v48 }
 0xe8a   : > { %7847 = vmatpush1.bf16.msra.mxu0 %v12034_v39 }
 0xe8b   : > { %7849 = vmatprep.subr.bf16.mxu0 %v12035_v23  ;;  %v6373_v23 = vld [vmem:[%s11853_s26 + $0xe] sm:$0x3] }
 0xe8e   : > { %7851 = vmatpush1.bf16.msra.mxu0 %v12036_v56 }
 0xe8f   : > { %7853 = vmatprep.subr.bf16.mxu0 %v12037_v38  ;;  %v12053_v38 = vld [vmem:[#allocation22_spill] sm:$0xff] }
 0xe92   : > { %7855 = vmatpush1.bf16.msra.mxu0 %v12038_v35  ;;  %v12050_v35 = vld [vmem:[#allocation19_spill] sm:$0xff] }
 0xe93   : > { %7857 = vmatprep.subr.bf16.mxu0 %v12039_v11  ;;  %v12049_v11 = vld [vmem:[#allocation18_spill] sm:$0xff] }
 0xe96   : > { %7859 = vmatpush1.bf16.msra.mxu0 %v12040_v57  ;;  %v6377_v57 = vld [vmem:[%s11853_s26 + $0x10] sm:$0x3] }
 0xe99   : > { %5096 = vmatmul.mubr.f32.vlgmr.msra.gmra.mrb[34].mxu0 %v10143_v8  ;;  %v12041_v8 = vld [vmem:[#allocation10_spill] sm:$0xff] }
 0xe9a   : > { %5175 = vmatprep.mubr.f32.mxu0 %v11856_v34 }
 0xf6c   : > { %v5097_v37 = vpop.f32.mrb[34].mxu0 }
 0xf6d   : > { %v5099_v48 = vpop.f32.mrb[35].mxu0 }
 0xf6e   : > { %6374 = vmatprep.subr.msk.mxu0 %vm900_vm2, %v5099_v48  ;;  %v12042_v48 = vld [vmem:[#allocation11_spill] sm:$0xff] }
 0xf6f   : > { %6375 = vmatpush1.msk.msra.mxu0 %vm900_vm2, %v5097_v37  ;;  %v12045_v37 = vld [vmem:[#allocation14_spill] sm:$0xff] }
 0xf70   : > { %6376 = vmatmul.mubr.msk.f32.vlgmr.msra.gmra.mrb[28].mxu0 %vm896_vm3, %v6373_v23  ;;  %6378 = vmatprep.subr.msk.mxu0 %vm900_vm2, %v10466_v43  ;;  %v12043_v23 = vld [vmem:[#allocation12_spill] sm:$0xff]  ;;  %v12044_v43 = vld [vmem:[#allocation13_spill] sm:$0xff] }
 0xf71   : > { %6379 = vmatpush1.msk.msra.mxu0 %vm900_vm2, %v10464_v14  ;;  %5330 = vmatprep.mubr.f32.mxu0 %v11856_v34  ;;  %v12046_v14 = vld [vmem:[#allocation15_spill] sm:$0xff]  ;;  %v12047_v34 = vld [vmem:[#allocation16_spill] sm:$0xff] }
 0xf72   : > { %7925 = vmatprep.subr.bf16.mxu0 %v12041_v8  ;;  %v12048_v8 = vld [vmem:[#allocation17_spill] sm:$0xff] }
 0xf78   : > { %6380 = vmatmul.mubr.msk.f32.vlgmr.msra.gmra.mrb[28].mxu0 %vm896_vm3, %v6377_v57  ;;  %v12051_v57 = vld [vmem:[#allocation20_spill] sm:$0xff] }
 0xf79   : > { %7927 = vmatpush1.bf16.msra.mxu0 %v12042_v48  ;;  %5416 = vmatprep.mubr.f32.mxu0 %v11876_v36  ;;  %v12052_v48 = vld [vmem:[#allocation21_spill] sm:$0xff] }
 0xf7a   : > { %7929 = vmatprep.subr.bf16.mxu0 %v12043_v23  ;;  %v12054_v23 = vld [vmem:[#allocation23_spill] sm:$0xff] }
 0xf7d   : > { %7931 = vmatpush1.bf16.msra.mxu0 %v12044_v43  ;;  %v12055_v43 = vld [vmem:[#allocation24_spill] sm:$0xff] }
 0xf7e   : > { %7933 = vmatprep.subr.bf16.mxu0 %v12045_v37  ;;  %v12056_v37 = vld [vmem:[#allocation25_spill] sm:$0xff] }
 0xf81   : > { %7935 = vmatpush1.bf16.msra.mxu0 %v12046_v14  ;;  %v12057_v14 = vld [vmem:[#allocation26_spill] sm:$0xff] }
 0xf82   : > { %7937 = vmatprep.subr.bf16.mxu0 %v12047_v34  ;;  %v12058_v34 = vld [vmem:[#allocation27_spill] sm:$0xff] }
 0xf85   : > { %7939 = vmatpush1.bf16.msra.mxu0 %v12048_v8  ;;  %v12059_v8 = vld [vmem:[#allocation28_spill] sm:$0xff] }
 0xf86   : > { %7941 = vmatprep.subr.bf16.mxu0 %v12049_v11  ;;  %v12060_v11 = vld [vmem:[#allocation29_spill] sm:$0xff] }
 0xf89   : > { %7943 = vmatpush1.bf16.msra.mxu0 %v12050_v35  ;;  %v12061_v35 = vld [vmem:[#allocation30_spill] sm:$0xff] }
 0xf8a   : > { %7945 = vmatprep.subr.bf16.mxu0 %v12051_v57  ;;  %v12062_v57 = vld [vmem:[#allocation31_spill] sm:$0xff] }
 0xf8d   : > { %7947 = vmatpush1.bf16.msra.mxu0 %v12052_v48  ;;  %v12063_v48 = vld [vmem:[#allocation32_spill] sm:$0xff] }
 0xf8e   : > { %7949 = vmatprep.subr.bf16.mxu0 %v12053_v38  ;;  %v12064_v38 = vld [vmem:[#allocation33_spill] sm:$0xff] }
 0xf91   : > { %7951 = vmatpush1.bf16.msra.mxu0 %v12054_v23  ;;  %v12065_v23 = vld [vmem:[#allocation34_spill] sm:$0xff] }
 0xf92   : > { %7953 = vmatprep.subr.bf16.mxu0 %v12055_v43  ;;  %v12066_v43 = vld [vmem:[#allocation35_spill] sm:$0xff] }
 0xf95   : > { %7955 = vmatpush1.bf16.msra.mxu0 %v12056_v37  ;;  %v12067_v37 = vld [vmem:[#allocation36_spill] sm:$0xff] }
 0xf96   : > { %7957 = vmatprep.subr.bf16.mxu0 %v12057_v14  ;;  %v12068_v14 = vld [vmem:[#allocation37_spill] sm:$0xff] }
 0xf99   : > { %7959 = vmatpush1.bf16.msra.mxu0 %v12058_v34  ;;  %v12069_v34 = vld [vmem:[#allocation38_spill] sm:$0xff] }
 0xf9a   : > { %7961 = vmatprep.subr.bf16.mxu0 %v12059_v8  ;;  %v12070_v8 = vld [vmem:[#allocation39_spill] sm:$0xff] }
 0xf9d   : > { %7963 = vmatpush1.bf16.msra.mxu0 %v12060_v11  ;;  %v12071_v11 = vld [vmem:[#allocation40_spill] sm:$0xff] }
 0xf9e   : > { %7965 = vmatprep.subr.bf16.mxu0 %v12061_v35  ;;  %v12072_v35 = vld [vmem:[#allocation41_spill] sm:$0xff] }
 0xfa1   : > { %7967 = vmatpush1.bf16.msra.mxu0 %v12062_v57 }
 0xfa2   : > { %7969 = vmatprep.subr.bf16.mxu0 %v12063_v48 }
 0xfa5   : > { %7971 = vmatpush1.bf16.msra.mxu0 %v12064_v38  ;;  %v12103_v38 = vld [vmem:[#allocation150_spill] sm:$0xff] }
 0xfa6   : > { %7973 = vmatprep.subr.bf16.mxu0 %v12065_v23 }
 0xfa9   : > { %7975 = vmatpush1.bf16.msra.mxu0 %v12066_v43 }
 0xfaa   : > { %7977 = vmatprep.subr.bf16.mxu0 %v12067_v37 }
 0xfad   : > { %7979 = vmatpush1.bf16.msra.mxu0 %v12068_v14  ;;  %v12104_v14 = vld [vmem:[#allocation151_spill] sm:$0xff] }
 0xfae   : > { %7981 = vmatprep.subr.bf16.mxu0 %v12069_v34 }
 0xfb1   : > { %7983 = vmatpush1.bf16.msra.mxu0 %v12070_v8 }
 0xfb2   : > { %7985 = vmatprep.subr.bf16.mxu0 %v12071_v11 }
 0xfb5   : > { %7987 = vmatpush1.bf16.msra.mxu0 %v12072_v35 }
 0xfb6   : > { %8053 = vmatprep.subr.bf16.mxu0 %v11877_v4  ;;  %v5425_v4 = vlaneseq }
 0xfb8   : > { %5417 = vmatmul.mubr.f32.vlgmr.msra.gmra.mrb[36].mxu0 %v10362_v1 }
 0xfb9   : > { %8055 = vmatpush1.bf16.msra.mxu0 %v11878_v12  ;;  %5594 = vmatprep.mubr.f32.mxu0 %v11876_v36  ;;  %v580_v12 = vld [vmem:[#allocation4] sm:$0xff] }
 0xfba   : > { %8057 = vmatprep.subr.bf16.mxu0 %v11879_v52  ;;  %v581_v52 = vld [vmem:[#allocation4 + $0x8] sm:$0xff]  ;;  %vm5349_vm4 = vcmp.ge.f32.partialorder %v580_v12, 0.5 }
 0xfbb   : > { %vm5350_vm5 = vcmp.ge.f32.partialorder %v581_v52, 0.5  ;;  %v12105_v52 = vld [vmem:[#allocation152_spill] sm:$0xff] }
 0xfbd   : > { %8059 = vmatpush1.bf16.msra.mxu0 %v11880_v13  ;;  %v10683_v13 = vshrl.u32 %v5425_v4, 7 }
 0xfbe   : > { %8061 = vmatprep.subr.bf16.mxu0 %v11881_v58 }
 0xfbf   : > { %v5515_v58 = vsub.s32 1, %v10683_v13 }
 0xfc1   : > { %8063 = vmatpush1.bf16.msra.mxu0 %v11882_v6  ;;  %v12073_v6 = vmov 0  }
 0xfc2   : > { %8065 = vmatprep.subr.bf16.mxu0 %v11883_v28  ;;  %v10689_v28 = vsel %vm5349_vm4, 1, %v12073_v6 }
 0xfc5   : > { %8067 = vmatpush1.bf16.msra.mxu0 %v11884_v19  ;;  %v10692_v19 = vsel %vm5350_vm5, 1, %v12073_v6 }
 0xfc6   : > { %8069 = vmatprep.subr.bf16.mxu0 %v11885_v54  ;;  %v5516_v54 = vrot.slane %v10689_v28, %v5515_v58 }
 0xfc8   : > { %vm5521_vm6 = vcmp.eq.s32.totalorder %v5516_v54, 1  ;;  %v12106_v54 = vld [vmem:[#allocation153_spill] sm:$0xff] }
 0xfc9   : > { %8071 = vmatpush1.bf16.msra.mxu0 %v11886_v17  ;;  %v5520_v17 = vrot.slane %v10692_v19, %v5515_v58 }
 0xfca   : > { %8073 = vmatprep.subr.bf16.mxu0 %v11887_v59  ;;  %v5508_v59 = vpop.f32.mrb[30].mxu1 }
 0xfcb   : > { %vm5522_vm7 = vcmp.eq.s32.totalorder %v5520_v17, 1  ;;  %v12107_v17 = vld [vmem:[#allocation154_spill] sm:$0xff] }
 0xfcd   : > { %8075 = vmatpush1.bf16.msra.mxu0 %v11888_v5  ;;  %v12074_v5 = vld [vmem:[#allocation119_spill] sm:$0xff] }
 0xfce   : > { %8077 = vmatprep.subr.bf16.mxu0 %v11889_v24  ;;  %v5510_v24 = vpop.f32.mrb[31].mxu1 }
 0xfcf   : > { %v5684_v23 = vpop.f32.mrb[32].mxu1 }
 0xfd0   : > { %v5686_v34 = vpop.f32.mrb[33].mxu1 }
 0xfd1   : > { %8079 = vmatpush1.bf16.msra.mxu0 %v11890_v10  ;;  %v10698_v10 = vsel %vm5521_vm6, %v5508_v59, -1e+30  ;;  %v12108_v59 = vld [vmem:[#allocation155_spill] sm:$0xff] }
 0xfd2   : > { %8081 = vmatprep.subr.bf16.mxu0 %v11891_v55  ;;  %v10700_v55 = vsel %vm5522_vm7, %v5510_v24, -1e+30  ;;  %v12110_v24 = vld [vmem:[#allocation157_spill] sm:$0xff] }
 0xfd5   : > { %8083 = vmatpush1.bf16.msra.mxu0 %v11892_v60  ;;  %v5527_v60 = vcombine.low %v10698_v10, %v10700_v55 }
 0xfd6   : > { %8085 = vmatprep.subr.bf16.mxu0 %v11893_v25  ;;  %v12075_v25 = vld [vmem:[#allocation120_spill] sm:$0xff] }
 0xfd9   : > { %8087 = vmatpush1.bf16.msra.mxu0 %v11894_v53  ;;  %v12076_v53 = vld [vmem:[#allocation121_spill] sm:$0xff] }
 0xfda   : > { %8089 = vmatprep.subr.bf16.mxu0 %v11895_v47  ;;  %v12077_v47 = vld [vmem:[#allocation122_spill] sm:$0xff] }
 0xfdd   : > { %8091 = vmatpush1.bf16.msra.mxu0 %v11896_v31  ;;  %v12078_v31 = vld [vmem:[#allocation123_spill] sm:$0xff] }
 0xfde   : > { %8093 = vmatprep.subr.bf16.mxu0 %v11897_v45  ;;  %v12079_v45 = vld [vmem:[#allocation124_spill] sm:$0xff] }
 0xfe1   : > { %8095 = vmatpush1.bf16.msra.mxu0 %v11898_v63  ;;  %v12080_v63 = vld [vmem:[#allocation125_spill] sm:$0xff] }
 0xfe2   : > { %8097 = vmatprep.subr.bf16.mxu0 %v11899_v22  ;;  %v12081_v22 = vld [vmem:[#allocation126_spill] sm:$0xff] }
 0xfe5   : > { %8099 = vmatpush1.bf16.msra.mxu0 %v11900_v50  ;;  %v12082_v50 = vld [vmem:[#allocation127_spill] sm:$0xff] }
 0xfe6   : > { %8101 = vmatprep.subr.bf16.mxu0 %v11901_v15  ;;  %v12083_v15 = vld [vmem:[#allocation130_spill] sm:$0xff] }
 0xfe9   : > { %8103 = vmatpush1.bf16.msra.mxu0 %v11902_v44  ;;  %v12084_v44 = vld [vmem:[#allocation131_spill] sm:$0xff] }
 0xfea   : > { %8105 = vmatprep.subr.bf16.mxu0 %v11903_v2  ;;  %v12085_v2 = vld [vmem:[#allocation133_spill] sm:$0xff] }
 0xfed   : > { %8107 = vmatpush1.bf16.msra.mxu0 %v11904_v46  ;;  %v12086_v46 = vld [vmem:[#allocation134_spill] sm:$0xff] }
 0xfee   : > { %8109 = vmatprep.subr.bf16.mxu0 %v11905_v61  ;;  %v12087_v61 = vld [vmem:[#allocation135_spill] sm:$0xff] }
 0xff1   : > { %8111 = vmatpush1.bf16.msra.mxu0 %v11906_v29  ;;  %v12088_v29 = vld [vmem:[#allocation136_spill] sm:$0xff] }
 0xff2   : > { %8113 = vmatprep.subr.bf16.mxu0 %v11907_v0  ;;  %v12089_v0 = vld [vmem:[#allocation137_spill] sm:$0xff] }
 0xff5   : > { %8115 = vmatpush1.bf16.msra.mxu0 %v11908_v32  ;;  %v12090_v32 = vld [vmem:[#allocation138_spill] sm:$0xff] }
 0xff6   : > { %8181 = vmatprep.subr.bf16.mxu0 %v11977_v21  ;;  %v12091_v21 = vld [vmem:[#allocation139_spill] sm:$0xff] }
 0xff8   : > { %5595 = vmatmul.mubr.f32.vlgmr.msra.gmra.mrb[38].mxu0 %v10362_v1 }
 0xff9   : > { %8183 = vmatpush1.bf16.msra.mxu0 %v11978_v27  ;;  %5770 = vmatprep.mubr.f32.mxu0 %v11876_v36  ;;  %v12092_v27 = vld [vmem:[#allocation140_spill] sm:$0xff] }
 0xffa   : > { %8185 = vmatprep.subr.bf16.mxu0 %v11979_v42  ;;  %v12093_v42 = vld [vmem:[#allocation141_spill] sm:$0xff] }
 0xffd   : > { %8187 = vmatpush1.bf16.msra.mxu0 %v11980_v40  ;;  %v12094_v40 = vld [vmem:[#allocation142_spill] sm:$0xff] }
 0xffe   : > { %8189 = vmatprep.subr.bf16.mxu0 %v11981_v7  ;;  %v12095_v7 = vld [vmem:[#allocation143_spill] sm:$0xff] }
0x1001   : > { %8191 = vmatpush1.bf16.msra.mxu0 %v11982_v62  ;;  %v12096_v62 = vld [vmem:[#allocation144_spill] sm:$0xff] }
0x1002   : > { %8193 = vmatprep.subr.bf16.mxu0 %v11983_v3  ;;  %v12097_v3 = vld [vmem:[#allocation145_spill] sm:$0xff] }
0x1005   : > { %8195 = vmatpush1.bf16.msra.mxu0 %v11984_v51  ;;  %v12098_v51 = vld [vmem:[#allocation146_spill] sm:$0xff] }
0x1006   : > { %8197 = vmatprep.subr.bf16.mxu0 %v11985_v41  ;;  %v12099_v41 = vld [vmem:[#allocation147_spill] sm:$0xff] }
0x1009   : > { %8199 = vmatpush1.bf16.msra.mxu0 %v11986_v33  ;;  %v12100_v33 = vld [vmem:[#allocation148_spill] sm:$0xff] }
0x100a   : > { %8201 = vmatprep.subr.bf16.mxu0 %v11987_v18  ;;  %v12101_v18 = vld [vmem:[#allocation149_spill] sm:$0xff] }
0x100d   : > { %8203 = vmatpush1.bf16.msra.mxu0 %v11988_v20 }
0x100e   : > { %8205 = vmatprep.subr.bf16.mxu0 %v12074_v5  ;;  %v12109_v5 = vld [vmem:[#allocation156_spill] sm:$0xff] }
0x1011   : > { %8207 = vmatpush1.bf16.msra.mxu0 %v12075_v25  ;;  %v12111_v25 = vld [vmem:[#allocation158_spill] sm:$0xff] }
0x1012   : > { %8209 = vmatprep.subr.bf16.mxu0 %v12076_v53  ;;  %v12112_v53 = vld [vmem:[#allocation159_spill] sm:$0xff] }
0x1015   : > { %8211 = vmatpush1.bf16.msra.mxu0 %v12077_v47  ;;  %v12113_v47 = vld [vmem:[#allocation162_spill] sm:$0xff] }
0x1016   : > { %8213 = vmatprep.subr.bf16.mxu0 %v12078_v31  ;;  %v12114_v31 = vld [vmem:[#allocation163_spill] sm:$0xff] }
0x1019   : > { %8215 = vmatpush1.bf16.msra.mxu0 %v12079_v45  ;;  %v12115_v45 = vld [vmem:[#allocation165_spill] sm:$0xff] }
0x101a   : > { %8217 = vmatprep.subr.bf16.mxu0 %v12080_v63  ;;  %v12116_v63 = vld [vmem:[#allocation167_spill] sm:$0xff] }
0x101d   : > { %8219 = vmatpush1.bf16.msra.mxu0 %v12081_v22  ;;  %v12117_v22 = vld [vmem:[#allocation168_spill] sm:$0xff] }
0x101e   : > { %8221 = vmatprep.subr.bf16.mxu0 %v12082_v50  ;;  %v12118_v50 = vld [vmem:[#allocation169_spill] sm:$0xff] }
0x1021   : > { %8223 = vmatpush1.bf16.msra.mxu0 %v11998_v9 }
0x1022   : > { %8225 = vmatprep.subr.bf16.mxu0 %v11999_v16 }
0x1025   : > { %8227 = vmatpush1.bf16.msra.mxu0 %v12083_v15  ;;  %v12119_v15 = vld [vmem:[#allocation170_spill] sm:$0xff] }
0x1026   : > { %8229 = vmatprep.subr.bf16.mxu0 %v12084_v44 }
0x1029   : > { %8231 = vmatpush1.bf16.msra.mxu0 %v12002_v26  ;;  %v12102_v26 = vld [vmem:[#allocation42_spill] sm:$0xff] }
0x102a   : > { %8233 = vmatprep.subr.bf16.mxu0 %v12085_v2 }
0x102d   : > { %8235 = vmatpush1.bf16.msra.mxu0 %v12086_v46 }
0x102e   : > { %8237 = vmatprep.subr.bf16.mxu0 %v12087_v61 }
0x1031   : > { %8239 = vmatpush1.bf16.msra.mxu0 %v12088_v29 }
0x1032   : > { %8241 = vmatprep.subr.bf16.mxu0 %v12089_v0 }
0x1035   : > { %8243 = vmatpush1.bf16.msra.mxu0 %v12090_v32  ;;  %v5860_v32 = vpop.f32.mrb[34].mxu1 }
0x1036   : > { %8309 = vmatprep.subr.bf16.mxu0 %v12091_v21 }
0x1038   : > { %5771 = vmatmul.mubr.f32.vlgmr.msra.gmra.mrb[40].mxu0 %v10362_v1 }
0x1039   : > { %8311 = vmatpush1.bf16.msra.mxu0 %v12092_v27  ;;  %5946 = vmatprep.mubr.f32.mxu0 %v11876_v36  ;;  %v5691_v36 = vsub.s32 3, %v10683_v13 }
0x103a   : > { %8313 = vmatprep.subr.bf16.mxu0 %v12093_v42  ;;  %v5862_v42 = vpop.f32.mrb[35].mxu1 }
0x103b   : > { %v5692_v57 = vrot.slane %v10689_v28, %v5691_v36  ;;  %v5696_v43 = vrot.slane %v10692_v19, %v5691_v36  ;;  %v582_v36 = vld [vmem:[#allocation4 + $0x10] sm:$0x1] }
0x103c   : > { %vm5970_vm15 = vcmp.ge.f32.partialorder %v582_v36, 0.5 }
0x103d   : > { %8315 = vmatpush1.bf16.msra.mxu0 %v12094_v40  ;;  %vm5697_vm8 = vcmp.eq.s32.totalorder %v5692_v57, 1  ;;  %vm5698_vm9 = vcmp.eq.s32.totalorder %v5696_v43, 1  ;;  %v6038_v57 = vpop.f32.mrb[36].mxu1 }
0x103e   : > { %8317 = vmatprep.subr.bf16.mxu0 %v12095_v7  ;;  %v10743_v11 = vsel %vm5697_vm8, %v5684_v23, -1e+30  ;;  %v10745_v4 = vsel %vm5698_vm9, %v5686_v34, -1e+30 }
0x103f   : > { %v5703_v58 = vcombine.low %v10743_v11, %v10745_v4 }
0x1041   : > { %8319 = vmatpush1.bf16.msra.mxu0 %v12096_v62 }
0x1042   : > { %8321 = vmatprep.subr.bf16.mxu0 %v12097_v3 }
0x1045   : > { %8323 = vmatpush1.bf16.msra.mxu0 %v12098_v51 }
0x1046   : > { %8325 = vmatprep.subr.bf16.mxu0 %v12099_v41  ;;  %v5603_v41 = vsub.s32 2, %v10683_v13 }
0x1049   : > { %8327 = vmatpush1.bf16.msra.mxu0 %v12100_v33  ;;  %v5604_v33 = vrot.slane %v10689_v28, %v5603_v41 }
0x104a   : > { %8329 = vmatprep.subr.bf16.mxu0 %v12101_v18  ;;  %v5608_v18 = vrot.slane %v10692_v19, %v5603_v41 }
0x104b   : > { %v5332_v20 = vpop.f32.mrb[28].mxu0  ;;  %vm5609_vm14 = vcmp.eq.s32.totalorder %v5604_v33, 1 }
0x104c   : > { %v5345_v9 = vadd.f32 %v12102_v26, %v5332_v20  ;;  %v5334_v16 = vpop.f32.mrb[29].mxu0  ;;  %v583_v20 = vld [vmem:[#allocation4 + $0x18] sm:$0x1]  ;;  %vm5610_vm3 = vcmp.eq.s32.totalorder %v5608_v18, 1 }
0x104d   : > { %v5346_v48 = vadd.f32 %v12102_v26, %v5334_v16  ;;  %8331 = vmatpush1.bf16.msra.mxu0 %v12103_v38  ;;  %vm5971_vm2 = vcmp.ge.f32.partialorder %v583_v20, 0.5  ;;  %v6040_v38 = vpop.f32.mrb[37].mxu1 }
0x104e   : > { %v5347_v37 = vmax.f32 %v5345_v9, 0.0  ;;  %8333 = vmatprep.subr.bf16.mxu0 %v12104_v14  ;;  %v6044_v26 = vsel %vm5971_vm2, 1, %v12073_v6 }
0x104f   : > { %v5348_v8 = vmax.f32 %v5346_v48, 0.0 }
0x1050   : > { %v6163_v35 = vrot.slane %v5347_v37, 4 }
0x1051   : > { %v6164_v12 = vrot.slane %v5348_v8, 4  ;;  %8335 = vmatpush1.bf16.msra.mxu0 %v12105_v52 }
0x1052   : > { %6167 = vst [vmem:[%s8920_s20] sm:$0x30] %v6163_v35  ;;  %8337 = vmatprep.subr.bf16.mxu0 %v12106_v54 }
0x1053   : > { %6168 = vst [vmem:[%s8920_s20 + $0x8] sm:$0x30] %v6164_v12 }
0x1055   : > { %8339 = vmatpush1.bf16.msra.mxu0 %v12107_v17 }
0x1056   : > { %8341 = vmatprep.subr.bf16.mxu0 %v12108_v59 }
0x1059   : > { %8343 = vmatpush1.bf16.msra.mxu0 %v12109_v5 }
0x105a   : > { %8345 = vmatprep.subr.bf16.mxu0 %v12110_v24 }
0x105d   : > { %8347 = vmatpush1.bf16.msra.mxu0 %v12111_v25 }
0x105e   : > { %8349 = vmatprep.subr.bf16.mxu0 %v12112_v53  ;;  %v5955_v53 = vsub.s32 7, %v10683_v13 }
0x1060   : > { %v5956_v11 = vrot.slane %v10689_v28, %v5955_v53  ;;  %v5960_v4 = vrot.slane %v10692_v19, %v5955_v53 }
0x1061   : > { %8351 = vmatpush1.bf16.msra.mxu0 %v12030_v30  ;;  %v5427_v30 = vsub.s32 0, %v10683_v13 }
0x1062   : > { %8353 = vmatprep.subr.bf16.mxu0 %v12031_v49  ;;  %v12120_v49 = vmov 0.0   ;;  %vm5961_vm8 = vcmp.eq.s32.totalorder %v5956_v11, 1  ;;  %vm5962_vm9 = vcmp.eq.s32.totalorder %v5960_v4, 1 }
0x1063   : > { %v5432_v44 = vrot.slane %v10692_v19, %v5427_v30  ;;  %v6052_v10 = vrot.slane %v6044_v26, %v5427_v30 }
0x1065   : > { %8355 = vmatpush1.bf16.msra.mxu0 %v12113_v47  ;;  %vm5434_vm11 = vcmp.eq.s32.totalorder %v5432_v44, 1  ;;  %vm6054_vm5 = vcmp.eq.s32.totalorder %v6052_v10, 1 }
0x1066   : > { %8357 = vmatprep.subr.bf16.mxu0 %v12114_v31  ;;  %v6056_v37 = vsel %vm6054_vm5, %v6040_v38, -1e+30 }
0x1069   : > { %8359 = vmatpush1.bf16.msra.mxu0 %v12034_v39  ;;  %v5428_v39 = vrot.slane %v10689_v28, %v5427_v30 }
0x106a   : > { %8361 = vmatprep.subr.bf16.mxu0 %v12115_v45 }
0x106b   : > { %vm5433_vm10 = vcmp.eq.s32.totalorder %v5428_v39, 1 }
0x106d   : > { %8363 = vmatpush1.bf16.msra.mxu0 %v12036_v56  ;;  %v5867_v56 = vsub.s32 6, %v10683_v13 }
0x106e   : > { %8365 = vmatprep.subr.bf16.mxu0 %v12116_v63 }
0x106f   : > { %v5868_v29 = vrot.slane %v10689_v28, %v5867_v56  ;;  %v5872_v21 = vrot.slane %v10692_v19, %v5867_v56 }
0x1071   : > { %8367 = vmatpush1.bf16.msra.mxu0 %v12117_v22  ;;  %vm5873_vm12 = vcmp.eq.s32.totalorder %v5868_v29, 1  ;;  %vm5874_vm13 = vcmp.eq.s32.totalorder %v5872_v21, 1 }
0x1072   : > { %8369 = vmatprep.subr.bf16.mxu0 %v12118_v50  ;;  %v5875_v40 = vsel %vm5873_vm12, %v5860_v32, -1e+30  ;;  %v5876_v62 = vsel %vm5874_vm13, %v5862_v42, -1e+30 }
0x1073   : > { %v5879_v3 = vcombine.low %v5875_v40, %v5876_v62 }
0x1075   : > { %8371 = vmatpush1.bf16.msra.mxu0 %v12119_v15 }
0x1078   : > { %5947 = vmatmul.mubr.f32.vlgmr.msra.gmra.mrb[42].mxu0 %v10362_v1 }
0x1079   : > { %6142 = vmatprep.mubr.f32.mxu0 %v12120_v49 }
0x108b   : > { %v5418_v2 = vpop.f32.mrb[36].mxu0 }
0x108c   : > { %v5435_v46 = vsel %vm5433_vm10, %v5418_v2, -1e+30  ;;  %v5420_v61 = vpop.f32.mrb[37].mxu0 }
0x108d   : > { %v5436_v0 = vsel %vm5434_vm11, %v5420_v61, -1e+30 }
0x108e   : > { %v5439_v27 = vcombine.low %v5435_v46, %v5436_v0 }
0x1090   : > { %v5441_v7 = vmax.f32 %v10362_v1, %v5439_v27  ;;  %v6043_v1 = vsel %vm5970_vm15, 1, %v12073_v6  ;;  %v5779_v6 = vsub.s32 5, %v10683_v13  ;;  %v6062_v13 = vld [vmem:[%s12121_s18] sm:$0x3] }
0x1091   : > { %v6048_v16 = vrot.slane %v6043_v1, %v5427_v30 }
0x1092   : > { %v5529_v51 = vmax.f32 %v5441_v7, %v5527_v60  ;;  %v5780_v35 = vrot.slane %v10689_v28, %v5779_v6  ;;  %v5784_v12 = vrot.slane %v10692_v19, %v5779_v6  ;;  %v6067_v28 = vpop.permute.xlu1 %6066 }
0x1093   : > { %vm6053_vm4 = vcmp.eq.s32.totalorder %v6048_v16, 1 }
0x1094   : > { %v6055_v43 = vsel %vm6053_vm4, %v6038_v57, -1e+30  ;;  %vm5785_vm6 = vcmp.eq.s32.totalorder %v5780_v35, 1  ;;  %vm5786_vm7 = vcmp.eq.s32.totalorder %v5784_v12, 1 }
0x1095   : > { %v6059_v14 = vcombine.low %v6055_v43, %v6056_v37 }
0x10cb   : > { %v5596_v9 = vpop.f32.mrb[38].mxu0 }
0x10cc   : > { %v5611_v55 = vsel %vm5609_vm14, %v5596_v9, -1e+30  ;;  %v5598_v60 = vpop.f32.mrb[39].mxu0 }
0x10cd   : > { %v5612_v48 = vsel %vm5610_vm3, %v5598_v60, -1e+30 }
0x10ce   : > { %v5615_v23 = vcombine.low %v5611_v55, %v5612_v48 }
0x10d0   : > { %v5617_v34 = vmax.f32 %v5529_v51, %v5615_v23 }
0x10d2   : > { %v5705_v8 = vmax.f32 %v5617_v34, %v5703_v58 }
0x110b   : > { %v5772_v52 = vpop.f32.mrb[40].mxu0 }
0x110c   : > { %v5787_v54 = vsel %vm5785_vm6, %v5772_v52, -1e+30  ;;  %v5774_v17 = vpop.f32.mrb[41].mxu0 }
0x110d   : > { %v5788_v59 = vsel %vm5786_vm7, %v5774_v17, -1e+30 }
0x110e   : > { %v5791_v5 = vcombine.low %v5787_v54, %v5788_v59 }
0x1110   : > { %v5793_v24 = vmax.f32 %v5705_v8, %v5791_v5 }
0x1112   : > { %v5881_v25 = vmax.f32 %v5793_v24, %v5879_v3 }
0x114b   : > { %v5948_v58 = vpop.f32.mrb[42].mxu0 }
0x114c   : > { %v5963_v47 = vsel %vm5961_vm8, %v5948_v58, -1e+30  ;;  %v5950_v31 = vpop.f32.mrb[43].mxu0 }
0x114d   : > { %v5964_v45 = vsel %vm5962_vm9, %v5950_v31, -1e+30 }
0x114e   : > { %v5967_v63 = vcombine.low %v5963_v47, %v5964_v45 }
0x1150   : > { %v5969_v22 = vmax.f32 %v5881_v25, %v5967_v63 }
0x1152   : > { %v6061_v50 = vmax.f32 %v5969_v22, %v6059_v14 }
0x1154   : > { %v6070_v15 = vcombine.high %v6061_v50, %v6061_v50 }
0x1156   : > { %6381 = vmatprep.subr.msk.mxu0 %vm597_vm0, %v6070_v15 }
0x1157   : > { %6382 = vmatpush1.msk.msra.mxu0 %vm597_vm0, %v6061_v50 }
0x1158   : > { %6383 = vmatmul.mubr.msk.f32.vlgmr.msra.gmra.mrb[44].mxu0 %vm593_vm1, %v6062_v13 }
0x122b   : > { %v6144_v19 = vpop.f32.mrb[44].mxu0 }
0x122c   : > { %v6145_v49 = vadd.f32 %v6144_v19, %v6067_v28  ;;  %v6146_v30 = vpop.f32.mrb[45].mxu0 }
0x122d   : > { %v6147_v39 = vadd.f32 %v6146_v30, %v6067_v28 }
0x122e   : > { %v6149_v44 = vmax.f32 %v6145_v49, 0.0 }
0x122f   : > { %v6150_v56 = vmax.f32 %v6147_v39, 0.0 }
0x1230   : > { %v6171_v2 = vrot.slane %v6149_v44, 2 }
0x1231   : > { %v6172_v46 = vrot.slane %v6150_v56, 2 }
0x1232   : > { %6175 = vst [vmem:[%s8920_s20] sm:$0xc0] %v6171_v2 }
0x1233   : > { %6176 = vst [vmem:[%s8920_s20 + $0x8] sm:$0xc0] %v6172_v46 }
0x1234 PF: > { %s12122_s24 = sld [smem:[#allocation8_spill]] }
0x123a   : > { %s29_s24 = sadd.s32 1, %s12122_s24  }
0x123b   : > { %p26_p5 = scmp.ge.s32.totalorder %s29_s24, 4  }
0x123d   :  { %28 = sbr.rel (!%p26_p5) target bundleno = 7 (0x7), region = 158 }
0x1244   :  { %6198 = vsyncpa [#allocation3], 1 }
0x1245   :  { %6200 = vsyncpa [#allocation3 + $0x1], 1 }
0x1246   :  { %6201 = vsyncpa [#allocation5], 1 }

</bundles_post_ra>
